<compile_context>
chip_gen: v6e
topology: v6e:2x2x1
jax: 0.10.0
libtpu: 0.0.40
codegen_flags: <defaults>
</compile_context>

<pallas_src>
import functools

import jax
import jax.numpy as jnp
from jax.experimental import pallas as pl
from jax.experimental.pallas import tpu as pltpu


# ----------------------------------------------------------------------------
# generation-aware configuration (computed once at import)
# ----------------------------------------------------------------------------
try:
    _KIND = jax.devices()[0].device_kind.lower()
except Exception:  # pragma: no cover - conservative fallback
    _KIND = ""

_IS_V7 = ("v7" in _KIND) or ("tpu7" in _KIND)          # 2 TCs, 64 MiB VMEM/TC
_BIG_VMEM = (not _IS_V7) and any(t in _KIND for t in ("v5", "v6"))  # 128 MiB parts

_VMEM_LIMIT = (96 if _BIG_VMEM else 48) * 1024 * 1024   # leave headroom on v7x
_TN_CAP = 1024 if _BIG_VMEM else 512                    # output-lane tile cap
_TM_CAP = 512 if _BIG_VMEM else 256                     # row tile cap
_REC_STREAM_BUDGET = (16 if _BIG_VMEM else 8) * 1024 * 1024  # gx/y block budget


# ----------------------------------------------------------------------------
# small helpers
# ----------------------------------------------------------------------------
def _round_up(x, m):
    return (x + m - 1) // m * m


def _pick_divisor(n, max_chunk):
    c = max(1, min(n, max_chunk))
    while n % c != 0:
        c -= 1
    return c


def _largest_tile(dim, cap):
    """Largest power-of-two tile (>=128) dividing dim, bounded by cap."""
    for t in (1024, 512, 256, 128):
        if t <= cap and dim % t == 0:
            return t
    return dim


def _pick_batch_chunk(batch):
    """Split batch across the grid only on 2-TensorCore parts (v7x)."""
    if _IS_V7 and batch % 2 == 0 and (batch // 2) % 8 == 0:
        return batch // 2
    return batch


def _pick_time_chunk(T, BB, Hp, budget_bytes):
    """Time-chunk length sized against double-buffered bf16 gx (4Hp) + y (Hp)."""
    per_t = 2 * BB * Hp * 2 * (4 + 1)
    cap = max(1, budget_bytes // max(per_t, 1))
    cap = min(cap, 32, T)
    return _pick_divisor(T, cap)


# ----------------------------------------------------------------------------
# Tiled matmul + bias kernels (LSTM input projections and the FC layer)
# ----------------------------------------------------------------------------
def _matmul_bias_1k_kernel(x_ref, w_ref, b_ref, o_ref):
    """Single K-step: write x @ w + b straight to the output (no accumulator)."""
    o_ref[...] = (jnp.dot(x_ref[...], w_ref[...],
                          preferred_element_type=jnp.float32)
                  + b_ref[...]).astype(o_ref.dtype)


def _matmul_bias_kernel(x_ref, w_ref, b_ref, o_ref, acc_ref):
    """o = x @ w + b, accumulated in f32 over the K grid axis."""
    @pl.when(pl.program_id(2) == 0)
    def _():
        acc_ref[...] = jnp.zeros_like(acc_ref)

    acc_ref[...] += jnp.dot(x_ref[...], w_ref[...],
                            preferred_element_type=jnp.float32)

    @pl.when(pl.program_id(2) == pl.num_programs(2) - 1)
    def _():
        o_ref[...] = (acc_ref[...] + b_ref[...]).astype(o_ref.dtype)


def matmul_bias(x, wp, bp, n_out, *, out_dtype=jnp.float32):
    """x: (M, K) bf16, wp: (Kp, Np) bf16 pre-padded, bp: (1, Np) f32 pre-padded.

    Returns (M, n_out).  Only x is padded per call; weights/bias were padded
    once at parameter-preparation time so output stores are lane-dense."""
    M, K = x.shape
    Kp, Np = wp.shape
    assert K <= Kp and n_out <= Np

    tm = min(_TM_CAP, _round_up(M, 8))
    Mp = _round_up(M, tm)
    tk = _largest_tile(Kp, 512)
    tn = _largest_tile(Np, _TN_CAP)

    xp = x if (M == Mp and K == Kp) else jnp.pad(x, ((0, Mp - M), (0, Kp - K)))
    nk = Kp // tk

    if nk == 1:
        out = pl.pallas_call(
            _matmul_bias_1k_kernel,
            out_shape=jax.ShapeDtypeStruct((Mp, Np), out_dtype),
            grid_spec=pltpu.PrefetchScalarGridSpec(
                num_scalar_prefetch=0,
                grid=(Mp // tm, Np // tn),
                in_specs=[
                    pl.BlockSpec((tm, Kp), lambda i, j: (i, 0)),
                    pl.BlockSpec((Kp, tn), lambda i, j: (0, j)),
                    pl.BlockSpec((1, tn), lambda i, j: (0, j)),
                ],
                out_specs=pl.BlockSpec((tm, tn), lambda i, j: (i, j)),
            ),
            compiler_params=pltpu.CompilerParams(
                dimension_semantics=("parallel", "parallel"),
                vmem_limit_bytes=_VMEM_LIMIT,
            ),
        )(xp, wp, bp)
    else:
        out = pl.pallas_call(
            _matmul_bias_kernel,
            out_shape=jax.ShapeDtypeStruct((Mp, Np), out_dtype),
            grid_spec=pltpu.PrefetchScalarGridSpec(
                num_scalar_prefetch=0,
                grid=(Mp // tm, Np // tn, nk),
                in_specs=[
                    pl.BlockSpec((tm, tk), lambda i, j, k: (i, k)),
                    pl.BlockSpec((tk, tn), lambda i, j, k: (k, j)),
                    pl.BlockSpec((1, tn), lambda i, j, k: (0, j)),
                ],
                out_specs=pl.BlockSpec((tm, tn), lambda i, j, k: (i, j)),
                scratch_shapes=[pltpu.VMEM((tm, tn), jnp.float32)],
            ),
            compiler_params=pltpu.CompilerParams(
                dimension_semantics=("parallel", "parallel", "arbitrary"),
                vmem_limit_bytes=_VMEM_LIMIT,
            ),
        )(xp, wp, bp)

    if Mp == M and Np == n_out:
        return out
    return out[:M, :n_out]


# ----------------------------------------------------------------------------
# LSTM recurrence kernel (input projection already folded into gx)
# ----------------------------------------------------------------------------
def _lstm_recurrence_kernel(gx_ref, whh_ref, h0_ref, c0_ref,
                            y_ref, hT_ref, cT_ref,
                            h32_sc, c_sc, hbf_sc, *, Hp, chunks):
    """Grid = (batch_chunks, time_chunks); time axis is sequential.

    gx_ref : (TT, BB, 4Hp) bf16  precomputed x @ W_ih + (b_ih + b_hh)
    whh_ref: (Hp, 4Hp)     bf16  resident recurrent weights
    h0/c0  : (BB, Hp)      f32   initial state for this batch chunk
    y_ref  : (TT, BB, Hp)  bf16  per-step hidden outputs
    hT/cT  : (BB, Hp)      f32   final state (written on last time chunk)
    h32_sc / c_sc : f32 state carried across time chunks
    hbf_sc        : bf16 copy of h used as the matmul operand and the y store
    PyTorch gate order: i, f, g, o.  sigmoid(x) = 0.5*(tanh(0.5 x)+1) (1 EUP op).
    """
    TT = gx_ref.shape[0]

    @pl.when(pl.program_id(1) == 0)
    def _():
        h32_sc[...] = h0_ref[...]
        c_sc[...] = c0_ref[...]
        hbf_sc[...] = h0_ref[...].astype(hbf_sc.dtype)

    def step(t, carry):
        gx_t = gx_ref[t]                                   # (BB, 4Hp) bf16
        # Independent batch sub-chunks in one unrolled body: the LLO scheduler
        # overlaps chunk A's MXU fill/drain with chunk B's EUP/VPU gate math.
        for (s0, sz) in chunks:
            rows = slice(s0, s0 + sz)
            gates = gx_t[rows].astype(jnp.float32) + jnp.dot(
                hbf_sc[rows, :], whh_ref[...],
                preferred_element_type=jnp.float32)
            i_g = 0.5 * (jnp.tanh(0.5 * gates[:, 0 * Hp:1 * Hp]) + 1.0)
            f_g = 0.5 * (jnp.tanh(0.5 * gates[:, 1 * Hp:2 * Hp]) + 1.0)
            g_g = jnp.tanh(gates[:, 2 * Hp:3 * Hp])
            o_g = 0.5 * (jnp.tanh(0.5 * gates[:, 3 * Hp:4 * Hp]) + 1.0)
            c_new = f_g * c_sc[rows, :] + i_g * g_g
            h_new = o_g * jnp.tanh(c_new)
            c_sc[rows, :] = c_new
            h32_sc[rows, :] = h_new
            hbf_sc[rows, :] = h_new.astype(hbf_sc.dtype)   # matmul operand copy
        y_ref[t] = hbf_sc[...]                             # bf16 lane-dense store
        return carry

    # Fully unrolled short time loop -> MXU push of step t overlaps VPU/EUP
    # gate math of the previous sub-chunk.
    jax.lax.fori_loop(0, TT, step, 0, unroll=True)

    @pl.when(pl.program_id(1) == pl.num_programs(1) - 1)
    def _():
        hT_ref[...] = h32_sc[...]
        cT_ref[...] = c_sc[...]


def lstm_recurrence(gx_tm, w_hh_p, h0, c0):
    """gx_tm: (T, B, 4Hp) bf16, w_hh_p: (Hp, 4Hp) bf16, h0/c0: (B, Hp) f32.
    Returns (y (T,B,Hp) bf16, hT (B,Hp) f32, cT (B,Hp) f32)."""
    T, B, G = gx_tm.shape
    Hp = h0.shape[-1]
    assert G == 4 * Hp and w_hh_p.shape == (Hp, 4 * Hp)

    BB = _pick_batch_chunk(B)
    TT = _pick_time_chunk(T, BB, Hp, _REC_STREAM_BUDGET)
    if BB % 16 == 0:
        chunks = ((0, BB // 2), (BB // 2, BB - BB // 2))
    else:
        chunks = ((0, BB),)

    kernel = functools.partial(_lstm_recurrence_kernel, Hp=Hp, chunks=chunks)

    out_shapes = (
        jax.ShapeDtypeStruct((T, B, Hp), jnp.bfloat16),
        jax.ShapeDtypeStruct((B, Hp), jnp.float32),
        jax.ShapeDtypeStruct((B, Hp), jnp.float32),
    )
    return pl.pallas_call(
        kernel,
        out_shape=out_shapes,
        grid_spec=pltpu.PrefetchScalarGridSpec(
            num_scalar_prefetch=0,
            grid=(B // BB, T // TT),
            in_specs=[
                pl.BlockSpec((TT, BB, 4 * Hp), lambda b, t: (t, b, 0)),
                pl.BlockSpec((Hp, 4 * Hp), lambda b, t: (0, 0)),
                pl.BlockSpec((BB, Hp), lambda b, t: (b, 0)),
                pl.BlockSpec((BB, Hp), lambda b, t: (b, 0)),
            ],
            out_specs=(
                pl.BlockSpec((TT, BB, Hp), lambda b, t: (t, b, 0)),
                pl.BlockSpec((BB, Hp), lambda b, t: (b, 0)),
                pl.BlockSpec((BB, Hp), lambda b, t: (b, 0)),
            ),
            scratch_shapes=[pltpu.VMEM((BB, Hp), jnp.float32),
                            pltpu.VMEM((BB, Hp), jnp.float32),
                            pltpu.VMEM((BB, Hp), jnp.bfloat16)],
        ),
        compiler_params=pltpu.CompilerParams(
            dimension_semantics=("parallel", "arbitrary"),
            vmem_limit_bytes=_VMEM_LIMIT,
        ),
    )(gx_tm, w_hh_p, h0, c0)


# ----------------------------------------------------------------------------
# Parameters
# ----------------------------------------------------------------------------
def init_params(key, vocab_size, emb_dim, n_hidden, n_layers):
    """PyTorch-layout parameters (w_ih: (4H, I), w_hh: (4H, H), fc_w: (V, H))."""
    params = {}
    keys = jax.random.split(key, 2 + 4 * n_layers + 2)
    params["emb"] = 0.1 * jax.random.normal(
        keys[0], (vocab_size, emb_dim), jnp.float32)
    scale = 1.0 / jnp.sqrt(n_hidden)
    for l in range(n_layers):
        in_dim = emb_dim if l == 0 else n_hidden
        k0, k1, k2, k3 = keys[2 + 4 * l: 2 + 4 * l + 4]
        params[f"w_ih_{l}"] = scale * jax.random.normal(
            k0, (4 * n_hidden, in_dim), jnp.float32)
        params[f"w_hh_{l}"] = scale * jax.random.normal(
            k1, (4 * n_hidden, n_hidden), jnp.float32)
        params[f"b_ih_{l}"] = scale * jax.random.normal(
            k2, (4 * n_hidden,), jnp.float32)
        params[f"b_hh_{l}"] = scale * jax.random.normal(
            k3, (4 * n_hidden,), jnp.float32)
    params["fc_w"] = scale * jax.random.normal(
        keys[-2], (vocab_size, n_hidden), jnp.float32)
    params["fc_b"] = scale * jax.random.normal(
        keys[-1], (vocab_size,), jnp.float32)
    return params


def _pad_gate_cols(w, H, Hp):
    """(K, 4H) -> (K, 4Hp): zero-pad each of the 4 gate blocks to Hp lanes."""
    if Hp == H:
        return w
    blocks = [jnp.pad(w[:, g * H:(g + 1) * H], ((0, 0), (0, Hp - H)))
              for g in range(4)]
    return jnp.concatenate(blocks, axis=1)


def _pad_gate_vec(b, H, Hp):
    if Hp == H:
        return b
    blocks = [jnp.pad(b[g * H:(g + 1) * H], (0, Hp - H)) for g in range(4)]
    return jnp.concatenate(blocks)


def _pad_linear_to_tiles(w_t, b):
    """Tile-align a (K, N) weight + (N,) bias once: returns bf16 (Kp,Np), f32 (1,Np)."""
    K, N = w_t.shape
    tk = min(512, _round_up(K, 128))
    tn = min(512, _round_up(N, 128))
    Kp, Np = _round_up(K, tk), _round_up(N, tn)
    wp = jnp.pad(w_t, ((0, Kp - K), (0, Np - N))).astype(jnp.bfloat16)
    bp = jnp.pad(b.reshape(1, N).astype(jnp.float32), ((0, 0), (0, Np - N)))
    return wp, bp


def prepare_params(raw, n_layers):
    """One-time conversion to kernel layout: transposed bf16 weights, fused
    biases, lane-padded gate blocks, tile-aligned padding.  No per-forward
    transposes / casts / pads of any weight."""
    H = raw["w_hh_0"].shape[1]
    Hp = _round_up(H, 128)
    prep = {"emb": raw["emb"].astype(jnp.bfloat16)}
    for l in range(n_layers):
        w_ih_t = jnp.transpose(raw[f"w_ih_{l}"])              # (in_dim, 4H)
        w_ih_t = _pad_gate_cols(w_ih_t, H, Hp)                 # (in_dim, 4Hp)
        if l > 0 and Hp != H:                                  # accept Hp-wide y
            w_ih_t = jnp.pad(w_ih_t, ((0, Hp - H), (0, 0)))
        b_fused = _pad_gate_vec(raw[f"b_ih_{l}"] + raw[f"b_hh_{l}"], H, Hp)
        wp, bp = _pad_linear_to_tiles(w_ih_t, b_fused)
        prep[f"w_ih_{l}"] = wp                                 # (Kp, 4Hp) bf16
        prep[f"b_{l}"] = bp                                    # (1, 4Hp) f32

        w_hh_t = jnp.transpose(raw[f"w_hh_{l}"])               # (H, 4H)
        w_hh_t = _pad_gate_cols(w_hh_t, H, Hp)                 # (H, 4Hp)
        if Hp != H:
            w_hh_t = jnp.pad(w_hh_t, ((0, Hp - H), (0, 0)))    # (Hp, 4Hp)
        prep[f"w_hh_{l}"] = w_hh_t.astype(jnp.bfloat16)

    fc_w_t = jnp.transpose(raw["fc_w"])                        # (H, V)
    if Hp != H:
        fc_w_t = jnp.pad(fc_w_t, ((0, Hp - H), (0, 0)))        # (Hp, V)
    fcp, fbp = _pad_linear_to_tiles(fc_w_t, raw["fc_b"])
    prep["fc_w"] = fcp
    prep["fc_b"] = fbp
    return prep


def init_hidden(n_layers, batch_size, n_hidden):
    z = jnp.zeros((n_layers, batch_size, n_hidden), jnp.float32)
    return (z, z)


def _pad_cols(a, Hp):
    H = a.shape[-1]
    if H == Hp:
        return a
    return jnp.pad(a, ((0, 0), (0, Hp - H)))


# ----------------------------------------------------------------------------
# Forward pass (mirrors WordLSTM.forward, inference mode)
# ----------------------------------------------------------------------------
def word_lstm_forward(params, x_tokens, hidden, n_layers, n_hidden):
    """x_tokens: (B, T) int32, hidden: ((L,B,H), (L,B,H)).
    Returns (logits (B*T, vocab), (h_n, c_n))."""
    h0_all, c0_all = hidden
    B, T = x_tokens.shape
    H = n_hidden
    Hp = _round_up(H, 128)
    V = params["emb"].shape[0]

    # Embedding gather: table pre-cast to bf16, gathered directly time-major.
    x_tm = params["emb"][x_tokens.T]                       # (T, B, E) bf16

    h_fin, c_fin = [], []
    for l in range(n_layers):
        in_dim = x_tm.shape[-1]
        # Hoisted input projection: one big MXU matmul over all T*B rows,
        # bias (b_ih + b_hh) folded in, streamed out as bf16.
        gx = matmul_bias(x_tm.reshape(T * B, in_dim),
                         params[f"w_ih_{l}"], params[f"b_{l}"],
                         n_out=4 * Hp, out_dtype=jnp.bfloat16)
        gx = gx.reshape(T, B, 4 * Hp)

        y_tm, hT, cT = lstm_recurrence(gx, params[f"w_hh_{l}"],
                                       _pad_cols(h0_all[l], Hp),
                                       _pad_cols(c0_all[l], Hp))
        # TODO(synk): nn.LSTM inter-layer dropout and self.dropout are
        # train-only (p=0.3); forward here is inference-mode => identity.
        x_tm = y_tm                                        # (T, B, Hp) bf16
        h_fin.append(hT[:, :H])
        c_fin.append(cT[:, :H])

    lstm_out = jnp.transpose(x_tm, (1, 0, 2))              # (B, T, Hp) batch_first
    out2d = lstm_out.reshape(B * T, Hp)                    # padded lanes are zero
    logits = matmul_bias(out2d, params["fc_w"], params["fc_b"],
                         n_out=V, out_dtype=jnp.float32)   # (B*T, V)
    return logits, (jnp.stack(h_fin), jnp.stack(c_fin))


# ----------------------------------------------------------------------------
# Pure-JAX reference (f32) for a tolerance check
# ----------------------------------------------------------------------------
def reference_forward(raw, x_tokens, hidden, n_layers, n_hidden):
    h_all, c_all = hidden
    emb = raw["emb"][x_tokens]
    x = jnp.transpose(emb, (1, 0, 2))
    H = n_hidden
    h_fin, c_fin = [], []
    for l in range(n_layers):
        w_ih, w_hh = raw[f"w_ih_{l}"], raw[f"w_hh_{l}"]
        b = raw[f"b_ih_{l}"] + raw[f"b_hh_{l}"]
        h, c = h_all[l], c_all[l]
        ys = []
        for t in range(x.shape[0]):
            gates = x[t] @ w_ih.T + h @ w_hh.T + b
            i_g = jax.nn.sigmoid(gates[:, 0 * H:1 * H])
            f_g = jax.nn.sigmoid(gates[:, 1 * H:2 * H])
            g_g = jnp.tanh(gates[:, 2 * H:3 * H])
            o_g = jax.nn.sigmoid(gates[:, 3 * H:4 * H])
            c = f_g * c + i_g * g_g
            h = o_g * jnp.tanh(c)
            ys.append(h)
        x = jnp.stack(ys)
        h_fin.append(h)
        c_fin.append(c)
    out = jnp.transpose(x, (1, 0, 2)).reshape(-1, n_hidden)
    logits = out @ raw["fc_w"].T + raw["fc_b"]
    return logits, (jnp.stack(h_fin), jnp.stack(c_fin))


# ----------------------------------------------------------------------------
# Main
# ----------------------------------------------------------------------------
if __name__ == "__main__":
    vocab_size = 64
    emb_dim = 200        # nn.Embedding(vocab_size, 200)
    n_hidden = 32
    n_layers = 2
    batch = 2
    seq_len = 8

    key = jax.random.PRNGKey(0)
    kp, kx = jax.random.split(key)
    raw_params = init_params(kp, vocab_size, emb_dim, n_hidden, n_layers)
    params = prepare_params(raw_params, n_layers)

    x_tokens = jax.random.randint(kx, (batch, seq_len), 0, vocab_size,
                                  dtype=jnp.int32)
    hidden = init_hidden(n_layers, batch, n_hidden)

    fwd = jax.jit(word_lstm_forward, static_argnums=(3, 4))
    out, (h_n, c_n) = fwd(params, x_tokens, hidden, n_layers, n_hidden)
    jax.block_until_ready(out)
    jax.block_until_ready(h_n)
    jax.block_until_ready(c_n)

    assert out.shape == (batch * seq_len, vocab_size)
    assert h_n.shape == (n_layers, batch, n_hidden)
    assert c_n.shape == (n_layers, batch, n_hidden)

    # Tolerance check vs f32 reference.  Matmul weights AND the gx / y streams
    # are bf16 (precision tradeoff vs PyTorch f32), so the tolerance is loose.
    ref_out, (ref_h, ref_c) = reference_forward(raw_params, x_tokens, hidden,
                                                n_layers, n_hidden)
    assert float(jnp.max(jnp.abs(out - ref_out))) < 1e-1
    assert float(jnp.max(jnp.abs(h_n - ref_h))) < 1e-1
    assert float(jnp.max(jnp.abs(c_n - ref_c))) < 1e-1

    print("KERNEL_OK")
</pallas_src>

<mosaic_0001>
module attributes {stable_mosaic.version = 11 : i64} {
  func.func @_matmul_bias_1k_kernel(%arg0: i32, %arg1: i32, %arg2: memref<16x256xbf16, #tpu.memory_space<vmem>>, %arg3: memref<256x512xbf16, #tpu.memory_space<vmem>>, %arg4: memref<1x512xf32, #tpu.memory_space<vmem>>, %arg5: memref<16x512xbf16, #tpu.memory_space<vmem>>) attributes {dimension_semantics = [#tpu.dimension_semantics<parallel>, #tpu.dimension_semantics<parallel>], iteration_bounds = array<i64: 1, 1>, scalar_prefetch = 0 : i64, scratch_operands = 0 : i64, tpu.core_type = #tpu.core_type<tc>, window_params = [{transform_indices = @transform_0, window_bounds = array<i64: 16, 256>}, {transform_indices = @transform_1, window_bounds = array<i64: 256, 512>}, {transform_indices = @transform_2, window_bounds = array<i64: 1, 512>}, {transform_indices = @transform_3, window_bounds = array<i64: 16, 512>}]} {
    %c0 = arith.constant 0 : index
    %c0_0 = arith.constant 0 : index
    %0 = vector.load %arg2[%c0, %c0_0] : memref<16x256xbf16, #tpu.memory_space<vmem>>, vector<16x256xbf16>
    %c0_1 = arith.constant 0 : index
    %c0_2 = arith.constant 0 : index
    %1 = vector.load %arg3[%c0_1, %c0_2] : memref<256x512xbf16, #tpu.memory_space<vmem>>, vector<256x512xbf16>
    %cst = arith.constant dense<0.000000e+00> : vector<16x512xf32>
    %2 = tpu.matmul %0, %1, %cst {dimension_numbers = #tpu.dot_dimension_numbers<[1], [0], [0], [1], [0, 0, 1, 1], [], []>} : vector<16x256xbf16>, vector<256x512xbf16>, vector<16x512xf32> -> vector<16x512xf32>
    %c0_3 = arith.constant 0 : index
    %c0_4 = arith.constant 0 : index
    %3 = vector.load %arg4[%c0_3, %c0_4] : memref<1x512xf32, #tpu.memory_space<vmem>>, vector<1x512xf32>
    %4 = vector.broadcast %3 : vector<1x512xf32> to vector<16x512xf32>
    %5 = arith.addf %2, %4 : vector<16x512xf32>
    %6 = arith.truncf %5 : vector<16x512xf32> to vector<16x512xbf16>
    %c0_5 = arith.constant 0 : index
    %c0_6 = arith.constant 0 : index
    %7 = vector.load %arg5[%c0_5, %c0_6] : memref<16x512xbf16, #tpu.memory_space<vmem>>, vector<16x512xbf16>
    tpu.vector_store %arg5[%c0_5, %c0_6], %6 {strides = array<i32>} : memref<16x512xbf16, #tpu.memory_space<vmem>>, vector<16x512xbf16>,
    return
  }
  func.func @transform_0(%arg0: i32, %arg1: i32) -> (i32, i32) {
    %c0_i32 = arith.constant 0 : i32
    %c0_i32_0 = arith.constant 0 : i32
    return %arg0, %c0_i32 : i32, i32
  }
  func.func @transform_1(%arg0: i32, %arg1: i32) -> (i32, i32) {
    %c0_i32 = arith.constant 0 : i32
    %c0_i32_0 = arith.constant 0 : i32
    return %c0_i32, %arg1 : i32, i32
  }
  func.func @transform_2(%arg0: i32, %arg1: i32) -> (i32, i32) {
    %c0_i32 = arith.constant 0 : i32
    %c0_i32_0 = arith.constant 0 : i32
    return %c0_i32, %arg1 : i32, i32
  }
  func.func @transform_3(%arg0: i32, %arg1: i32) -> (i32, i32) {
    %c0_i32 = arith.constant 0 : i32
    return %arg0, %arg1 : i32, i32
  }
}

module attributes {stable_mosaic.version = 11 : i64} {
  func.func @_matmul_bias_1k_kernel(%arg0: i32, %arg1: i32, %arg2: memref<16x128xbf16, #tpu.memory_space<vmem>>, %arg3: memref<128x512xbf16, #tpu.memory_space<vmem>>, %arg4: memref<1x512xf32, #tpu.memory_space<vmem>>, %arg5: memref<16x512xbf16, #tpu.memory_space<vmem>>) attributes {dimension_semantics = [#tpu.dimension_semantics<parallel>, #tpu.dimension_semantics<parallel>], iteration_bounds = array<i64: 1, 1>, scalar_prefetch = 0 : i64, scratch_operands = 0 : i64, tpu.core_type = #tpu.core_type<tc>, window_params = [{transform_indices = @transform_0, window_bounds = array<i64: 16, 128>}, {transform_indices = @transform_1, window_bounds = array<i64: 128, 512>}, {transform_indices = @transform_2, window_bounds = array<i64: 1, 512>}, {transform_indices = @transform_3, window_bounds = array<i64: 16, 512>}]} {
    %c0 = arith.constant 0 : index
    %c0_0 = arith.constant 0 : index
    %0 = vector.load %arg2[%c0, %c0_0] : memref<16x128xbf16, #tpu.memory_space<vmem>>, vector<16x128xbf16>
    %c0_1 = arith.constant 0 : index
    %c0_2 = arith.constant 0 : index
    %1 = vector.load %arg3[%c0_1, %c0_2] : memref<128x512xbf16, #tpu.memory_space<vmem>>, vector<128x512xbf16>
    %cst = arith.constant dense<0.000000e+00> : vector<16x512xf32>
    %2 = tpu.matmul %0, %1, %cst {dimension_numbers = #tpu.dot_dimension_numbers<[1], [0], [0], [1], [0, 0, 1, 1], [], []>} : vector<16x128xbf16>, vector<128x512xbf16>, vector<16x512xf32> -> vector<16x512xf32>
    %c0_3 = arith.constant 0 : index
    %c0_4 = arith.constant 0 : index
    %3 = vector.load %arg4[%c0_3, %c0_4] : memref<1x512xf32, #tpu.memory_space<vmem>>, vector<1x512xf32>
    %4 = vector.broadcast %3 : vector<1x512xf32> to vector<16x512xf32>
    %5 = arith.addf %2, %4 : vector<16x512xf32>
    %6 = arith.truncf %5 : vector<16x512xf32> to vector<16x512xbf16>
    %c0_5 = arith.constant 0 : index
    %c0_6 = arith.constant 0 : index
    %7 = vector.load %arg5[%c0_5, %c0_6] : memref<16x512xbf16, #tpu.memory_space<vmem>>, vector<16x512xbf16>
    tpu.vector_store %arg5[%c0_5, %c0_6], %6 {strides = array<i32>} : memref<16x512xbf16, #tpu.memory_space<vmem>>, vector<16x512xbf16>,
    return
  }
  func.func @transform_0(%arg0: i32, %arg1: i32) -> (i32, i32) {
    %c0_i32 = arith.constant 0 : i32
    %c0_i32_0 = arith.constant 0 : i32
    return %arg0, %c0_i32 : i32, i32
  }
  func.func @transform_1(%arg0: i32, %arg1: i32) -> (i32, i32) {
    %c0_i32 = arith.constant 0 : i32
    %c0_i32_0 = arith.constant 0 : i32
    return %c0_i32, %arg1 : i32, i32
  }
  func.func @transform_2(%arg0: i32, %arg1: i32) -> (i32, i32) {
    %c0_i32 = arith.constant 0 : i32
    %c0_i32_0 = arith.constant 0 : i32
    return %c0_i32, %arg1 : i32, i32
  }
  func.func @transform_3(%arg0: i32, %arg1: i32) -> (i32, i32) {
    %c0_i32 = arith.constant 0 : i32
    return %arg0, %arg1 : i32, i32
  }
}

module attributes {stable_mosaic.version = 11 : i64} {
  func.func @_lstm_recurrence_kernel(%arg0: i32, %arg1: i32, %arg2: memref<8x2x512xbf16, #tpu.memory_space<vmem>>, %arg3: memref<128x512xbf16, #tpu.memory_space<vmem>>, %arg4: memref<2x128xf32, #tpu.memory_space<vmem>>, %arg5: memref<2x128xf32, #tpu.memory_space<vmem>>, %arg6: memref<8x2x128xbf16, #tpu.memory_space<vmem>>, %arg7: memref<2x128xf32, #tpu.memory_space<vmem>>, %arg8: memref<2x128xf32, #tpu.memory_space<vmem>>, %arg9: memref<2x128xf32, #tpu.memory_space<vmem>>, %arg10: memref<2x128xf32, #tpu.memory_space<vmem>>, %arg11: memref<2x128xbf16, #tpu.memory_space<vmem>>) attributes {dimension_semantics = [#tpu.dimension_semantics<parallel>, #tpu.dimension_semantics<arbitrary>], iteration_bounds = array<i64: 1, 1>, scalar_prefetch = 0 : i64, scratch_operands = 3 : i64, tpu.core_type = #tpu.core_type<tc>, window_params = [{transform_indices = @transform_0, window_bounds = array<i64: 8, 2, 512>}, {pipeline_mode = #tpu.pipeline_mode<synchronous>, transform_indices = @transform_1, window_bounds = array<i64: 128, 512>}, {transform_indices = @transform_2, window_bounds = array<i64: 2, 128>}, {transform_indices = @transform_3, window_bounds = array<i64: 2, 128>}, {transform_indices = @transform_4, window_bounds = array<i64: 8, 2, 128>}, {transform_indices = @transform_5, window_bounds = array<i64: 2, 128>}, {transform_indices = @transform_6, window_bounds = array<i64: 2, 128>}]} {
    %c0_i32 = arith.constant 0 : i32
    %0 = arith.cmpi eq, %arg1, %c0_i32 : i32
    %1 = arith.extui %0 : i1 to i32
    %c0_i32_0 = arith.constant 0 : i32
    %2 = arith.cmpi ne, %1, %c0_i32_0 : i32
    scf.if %2 {
      %c0_226 = arith.constant 0 : index
      %c0_227 = arith.constant 0 : index
      %398 = vector.load %arg4[%c0_226, %c0_227] : memref<2x128xf32, #tpu.memory_space<vmem>>, vector<2x128xf32>
      %c0_228 = arith.constant 0 : index
      %c0_229 = arith.constant 0 : index
      %399 = vector.load %arg9[%c0_228, %c0_229] : memref<2x128xf32, #tpu.memory_space<vmem>>, vector<2x128xf32>
      tpu.vector_store %arg9[%c0_228, %c0_229], %398 {strides = array<i32>} : memref<2x128xf32, #tpu.memory_space<vmem>>, vector<2x128xf32>,
      %c0_230 = arith.constant 0 : index
      %c0_231 = arith.constant 0 : index
      %400 = vector.load %arg5[%c0_230, %c0_231] : memref<2x128xf32, #tpu.memory_space<vmem>>, vector<2x128xf32>
      %c0_232 = arith.constant 0 : index
      %c0_233 = arith.constant 0 : index
      %401 = vector.load %arg10[%c0_232, %c0_233] : memref<2x128xf32, #tpu.memory_space<vmem>>, vector<2x128xf32>
      tpu.vector_store %arg10[%c0_232, %c0_233], %400 {strides = array<i32>} : memref<2x128xf32, #tpu.memory_space<vmem>>, vector<2x128xf32>,
      %c0_234 = arith.constant 0 : index
      %c0_235 = arith.constant 0 : index
      %402 = vector.load %arg4[%c0_234, %c0_235] : memref<2x128xf32, #tpu.memory_space<vmem>>, vector<2x128xf32>
      %403 = arith.truncf %402 : vector<2x128xf32> to vector<2x128xbf16>
      %c0_236 = arith.constant 0 : index
      %c0_237 = arith.constant 0 : index
      %404 = vector.load %arg11[%c0_236, %c0_237] : memref<2x128xbf16, #tpu.memory_space<vmem>>, vector<2x128xbf16>
      tpu.vector_store %arg11[%c0_236, %c0_237], %403 {strides = array<i32>} : memref<2x128xbf16, #tpu.memory_space<vmem>>, vector<2x128xbf16>,
    } else {
    }
    %c0_i32_1 = arith.constant 0 : i32
    %3 = arith.index_cast %c0_i32_1 : i32 to index
    %c0 = arith.constant 0 : index
    %c0_2 = arith.constant 0 : index
    %4 = vector.load %arg2[%3, %c0, %c0_2] : memref<8x2x512xbf16, #tpu.memory_space<vmem>>, vector<1x2x512xbf16>
    %5 = vector.shape_cast %4 : vector<1x2x512xbf16> to vector<2x512xbf16>
    %6 = arith.extf %5 : vector<2x512xbf16> to vector<2x512xf32>
    %c0_3 = arith.constant 0 : index
    %c0_4 = arith.constant 0 : index
    %7 = vector.load %arg11[%c0_3, %c0_4] : memref<2x128xbf16, #tpu.memory_space<vmem>>, vector<2x128xbf16>
    %c0_5 = arith.constant 0 : index
    %c0_6 = arith.constant 0 : index
    %8 = vector.load %arg3[%c0_5, %c0_6] : memref<128x512xbf16, #tpu.memory_space<vmem>>, vector<128x512xbf16>
    %cst = arith.constant dense<0.000000e+00> : vector<2x512xf32>
    %9 = tpu.matmul %7, %8, %cst {dimension_numbers = #tpu.dot_dimension_numbers<[1], [0], [0], [1], [0, 0, 1, 1], [], []>} : vector<2x128xbf16>, vector<128x512xbf16>, vector<2x512xf32> -> vector<2x512xf32>
    %10 = arith.addf %6, %9 : vector<2x512xf32>
    %11 = vector.extract_strided_slice %10 {offsets = [0, 0], sizes = [2, 128], strides = [1, 1]} : vector<2x512xf32> to vector<2x128xf32>
    %cst_7 = arith.constant 5.000000e-01 : f32
    %12 = vector.broadcast %cst_7 : f32 to vector<2x128xf32>
    %13 = arith.mulf %12, %11 : vector<2x128xf32>
    %14 = math.tanh %13 : vector<2x128xf32>
    %cst_8 = arith.constant 1.000000e+00 : f32
    %15 = vector.broadcast %cst_8 : f32 to vector<2x128xf32>
    %16 = arith.addf %14, %15 : vector<2x128xf32>
    %cst_9 = arith.constant 5.000000e-01 : f32
    %17 = vector.broadcast %cst_9 : f32 to vector<2x128xf32>
    %18 = arith.mulf %17, %16 : vector<2x128xf32>
    %19 = vector.extract_strided_slice %10 {offsets = [0, 128], sizes = [2, 128], strides = [1, 1]} : vector<2x512xf32> to vector<2x128xf32>
    %cst_10 = arith.constant 5.000000e-01 : f32
    %20 = vector.broadcast %cst_10 : f32 to vector<2x128xf32>
    %21 = arith.mulf %20, %19 : vector<2x128xf32>
    %22 = math.tanh %21 : vector<2x128xf32>
    %cst_11 = arith.constant 1.000000e+00 : f32
    %23 = vector.broadcast %cst_11 : f32 to vector<2x128xf32>
    %24 = arith.addf %22, %23 : vector<2x128xf32>
    %cst_12 = arith.constant 5.000000e-01 : f32
    %25 = vector.broadcast %cst_12 : f32 to vector<2x128xf32>
    %26 = arith.mulf %25, %24 : vector<2x128xf32>
    %27 = vector.extract_strided_slice %10 {offsets = [0, 256], sizes = [2, 128], strides = [1, 1]} : vector<2x512xf32> to vector<2x128xf32>
    %28 = math.tanh %27 : vector<2x128xf32>
    %29 = vector.extract_strided_slice %10 {offsets = [0, 384], sizes = [2, 128], strides = [1, 1]} : vector<2x512xf32> to vector<2x128xf32>
    %cst_13 = arith.constant 5.000000e-01 : f32
    %30 = vector.broadcast %cst_13 : f32 to vector<2x128xf32>
    %31 = arith.mulf %30, %29 : vector<2x128xf32>
    %32 = math.tanh %31 : vector<2x128xf32>
    %cst_14 = arith.constant 1.000000e+00 : f32
    %33 = vector.broadcast %cst_14 : f32 to vector<2x128xf32>
    %34 = arith.addf %32, %33 : vector<2x128xf32>
    %cst_15 = arith.constant 5.000000e-01 : f32
    %35 = vector.broadcast %cst_15 : f32 to vector<2x128xf32>
    %36 = arith.mulf %35, %34 : vector<2x128xf32>
    %c0_16 = arith.constant 0 : index
    %c0_17 = arith.constant 0 : index
    %37 = vector.load %arg10[%c0_16, %c0_17] : memref<2x128xf32, #tpu.memory_space<vmem>>, vector<2x128xf32>
    %38 = arith.mulf %26, %37 : vector<2x128xf32>
    %39 = arith.mulf %18, %28 : vector<2x128xf32>
    %40 = arith.addf %38, %39 : vector<2x128xf32>
    %41 = math.tanh %40 : vector<2x128xf32>
    %42 = arith.mulf %36, %41 : vector<2x128xf32>
    %c0_18 = arith.constant 0 : index
    %c0_19 = arith.constant 0 : index
    %43 = vector.load %arg10[%c0_18, %c0_19] : memref<2x128xf32, #tpu.memory_space<vmem>>, vector<2x128xf32>
    tpu.vector_store %arg10[%c0_18, %c0_19], %40 {strides = array<i32>} : memref<2x128xf32, #tpu.memory_space<vmem>>, vector<2x128xf32>,
    %c0_20 = arith.constant 0 : index
    %c0_21 = arith.constant 0 : index
    %44 = vector.load %arg9[%c0_20, %c0_21] : memref<2x128xf32, #tpu.memory_space<vmem>>, vector<2x128xf32>
    tpu.vector_store %arg9[%c0_20, %c0_21], %42 {strides = array<i32>} : memref<2x128xf32, #tpu.memory_space<vmem>>, vector<2x128xf32>,
    %45 = arith.truncf %42 : vector<2x128xf32> to vector<2x128xbf16>
    %c0_22 = arith.constant 0 : index
    %c0_23 = arith.constant 0 : index
    %46 = vector.load %arg11[%c0_22, %c0_23] : memref<2x128xbf16, #tpu.memory_space<vmem>>, vector<2x128xbf16>
    tpu.vector_store %arg11[%c0_22, %c0_23], %45 {strides = array<i32>} : memref<2x128xbf16, #tpu.memory_space<vmem>>, vector<2x128xbf16>,
    %c0_24 = arith.constant 0 : index
    %c0_25 = arith.constant 0 : index
    %47 = vector.load %arg11[%c0_24, %c0_25] : memref<2x128xbf16, #tpu.memory_space<vmem>>, vector<2x128xbf16>
    %48 = arith.index_cast %c0_i32_1 : i32 to index
    %c0_26 = arith.constant 0 : index
    %c0_27 = arith.constant 0 : index
    %49 = vector.load %arg6[%48, %c0_26, %c0_27] : memref<8x2x128xbf16, #tpu.memory_space<vmem>>, vector<1x2x128xbf16>
    %50 = vector.shape_cast %49 : vector<1x2x128xbf16> to vector<2x128xbf16>
    %51 = vector.shape_cast %47 : vector<2x128xbf16> to vector<1x2x128xbf16>
    tpu.vector_store %arg6[%48, %c0_26, %c0_27], %51 {strides = array<i32>} : memref<8x2x128xbf16, #tpu.memory_space<vmem>>, vector<1x2x128xbf16>,
    %c1_i32 = arith.constant 1 : i32
    %52 = arith.index_cast %c1_i32 : i32 to index
    %c0_28 = arith.constant 0 : index
    %c0_29 = arith.constant 0 : index
    %53 = vector.load %arg2[%52, %c0_28, %c0_29] : memref<8x2x512xbf16, #tpu.memory_space<vmem>>, vector<1x2x512xbf16>
    %54 = vector.shape_cast %53 : vector<1x2x512xbf16> to vector<2x512xbf16>
    %55 = arith.extf %54 : vector<2x512xbf16> to vector<2x512xf32>
    %c0_30 = arith.constant 0 : index
    %c0_31 = arith.constant 0 : index
    %56 = vector.load %arg11[%c0_30, %c0_31] : memref<2x128xbf16, #tpu.memory_space<vmem>>, vector<2x128xbf16>
    %c0_32 = arith.constant 0 : index
    %c0_33 = arith.constant 0 : index
    %57 = vector.load %arg3[%c0_32, %c0_33] : memref<128x512xbf16, #tpu.memory_space<vmem>>, vector<128x512xbf16>
    %cst_34 = arith.constant dense<0.000000e+00> : vector<2x512xf32>
    %58 = tpu.matmul %56, %57, %cst_34 {dimension_numbers = #tpu.dot_dimension_numbers<[1], [0], [0], [1], [0, 0, 1, 1], [], []>} : vector<2x128xbf16>, vector<128x512xbf16>, vector<2x512xf32> -> vector<2x512xf32>
    %59 = arith.addf %55, %58 : vector<2x512xf32>
    %60 = vector.extract_strided_slice %59 {offsets = [0, 0], sizes = [2, 128], strides = [1, 1]} : vector<2x512xf32> to vector<2x128xf32>
    %cst_35 = arith.constant 5.000000e-01 : f32
    %61 = vector.broadcast %cst_35 : f32 to vector<2x128xf32>
    %62 = arith.mulf %61, %60 : vector<2x128xf32>
    %63 = math.tanh %62 : vector<2x128xf32>
    %cst_36 = arith.constant 1.000000e+00 : f32
    %64 = vector.broadcast %cst_36 : f32 to vector<2x128xf32>
    %65 = arith.addf %63, %64 : vector<2x128xf32>
    %cst_37 = arith.constant 5.000000e-01 : f32
    %66 = vector.broadcast %cst_37 : f32 to vector<2x128xf32>
    %67 = arith.mulf %66, %65 : vector<2x128xf32>
    %68 = vector.extract_strided_slice %59 {offsets = [0, 128], sizes = [2, 128], strides = [1, 1]} : vector<2x512xf32> to vector<2x128xf32>
    %cst_38 = arith.constant 5.000000e-01 : f32
    %69 = vector.broadcast %cst_38 : f32 to vector<2x128xf32>
    %70 = arith.mulf %69, %68 : vector<2x128xf32>
    %71 = math.tanh %70 : vector<2x128xf32>
    %cst_39 = arith.constant 1.000000e+00 : f32
    %72 = vector.broadcast %cst_39 : f32 to vector<2x128xf32>
    %73 = arith.addf %71, %72 : vector<2x128xf32>
    %cst_40 = arith.constant 5.000000e-01 : f32
    %74 = vector.broadcast %cst_40 : f32 to vector<2x128xf32>
    %75 = arith.mulf %74, %73 : vector<2x128xf32>
    %76 = vector.extract_strided_slice %59 {offsets = [0, 256], sizes = [2, 128], strides = [1, 1]} : vector<2x512xf32> to vector<2x128xf32>
    %77 = math.tanh %76 : vector<2x128xf32>
    %78 = vector.extract_strided_slice %59 {offsets = [0, 384], sizes = [2, 128], strides = [1, 1]} : vector<2x512xf32> to vector<2x128xf32>
    %cst_41 = arith.constant 5.000000e-01 : f32
    %79 = vector.broadcast %cst_41 : f32 to vector<2x128xf32>
    %80 = arith.mulf %79, %78 : vector<2x128xf32>
    %81 = math.tanh %80 : vector<2x128xf32>
    %cst_42 = arith.constant 1.000000e+00 : f32
    %82 = vector.broadcast %cst_42 : f32 to vector<2x128xf32>
    %83 = arith.addf %81, %82 : vector<2x128xf32>
    %cst_43 = arith.constant 5.000000e-01 : f32
    %84 = vector.broadcast %cst_43 : f32 to vector<2x128xf32>
    %85 = arith.mulf %84, %83 : vector<2x128xf32>
    %c0_44 = arith.constant 0 : index
    %c0_45 = arith.constant 0 : index
    %86 = vector.load %arg10[%c0_44, %c0_45] : memref<2x128xf32, #tpu.memory_space<vmem>>, vector<2x128xf32>
    %87 = arith.mulf %75, %86 : vector<2x128xf32>
    %88 = arith.mulf %67, %77 : vector<2x128xf32>
    %89 = arith.addf %87, %88 : vector<2x128xf32>
    %90 = math.tanh %89 : vector<2x128xf32>
    %91 = arith.mulf %85, %90 : vector<2x128xf32>
    %c0_46 = arith.constant 0 : index
    %c0_47 = arith.constant 0 : index
    %92 = vector.load %arg10[%c0_46, %c0_47] : memref<2x128xf32, #tpu.memory_space<vmem>>, vector<2x128xf32>
    tpu.vector_store %arg10[%c0_46, %c0_47], %89 {strides = array<i32>} : memref<2x128xf32, #tpu.memory_space<vmem>>, vector<2x128xf32>,
    %c0_48 = arith.constant 0 : index
    %c0_49 = arith.constant 0 : index
    %93 = vector.load %arg9[%c0_48, %c0_49] : memref<2x128xf32, #tpu.memory_space<vmem>>, vector<2x128xf32>
    tpu.vector_store %arg9[%c0_48, %c0_49], %91 {strides = array<i32>} : memref<2x128xf32, #tpu.memory_space<vmem>>, vector<2x128xf32>,
    %94 = arith.truncf %91 : vector<2x128xf32> to vector<2x128xbf16>
    %c0_50 = arith.constant 0 : index
    %c0_51 = arith.constant 0 : index
    %95 = vector.load %arg11[%c0_50, %c0_51] : memref<2x128xbf16, #tpu.memory_space<vmem>>, vector<2x128xbf16>
    tpu.vector_store %arg11[%c0_50, %c0_51], %94 {strides = array<i32>} : memref<2x128xbf16, #tpu.memory_space<vmem>>, vector<2x128xbf16>,
    %c0_52 = arith.constant 0 : index
    %c0_53 = arith.constant 0 : index
    %96 = vector.load %arg11[%c0_52, %c0_53] : memref<2x128xbf16, #tpu.memory_space<vmem>>, vector<2x128xbf16>
    %97 = arith.index_cast %c1_i32 : i32 to index
    %c0_54 = arith.constant 0 : index
    %c0_55 = arith.constant 0 : index
    %98 = vector.load %arg6[%97, %c0_54, %c0_55] : memref<8x2x128xbf16, #tpu.memory_space<vmem>>, vector<1x2x128xbf16>
    %99 = vector.shape_cast %98 : vector<1x2x128xbf16> to vector<2x128xbf16>
    %100 = vector.shape_cast %96 : vector<2x128xbf16> to vector<1x2x128xbf16>
    tpu.vector_store %arg6[%97, %c0_54, %c0_55], %100 {strides = array<i32>} : memref<8x2x128xbf16, #tpu.memory_space<vmem>>, vector<1x2x128xbf16>,
    %c2_i32 = arith.constant 2 : i32
    %101 = arith.index_cast %c2_i32 : i32 to index
    %c0_56 = arith.constant 0 : index
    %c0_57 = arith.constant 0 : index
    %102 = vector.load %arg2[%101, %c0_56, %c0_57] : memref<8x2x512xbf16, #tpu.memory_space<vmem>>, vector<1x2x512xbf16>
    %103 = vector.shape_cast %102 : vector<1x2x512xbf16> to vector<2x512xbf16>
    %104 = arith.extf %103 : vector<2x512xbf16> to vector<2x512xf32>
    %c0_58 = arith.constant 0 : index
    %c0_59 = arith.constant 0 : index
    %105 = vector.load %arg11[%c0_58, %c0_59] : memref<2x128xbf16, #tpu.memory_space<vmem>>, vector<2x128xbf16>
    %c0_60 = arith.constant 0 : index
    %c0_61 = arith.constant 0 : index
    %106 = vector.load %arg3[%c0_60, %c0_61] : memref<128x512xbf16, #tpu.memory_space<vmem>>, vector<128x512xbf16>
    %cst_62 = arith.constant dense<0.000000e+00> : vector<2x512xf32>
    %107 = tpu.matmul %105, %106, %cst_62 {dimension_numbers = #tpu.dot_dimension_numbers<[1], [0], [0], [1], [0, 0, 1, 1], [], []>} : vector<2x128xbf16>, vector<128x512xbf16>, vector<2x512xf32> -> vector<2x512xf32>
    %108 = arith.addf %104, %107 : vector<2x512xf32>
    %109 = vector.extract_strided_slice %108 {offsets = [0, 0], sizes = [2, 128], strides = [1, 1]} : vector<2x512xf32> to vector<2x128xf32>
    %cst_63 = arith.constant 5.000000e-01 : f32
    %110 = vector.broadcast %cst_63 : f32 to vector<2x128xf32>
    %111 = arith.mulf %110, %109 : vector<2x128xf32>
    %112 = math.tanh %111 : vector<2x128xf32>
    %cst_64 = arith.constant 1.000000e+00 : f32
    %113 = vector.broadcast %cst_64 : f32 to vector<2x128xf32>
    %114 = arith.addf %112, %113 : vector<2x128xf32>
    %cst_65 = arith.constant 5.000000e-01 : f32
    %115 = vector.broadcast %cst_65 : f32 to vector<2x128xf32>
    %116 = arith.mulf %115, %114 : vector<2x128xf32>
    %117 = vector.extract_strided_slice %108 {offsets = [0, 128], sizes = [2, 128], strides = [1, 1]} : vector<2x512xf32> to vector<2x128xf32>
    %cst_66 = arith.constant 5.000000e-01 : f32
    %118 = vector.broadcast %cst_66 : f32 to vector<2x128xf32>
    %119 = arith.mulf %118, %117 : vector<2x128xf32>
    %120 = math.tanh %119 : vector<2x128xf32>
    %cst_67 = arith.constant 1.000000e+00 : f32
    %121 = vector.broadcast %cst_67 : f32 to vector<2x128xf32>
    %122 = arith.addf %120, %121 : vector<2x128xf32>
    %cst_68 = arith.constant 5.000000e-01 : f32
    %123 = vector.broadcast %cst_68 : f32 to vector<2x128xf32>
    %124 = arith.mulf %123, %122 : vector<2x128xf32>
    %125 = vector.extract_strided_slice %108 {offsets = [0, 256], sizes = [2, 128], strides = [1, 1]} : vector<2x512xf32> to vector<2x128xf32>
    %126 = math.tanh %125 : vector<2x128xf32>
    %127 = vector.extract_strided_slice %108 {offsets = [0, 384], sizes = [2, 128], strides = [1, 1]} : vector<2x512xf32> to vector<2x128xf32>
    %cst_69 = arith.constant 5.000000e-01 : f32
    %128 = vector.broadcast %cst_69 : f32 to vector<2x128xf32>
    %129 = arith.mulf %128, %127 : vector<2x128xf32>
    %130 = math.tanh %129 : vector<2x128xf32>
    %cst_70 = arith.constant 1.000000e+00 : f32
    %131 = vector.broadcast %cst_70 : f32 to vector<2x128xf32>
    %132 = arith.addf %130, %131 : vector<2x128xf32>
    %cst_71 = arith.constant 5.000000e-01 : f32
    %133 = vector.broadcast %cst_71 : f32 to vector<2x128xf32>
    %134 = arith.mulf %133, %132 : vector<2x128xf32>
    %c0_72 = arith.constant 0 : index
    %c0_73 = arith.constant 0 : index
    %135 = vector.load %arg10[%c0_72, %c0_73] : memref<2x128xf32, #tpu.memory_space<vmem>>, vector<2x128xf32>
    %136 = arith.mulf %124, %135 : vector<2x128xf32>
    %137 = arith.mulf %116, %126 : vector<2x128xf32>
    %138 = arith.addf %136, %137 : vector<2x128xf32>
    %139 = math.tanh %138 : vector<2x128xf32>
    %140 = arith.mulf %134, %139 : vector<2x128xf32>
    %c0_74 = arith.constant 0 : index
    %c0_75 = arith.constant 0 : index
    %141 = vector.load %arg10[%c0_74, %c0_75] : memref<2x128xf32, #tpu.memory_space<vmem>>, vector<2x128xf32>
    tpu.vector_store %arg10[%c0_74, %c0_75], %138 {strides = array<i32>} : memref<2x128xf32, #tpu.memory_space<vmem>>, vector<2x128xf32>,
    %c0_76 = arith.constant 0 : index
    %c0_77 = arith.constant 0 : index
    %142 = vector.load %arg9[%c0_76, %c0_77] : memref<2x128xf32, #tpu.memory_space<vmem>>, vector<2x128xf32>
    tpu.vector_store %arg9[%c0_76, %c0_77], %140 {strides = array<i32>} : memref<2x128xf32, #tpu.memory_space<vmem>>, vector<2x128xf32>,
    %143 = arith.truncf %140 : vector<2x128xf32> to vector<2x128xbf16>
    %c0_78 = arith.constant 0 : index
    %c0_79 = arith.constant 0 : index
    %144 = vector.load %arg11[%c0_78, %c0_79] : memref<2x128xbf16, #tpu.memory_space<vmem>>, vector<2x128xbf16>
    tpu.vector_store %arg11[%c0_78, %c0_79], %143 {strides = array<i32>} : memref<2x128xbf16, #tpu.memory_space<vmem>>, vector<2x128xbf16>,
    %c0_80 = arith.constant 0 : index
    %c0_81 = arith.constant 0 : index
    %145 = vector.load %arg11[%c0_80, %c0_81] : memref<2x128xbf16, #tpu.memory_space<vmem>>, vector<2x128xbf16>
    %146 = arith.index_cast %c2_i32 : i32 to index
    %c0_82 = arith.constant 0 : index
    %c0_83 = arith.constant 0 : index
    %147 = vector.load %arg6[%146, %c0_82, %c0_83] : memref<8x2x128xbf16, #tpu.memory_space<vmem>>, vector<1x2x128xbf16>
    %148 = vector.shape_cast %147 : vector<1x2x128xbf16> to vector<2x128xbf16>
    %149 = vector.shape_cast %145 : vector<2x128xbf16> to vector<1x2x128xbf16>
    tpu.vector_store %arg6[%146, %c0_82, %c0_83], %149 {strides = array<i32>} : memref<8x2x128xbf16, #tpu.memory_space<vmem>>, vector<1x2x128xbf16>,
    %c3_i32 = arith.constant 3 : i32
    %150 = arith.index_cast %c3_i32 : i32 to index
    %c0_84 = arith.constant 0 : index
    %c0_85 = arith.constant 0 : index
    %151 = vector.load %arg2[%150, %c0_84, %c0_85] : memref<8x2x512xbf16, #tpu.memory_space<vmem>>, vector<1x2x512xbf16>
    %152 = vector.shape_cast %151 : vector<1x2x512xbf16> to vector<2x512xbf16>
    %153 = arith.extf %152 : vector<2x512xbf16> to vector<2x512xf32>
    %c0_86 = arith.constant 0 : index
    %c0_87 = arith.constant 0 : index
    %154 = vector.load %arg11[%c0_86, %c0_87] : memref<2x128xbf16, #tpu.memory_space<vmem>>, vector<2x128xbf16>
    %c0_88 = arith.constant 0 : index
    %c0_89 = arith.constant 0 : index
    %155 = vector.load %arg3[%c0_88, %c0_89] : memref<128x512xbf16, #tpu.memory_space<vmem>>, vector<128x512xbf16>
    %cst_90 = arith.constant dense<0.000000e+00> : vector<2x512xf32>
    %156 = tpu.matmul %154, %155, %cst_90 {dimension_numbers = #tpu.dot_dimension_numbers<[1], [0], [0], [1], [0, 0, 1, 1], [], []>} : vector<2x128xbf16>, vector<128x512xbf16>, vector<2x512xf32> -> vector<2x512xf32>
    %157 = arith.addf %153, %156 : vector<2x512xf32>
    %158 = vector.extract_strided_slice %157 {offsets = [0, 0], sizes = [2, 128], strides = [1, 1]} : vector<2x512xf32> to vector<2x128xf32>
    %cst_91 = arith.constant 5.000000e-01 : f32
    %159 = vector.broadcast %cst_91 : f32 to vector<2x128xf32>
    %160 = arith.mulf %159, %158 : vector<2x128xf32>
    %161 = math.tanh %160 : vector<2x128xf32>
    %cst_92 = arith.constant 1.000000e+00 : f32
    %162 = vector.broadcast %cst_92 : f32 to vector<2x128xf32>
    %163 = arith.addf %161, %162 : vector<2x128xf32>
    %cst_93 = arith.constant 5.000000e-01 : f32
    %164 = vector.broadcast %cst_93 : f32 to vector<2x128xf32>
    %165 = arith.mulf %164, %163 : vector<2x128xf32>
    %166 = vector.extract_strided_slice %157 {offsets = [0, 128], sizes = [2, 128], strides = [1, 1]} : vector<2x512xf32> to vector<2x128xf32>
    %cst_94 = arith.constant 5.000000e-01 : f32
    %167 = vector.broadcast %cst_94 : f32 to vector<2x128xf32>
    %168 = arith.mulf %167, %166 : vector<2x128xf32>
    %169 = math.tanh %168 : vector<2x128xf32>
    %cst_95 = arith.constant 1.000000e+00 : f32
    %170 = vector.broadcast %cst_95 : f32 to vector<2x128xf32>
    %171 = arith.addf %169, %170 : vector<2x128xf32>
    %cst_96 = arith.constant 5.000000e-01 : f32
    %172 = vector.broadcast %cst_96 : f32 to vector<2x128xf32>
    %173 = arith.mulf %172, %171 : vector<2x128xf32>
    %174 = vector.extract_strided_slice %157 {offsets = [0, 256], sizes = [2, 128], strides = [1, 1]} : vector<2x512xf32> to vector<2x128xf32>
    %175 = math.tanh %174 : vector<2x128xf32>
    %176 = vector.extract_strided_slice %157 {offsets = [0, 384], sizes = [2, 128], strides = [1, 1]} : vector<2x512xf32> to vector<2x128xf32>
    %cst_97 = arith.constant 5.000000e-01 : f32
    %177 = vector.broadcast %cst_97 : f32 to vector<2x128xf32>
    %178 = arith.mulf %177, %176 : vector<2x128xf32>
    %179 = math.tanh %178 : vector<2x128xf32>
    %cst_98 = arith.constant 1.000000e+00 : f32
    %180 = vector.broadcast %cst_98 : f32 to vector<2x128xf32>
    %181 = arith.addf %179, %180 : vector<2x128xf32>
    %cst_99 = arith.constant 5.000000e-01 : f32
    %182 = vector.broadcast %cst_99 : f32 to vector<2x128xf32>
    %183 = arith.mulf %182, %181 : vector<2x128xf32>
    %c0_100 = arith.constant 0 : index
    %c0_101 = arith.constant 0 : index
    %184 = vector.load %arg10[%c0_100, %c0_101] : memref<2x128xf32, #tpu.memory_space<vmem>>, vector<2x128xf32>
    %185 = arith.mulf %173, %184 : vector<2x128xf32>
    %186 = arith.mulf %165, %175 : vector<2x128xf32>
    %187 = arith.addf %185, %186 : vector<2x128xf32>
    %188 = math.tanh %187 : vector<2x128xf32>
    %189 = arith.mulf %183, %188 : vector<2x128xf32>
    %c0_102 = arith.constant 0 : index
    %c0_103 = arith.constant 0 : index
    %190 = vector.load %arg10[%c0_102, %c0_103] : memref<2x128xf32, #tpu.memory_space<vmem>>, vector<2x128xf32>
    tpu.vector_store %arg10[%c0_102, %c0_103], %187 {strides = array<i32>} : memref<2x128xf32, #tpu.memory_space<vmem>>, vector<2x128xf32>,
    %c0_104 = arith.constant 0 : index
    %c0_105 = arith.constant 0 : index
    %191 = vector.load %arg9[%c0_104, %c0_105] : memref<2x128xf32, #tpu.memory_space<vmem>>, vector<2x128xf32>
    tpu.vector_store %arg9[%c0_104, %c0_105], %189 {strides = array<i32>} : memref<2x128xf32, #tpu.memory_space<vmem>>, vector<2x128xf32>,
    %192 = arith.truncf %189 : vector<2x128xf32> to vector<2x128xbf16>
    %c0_106 = arith.constant 0 : index
    %c0_107 = arith.constant 0 : index
    %193 = vector.load %arg11[%c0_106, %c0_107] : memref<2x128xbf16, #tpu.memory_space<vmem>>, vector<2x128xbf16>
    tpu.vector_store %arg11[%c0_106, %c0_107], %192 {strides = array<i32>} : memref<2x128xbf16, #tpu.memory_space<vmem>>, vector<2x128xbf16>,
    %c0_108 = arith.constant 0 : index
    %c0_109 = arith.constant 0 : index
    %194 = vector.load %arg11[%c0_108, %c0_109] : memref<2x128xbf16, #tpu.memory_space<vmem>>, vector<2x128xbf16>
    %195 = arith.index_cast %c3_i32 : i32 to index
    %c0_110 = arith.constant 0 : index
    %c0_111 = arith.constant 0 : index
    %196 = vector.load %arg6[%195, %c0_110, %c0_111] : memref<8x2x128xbf16, #tpu.memory_space<vmem>>, vector<1x2x128xbf16>
    %197 = vector.shape_cast %196 : vector<1x2x128xbf16> to vector<2x128xbf16>
    %198 = vector.shape_cast %194 : vector<2x128xbf16> to vector<1x2x128xbf16>
    tpu.vector_store %arg6[%195, %c0_110, %c0_111], %198 {strides = array<i32>} : memref<8x2x128xbf16, #tpu.memory_space<vmem>>, vector<1x2x128xbf16>,
    %c4_i32 = arith.constant 4 : i32
    %199 = arith.index_cast %c4_i32 : i32 to index
    %c0_112 = arith.constant 0 : index
    %c0_113 = arith.constant 0 : index
    %200 = vector.load %arg2[%199, %c0_112, %c0_113] : memref<8x2x512xbf16, #tpu.memory_space<vmem>>, vector<1x2x512xbf16>
    %201 = vector.shape_cast %200 : vector<1x2x512xbf16> to vector<2x512xbf16>
    %202 = arith.extf %201 : vector<2x512xbf16> to vector<2x512xf32>
    %c0_114 = arith.constant 0 : index
    %c0_115 = arith.constant 0 : index
    %203 = vector.load %arg11[%c0_114, %c0_115] : memref<2x128xbf16, #tpu.memory_space<vmem>>, vector<2x128xbf16>
    %c0_116 = arith.constant 0 : index
    %c0_117 = arith.constant 0 : index
    %204 = vector.load %arg3[%c0_116, %c0_117] : memref<128x512xbf16, #tpu.memory_space<vmem>>, vector<128x512xbf16>
    %cst_118 = arith.constant dense<0.000000e+00> : vector<2x512xf32>
    %205 = tpu.matmul %203, %204, %cst_118 {dimension_numbers = #tpu.dot_dimension_numbers<[1], [0], [0], [1], [0, 0, 1, 1], [], []>} : vector<2x128xbf16>, vector<128x512xbf16>, vector<2x512xf32> -> vector<2x512xf32>
    %206 = arith.addf %202, %205 : vector<2x512xf32>
    %207 = vector.extract_strided_slice %206 {offsets = [0, 0], sizes = [2, 128], strides = [1, 1]} : vector<2x512xf32> to vector<2x128xf32>
    %cst_119 = arith.constant 5.000000e-01 : f32
    %208 = vector.broadcast %cst_119 : f32 to vector<2x128xf32>
    %209 = arith.mulf %208, %207 : vector<2x128xf32>
    %210 = math.tanh %209 : vector<2x128xf32>
    %cst_120 = arith.constant 1.000000e+00 : f32
    %211 = vector.broadcast %cst_120 : f32 to vector<2x128xf32>
    %212 = arith.addf %210, %211 : vector<2x128xf32>
    %cst_121 = arith.constant 5.000000e-01 : f32
    %213 = vector.broadcast %cst_121 : f32 to vector<2x128xf32>
    %214 = arith.mulf %213, %212 : vector<2x128xf32>
    %215 = vector.extract_strided_slice %206 {offsets = [0, 128], sizes = [2, 128], strides = [1, 1]} : vector<2x512xf32> to vector<2x128xf32>
    %cst_122 = arith.constant 5.000000e-01 : f32
    %216 = vector.broadcast %cst_122 : f32 to vector<2x128xf32>
    %217 = arith.mulf %216, %215 : vector<2x128xf32>
    %218 = math.tanh %217 : vector<2x128xf32>
    %cst_123 = arith.constant 1.000000e+00 : f32
    %219 = vector.broadcast %cst_123 : f32 to vector<2x128xf32>
    %220 = arith.addf %218, %219 : vector<2x128xf32>
    %cst_124 = arith.constant 5.000000e-01 : f32
    %221 = vector.broadcast %cst_124 : f32 to vector<2x128xf32>
    %222 = arith.mulf %221, %220 : vector<2x128xf32>
    %223 = vector.extract_strided_slice %206 {offsets = [0, 256], sizes = [2, 128], strides = [1, 1]} : vector<2x512xf32> to vector<2x128xf32>
    %224 = math.tanh %223 : vector<2x128xf32>
    %225 = vector.extract_strided_slice %206 {offsets = [0, 384], sizes = [2, 128], strides = [1, 1]} : vector<2x512xf32> to vector<2x128xf32>
    %cst_125 = arith.constant 5.000000e-01 : f32
    %226 = vector.broadcast %cst_125 : f32 to vector<2x128xf32>
    %227 = arith.mulf %226, %225 : vector<2x128xf32>
    %228 = math.tanh %227 : vector<2x128xf32>
    %cst_126 = arith.constant 1.000000e+00 : f32
    %229 = vector.broadcast %cst_126 : f32 to vector<2x128xf32>
    %230 = arith.addf %228, %229 : vector<2x128xf32>
    %cst_127 = arith.constant 5.000000e-01 : f32
    %231 = vector.broadcast %cst_127 : f32 to vector<2x128xf32>
    %232 = arith.mulf %231, %230 : vector<2x128xf32>
    %c0_128 = arith.constant 0 : index
    %c0_129 = arith.constant 0 : index
    %233 = vector.load %arg10[%c0_128, %c0_129] : memref<2x128xf32, #tpu.memory_space<vmem>>, vector<2x128xf32>
    %234 = arith.mulf %222, %233 : vector<2x128xf32>
    %235 = arith.mulf %214, %224 : vector<2x128xf32>
    %236 = arith.addf %234, %235 : vector<2x128xf32>
    %237 = math.tanh %236 : vector<2x128xf32>
    %238 = arith.mulf %232, %237 : vector<2x128xf32>
    %c0_130 = arith.constant 0 : index
    %c0_131 = arith.constant 0 : index
    %239 = vector.load %arg10[%c0_130, %c0_131] : memref<2x128xf32, #tpu.memory_space<vmem>>, vector<2x128xf32>
    tpu.vector_store %arg10[%c0_130, %c0_131], %236 {strides = array<i32>} : memref<2x128xf32, #tpu.memory_space<vmem>>, vector<2x128xf32>,
    %c0_132 = arith.constant 0 : index
    %c0_133 = arith.constant 0 : index
    %240 = vector.load %arg9[%c0_132, %c0_133] : memref<2x128xf32, #tpu.memory_space<vmem>>, vector<2x128xf32>
    tpu.vector_store %arg9[%c0_132, %c0_133], %238 {strides = array<i32>} : memref<2x128xf32, #tpu.memory_space<vmem>>, vector<2x128xf32>,
    %241 = arith.truncf %238 : vector<2x128xf32> to vector<2x128xbf16>
    %c0_134 = arith.constant 0 : index
    %c0_135 = arith.constant 0 : index
    %242 = vector.load %arg11[%c0_134, %c0_135] : memref<2x128xbf16, #tpu.memory_space<vmem>>, vector<2x128xbf16>
    tpu.vector_store %arg11[%c0_134, %c0_135], %241 {strides = array<i32>} : memref<2x128xbf16, #tpu.memory_space<vmem>>, vector<2x128xbf16>,
    %c0_136 = arith.constant 0 : index
    %c0_137 = arith.constant 0 : index
    %243 = vector.load %arg11[%c0_136, %c0_137] : memref<2x128xbf16, #tpu.memory_space<vmem>>, vector<2x128xbf16>
    %244 = arith.index_cast %c4_i32 : i32 to index
    %c0_138 = arith.constant 0 : index
    %c0_139 = arith.constant 0 : index
    %245 = vector.load %arg6[%244, %c0_138, %c0_139] : memref<8x2x128xbf16, #tpu.memory_space<vmem>>, vector<1x2x128xbf16>
    %246 = vector.shape_cast %245 : vector<1x2x128xbf16> to vector<2x128xbf16>
    %247 = vector.shape_cast %243 : vector<2x128xbf16> to vector<1x2x128xbf16>
    tpu.vector_store %arg6[%244, %c0_138, %c0_139], %247 {strides = array<i32>} : memref<8x2x128xbf16, #tpu.memory_space<vmem>>, vector<1x2x128xbf16>,
    %c5_i32 = arith.constant 5 : i32
    %248 = arith.index_cast %c5_i32 : i32 to index
    %c0_140 = arith.constant 0 : index
    %c0_141 = arith.constant 0 : index
    %249 = vector.load %arg2[%248, %c0_140, %c0_141] : memref<8x2x512xbf16, #tpu.memory_space<vmem>>, vector<1x2x512xbf16>
    %250 = vector.shape_cast %249 : vector<1x2x512xbf16> to vector<2x512xbf16>
    %251 = arith.extf %250 : vector<2x512xbf16> to vector<2x512xf32>
    %c0_142 = arith.constant 0 : index
    %c0_143 = arith.constant 0 : index
    %252 = vector.load %arg11[%c0_142, %c0_143] : memref<2x128xbf16, #tpu.memory_space<vmem>>, vector<2x128xbf16>
    %c0_144 = arith.constant 0 : index
    %c0_145 = arith.constant 0 : index
    %253 = vector.load %arg3[%c0_144, %c0_145] : memref<128x512xbf16, #tpu.memory_space<vmem>>, vector<128x512xbf16>
    %cst_146 = arith.constant dense<0.000000e+00> : vector<2x512xf32>
    %254 = tpu.matmul %252, %253, %cst_146 {dimension_numbers = #tpu.dot_dimension_numbers<[1], [0], [0], [1], [0, 0, 1, 1], [], []>} : vector<2x128xbf16>, vector<128x512xbf16>, vector<2x512xf32> -> vector<2x512xf32>
    %255 = arith.addf %251, %254 : vector<2x512xf32>
    %256 = vector.extract_strided_slice %255 {offsets = [0, 0], sizes = [2, 128], strides = [1, 1]} : vector<2x512xf32> to vector<2x128xf32>
    %cst_147 = arith.constant 5.000000e-01 : f32
    %257 = vector.broadcast %cst_147 : f32 to vector<2x128xf32>
    %258 = arith.mulf %257, %256 : vector<2x128xf32>
    %259 = math.tanh %258 : vector<2x128xf32>
    %cst_148 = arith.constant 1.000000e+00 : f32
    %260 = vector.broadcast %cst_148 : f32 to vector<2x128xf32>
    %261 = arith.addf %259, %260 : vector<2x128xf32>
    %cst_149 = arith.constant 5.000000e-01 : f32
    %262 = vector.broadcast %cst_149 : f32 to vector<2x128xf32>
    %263 = arith.mulf %262, %261 : vector<2x128xf32>
    %264 = vector.extract_strided_slice %255 {offsets = [0, 128], sizes = [2, 128], strides = [1, 1]} : vector<2x512xf32> to vector<2x128xf32>
    %cst_150 = arith.constant 5.000000e-01 : f32
    %265 = vector.broadcast %cst_150 : f32 to vector<2x128xf32>
    %266 = arith.mulf %265, %264 : vector<2x128xf32>
    %267 = math.tanh %266 : vector<2x128xf32>
    %cst_151 = arith.constant 1.000000e+00 : f32
    %268 = vector.broadcast %cst_151 : f32 to vector<2x128xf32>
    %269 = arith.addf %267, %268 : vector<2x128xf32>
    %cst_152 = arith.constant 5.000000e-01 : f32
    %270 = vector.broadcast %cst_152 : f32 to vector<2x128xf32>
    %271 = arith.mulf %270, %269 : vector<2x128xf32>
    %272 = vector.extract_strided_slice %255 {offsets = [0, 256], sizes = [2, 128], strides = [1, 1]} : vector<2x512xf32> to vector<2x128xf32>
    %273 = math.tanh %272 : vector<2x128xf32>
    %274 = vector.extract_strided_slice %255 {offsets = [0, 384], sizes = [2, 128], strides = [1, 1]} : vector<2x512xf32> to vector<2x128xf32>
    %cst_153 = arith.constant 5.000000e-01 : f32
    %275 = vector.broadcast %cst_153 : f32 to vector<2x128xf32>
    %276 = arith.mulf %275, %274 : vector<2x128xf32>
    %277 = math.tanh %276 : vector<2x128xf32>
    %cst_154 = arith.constant 1.000000e+00 : f32
    %278 = vector.broadcast %cst_154 : f32 to vector<2x128xf32>
    %279 = arith.addf %277, %278 : vector<2x128xf32>
    %cst_155 = arith.constant 5.000000e-01 : f32
    %280 = vector.broadcast %cst_155 : f32 to vector<2x128xf32>
    %281 = arith.mulf %280, %279 : vector<2x128xf32>
    %c0_156 = arith.constant 0 : index
    %c0_157 = arith.constant 0 : index
    %282 = vector.load %arg10[%c0_156, %c0_157] : memref<2x128xf32, #tpu.memory_space<vmem>>, vector<2x128xf32>
    %283 = arith.mulf %271, %282 : vector<2x128xf32>
    %284 = arith.mulf %263, %273 : vector<2x128xf32>
    %285 = arith.addf %283, %284 : vector<2x128xf32>
    %286 = math.tanh %285 : vector<2x128xf32>
    %287 = arith.mulf %281, %286 : vector<2x128xf32>
    %c0_158 = arith.constant 0 : index
    %c0_159 = arith.constant 0 : index
    %288 = vector.load %arg10[%c0_158, %c0_159] : memref<2x128xf32, #tpu.memory_space<vmem>>, vector<2x128xf32>
    tpu.vector_store %arg10[%c0_158, %c0_159], %285 {strides = array<i32>} : memref<2x128xf32, #tpu.memory_space<vmem>>, vector<2x128xf32>,
    %c0_160 = arith.constant 0 : index
    %c0_161 = arith.constant 0 : index
    %289 = vector.load %arg9[%c0_160, %c0_161] : memref<2x128xf32, #tpu.memory_space<vmem>>, vector<2x128xf32>
    tpu.vector_store %arg9[%c0_160, %c0_161], %287 {strides = array<i32>} : memref<2x128xf32, #tpu.memory_space<vmem>>, vector<2x128xf32>,
    %290 = arith.truncf %287 : vector<2x128xf32> to vector<2x128xbf16>
    %c0_162 = arith.constant 0 : index
    %c0_163 = arith.constant 0 : index
    %291 = vector.load %arg11[%c0_162, %c0_163] : memref<2x128xbf16, #tpu.memory_space<vmem>>, vector<2x128xbf16>
    tpu.vector_store %arg11[%c0_162, %c0_163], %290 {strides = array<i32>} : memref<2x128xbf16, #tpu.memory_space<vmem>>, vector<2x128xbf16>,
    %c0_164 = arith.constant 0 : index
    %c0_165 = arith.constant 0 : index
    %292 = vector.load %arg11[%c0_164, %c0_165] : memref<2x128xbf16, #tpu.memory_space<vmem>>, vector<2x128xbf16>
    %293 = arith.index_cast %c5_i32 : i32 to index
    %c0_166 = arith.constant 0 : index
    %c0_167 = arith.constant 0 : index
    %294 = vector.load %arg6[%293, %c0_166, %c0_167] : memref<8x2x128xbf16, #tpu.memory_space<vmem>>, vector<1x2x128xbf16>
    %295 = vector.shape_cast %294 : vector<1x2x128xbf16> to vector<2x128xbf16>
    %296 = vector.shape_cast %292 : vector<2x128xbf16> to vector<1x2x128xbf16>
    tpu.vector_store %arg6[%293, %c0_166, %c0_167], %296 {strides = array<i32>} : memref<8x2x128xbf16, #tpu.memory_space<vmem>>, vector<1x2x128xbf16>,
    %c6_i32 = arith.constant 6 : i32
    %297 = arith.index_cast %c6_i32 : i32 to index
    %c0_168 = arith.constant 0 : index
    %c0_169 = arith.constant 0 : index
    %298 = vector.load %arg2[%297, %c0_168, %c0_169] : memref<8x2x512xbf16, #tpu.memory_space<vmem>>, vector<1x2x512xbf16>
    %299 = vector.shape_cast %298 : vector<1x2x512xbf16> to vector<2x512xbf16>
    %300 = arith.extf %299 : vector<2x512xbf16> to vector<2x512xf32>
    %c0_170 = arith.constant 0 : index
    %c0_171 = arith.constant 0 : index
    %301 = vector.load %arg11[%c0_170, %c0_171] : memref<2x128xbf16, #tpu.memory_space<vmem>>, vector<2x128xbf16>
    %c0_172 = arith.constant 0 : index
    %c0_173 = arith.constant 0 : index
    %302 = vector.load %arg3[%c0_172, %c0_173] : memref<128x512xbf16, #tpu.memory_space<vmem>>, vector<128x512xbf16>
    %cst_174 = arith.constant dense<0.000000e+00> : vector<2x512xf32>
    %303 = tpu.matmul %301, %302, %cst_174 {dimension_numbers = #tpu.dot_dimension_numbers<[1], [0], [0], [1], [0, 0, 1, 1], [], []>} : vector<2x128xbf16>, vector<128x512xbf16>, vector<2x512xf32> -> vector<2x512xf32>
    %304 = arith.addf %300, %303 : vector<2x512xf32>
    %305 = vector.extract_strided_slice %304 {offsets = [0, 0], sizes = [2, 128], strides = [1, 1]} : vector<2x512xf32> to vector<2x128xf32>
    %cst_175 = arith.constant 5.000000e-01 : f32
    %306 = vector.broadcast %cst_175 : f32 to vector<2x128xf32>
    %307 = arith.mulf %306, %305 : vector<2x128xf32>
    %308 = math.tanh %307 : vector<2x128xf32>
    %cst_176 = arith.constant 1.000000e+00 : f32
    %309 = vector.broadcast %cst_176 : f32 to vector<2x128xf32>
    %310 = arith.addf %308, %309 : vector<2x128xf32>
    %cst_177 = arith.constant 5.000000e-01 : f32
    %311 = vector.broadcast %cst_177 : f32 to vector<2x128xf32>
    %312 = arith.mulf %311, %310 : vector<2x128xf32>
    %313 = vector.extract_strided_slice %304 {offsets = [0, 128], sizes = [2, 128], strides = [1, 1]} : vector<2x512xf32> to vector<2x128xf32>
    %cst_178 = arith.constant 5.000000e-01 : f32
    %314 = vector.broadcast %cst_178 : f32 to vector<2x128xf32>
    %315 = arith.mulf %314, %313 : vector<2x128xf32>
    %316 = math.tanh %315 : vector<2x128xf32>
    %cst_179 = arith.constant 1.000000e+00 : f32
    %317 = vector.broadcast %cst_179 : f32 to vector<2x128xf32>
    %318 = arith.addf %316, %317 : vector<2x128xf32>
    %cst_180 = arith.constant 5.000000e-01 : f32
    %319 = vector.broadcast %cst_180 : f32 to vector<2x128xf32>
    %320 = arith.mulf %319, %318 : vector<2x128xf32>
    %321 = vector.extract_strided_slice %304 {offsets = [0, 256], sizes = [2, 128], strides = [1, 1]} : vector<2x512xf32> to vector<2x128xf32>
    %322 = math.tanh %321 : vector<2x128xf32>
    %323 = vector.extract_strided_slice %304 {offsets = [0, 384], sizes = [2, 128], strides = [1, 1]} : vector<2x512xf32> to vector<2x128xf32>
    %cst_181 = arith.constant 5.000000e-01 : f32
    %324 = vector.broadcast %cst_181 : f32 to vector<2x128xf32>
    %325 = arith.mulf %324, %323 : vector<2x128xf32>
    %326 = math.tanh %325 : vector<2x128xf32>
    %cst_182 = arith.constant 1.000000e+00 : f32
    %327 = vector.broadcast %cst_182 : f32 to vector<2x128xf32>
    %328 = arith.addf %326, %327 : vector<2x128xf32>
    %cst_183 = arith.constant 5.000000e-01 : f32
    %329 = vector.broadcast %cst_183 : f32 to vector<2x128xf32>
    %330 = arith.mulf %329, %328 : vector<2x128xf32>
    %c0_184 = arith.constant 0 : index
    %c0_185 = arith.constant 0 : index
    %331 = vector.load %arg10[%c0_184, %c0_185] : memref<2x128xf32, #tpu.memory_space<vmem>>, vector<2x128xf32>
    %332 = arith.mulf %320, %331 : vector<2x128xf32>
    %333 = arith.mulf %312, %322 : vector<2x128xf32>
    %334 = arith.addf %332, %333 : vector<2x128xf32>
    %335 = math.tanh %334 : vector<2x128xf32>
    %336 = arith.mulf %330, %335 : vector<2x128xf32>
    %c0_186 = arith.constant 0 : index
    %c0_187 = arith.constant 0 : index
    %337 = vector.load %arg10[%c0_186, %c0_187] : memref<2x128xf32, #tpu.memory_space<vmem>>, vector<2x128xf32>
    tpu.vector_store %arg10[%c0_186, %c0_187], %334 {strides = array<i32>} : memref<2x128xf32, #tpu.memory_space<vmem>>, vector<2x128xf32>,
    %c0_188 = arith.constant 0 : index
    %c0_189 = arith.constant 0 : index
    %338 = vector.load %arg9[%c0_188, %c0_189] : memref<2x128xf32, #tpu.memory_space<vmem>>, vector<2x128xf32>
    tpu.vector_store %arg9[%c0_188, %c0_189], %336 {strides = array<i32>} : memref<2x128xf32, #tpu.memory_space<vmem>>, vector<2x128xf32>,
    %339 = arith.truncf %336 : vector<2x128xf32> to vector<2x128xbf16>
    %c0_190 = arith.constant 0 : index
    %c0_191 = arith.constant 0 : index
    %340 = vector.load %arg11[%c0_190, %c0_191] : memref<2x128xbf16, #tpu.memory_space<vmem>>, vector<2x128xbf16>
    tpu.vector_store %arg11[%c0_190, %c0_191], %339 {strides = array<i32>} : memref<2x128xbf16, #tpu.memory_space<vmem>>, vector<2x128xbf16>,
    %c0_192 = arith.constant 0 : index
    %c0_193 = arith.constant 0 : index
    %341 = vector.load %arg11[%c0_192, %c0_193] : memref<2x128xbf16, #tpu.memory_space<vmem>>, vector<2x128xbf16>
    %342 = arith.index_cast %c6_i32 : i32 to index
    %c0_194 = arith.constant 0 : index
    %c0_195 = arith.constant 0 : index
    %343 = vector.load %arg6[%342, %c0_194, %c0_195] : memref<8x2x128xbf16, #tpu.memory_space<vmem>>, vector<1x2x128xbf16>
    %344 = vector.shape_cast %343 : vector<1x2x128xbf16> to vector<2x128xbf16>
    %345 = vector.shape_cast %341 : vector<2x128xbf16> to vector<1x2x128xbf16>
    tpu.vector_store %arg6[%342, %c0_194, %c0_195], %345 {strides = array<i32>} : memref<8x2x128xbf16, #tpu.memory_space<vmem>>, vector<1x2x128xbf16>,
    %c7_i32 = arith.constant 7 : i32
    %346 = arith.index_cast %c7_i32 : i32 to index
    %c0_196 = arith.constant 0 : index
    %c0_197 = arith.constant 0 : index
    %347 = vector.load %arg2[%346, %c0_196, %c0_197] : memref<8x2x512xbf16, #tpu.memory_space<vmem>>, vector<1x2x512xbf16>
    %348 = vector.shape_cast %347 : vector<1x2x512xbf16> to vector<2x512xbf16>
    %349 = arith.extf %348 : vector<2x512xbf16> to vector<2x512xf32>
    %c0_198 = arith.constant 0 : index
    %c0_199 = arith.constant 0 : index
    %350 = vector.load %arg11[%c0_198, %c0_199] : memref<2x128xbf16, #tpu.memory_space<vmem>>, vector<2x128xbf16>
    %c0_200 = arith.constant 0 : index
    %c0_201 = arith.constant 0 : index
    %351 = vector.load %arg3[%c0_200, %c0_201] : memref<128x512xbf16, #tpu.memory_space<vmem>>, vector<128x512xbf16>
    %cst_202 = arith.constant dense<0.000000e+00> : vector<2x512xf32>
    %352 = tpu.matmul %350, %351, %cst_202 {dimension_numbers = #tpu.dot_dimension_numbers<[1], [0], [0], [1], [0, 0, 1, 1], [], []>} : vector<2x128xbf16>, vector<128x512xbf16>, vector<2x512xf32> -> vector<2x512xf32>
    %353 = arith.addf %349, %352 : vector<2x512xf32>
    %354 = vector.extract_strided_slice %353 {offsets = [0, 0], sizes = [2, 128], strides = [1, 1]} : vector<2x512xf32> to vector<2x128xf32>
    %cst_203 = arith.constant 5.000000e-01 : f32
    %355 = vector.broadcast %cst_203 : f32 to vector<2x128xf32>
    %356 = arith.mulf %355, %354 : vector<2x128xf32>
    %357 = math.tanh %356 : vector<2x128xf32>
    %cst_204 = arith.constant 1.000000e+00 : f32
    %358 = vector.broadcast %cst_204 : f32 to vector<2x128xf32>
    %359 = arith.addf %357, %358 : vector<2x128xf32>
    %cst_205 = arith.constant 5.000000e-01 : f32
    %360 = vector.broadcast %cst_205 : f32 to vector<2x128xf32>
    %361 = arith.mulf %360, %359 : vector<2x128xf32>
    %362 = vector.extract_strided_slice %353 {offsets = [0, 128], sizes = [2, 128], strides = [1, 1]} : vector<2x512xf32> to vector<2x128xf32>
    %cst_206 = arith.constant 5.000000e-01 : f32
    %363 = vector.broadcast %cst_206 : f32 to vector<2x128xf32>
    %364 = arith.mulf %363, %362 : vector<2x128xf32>
    %365 = math.tanh %364 : vector<2x128xf32>
    %cst_207 = arith.constant 1.000000e+00 : f32
    %366 = vector.broadcast %cst_207 : f32 to vector<2x128xf32>
    %367 = arith.addf %365, %366 : vector<2x128xf32>
    %cst_208 = arith.constant 5.000000e-01 : f32
    %368 = vector.broadcast %cst_208 : f32 to vector<2x128xf32>
    %369 = arith.mulf %368, %367 : vector<2x128xf32>
    %370 = vector.extract_strided_slice %353 {offsets = [0, 256], sizes = [2, 128], strides = [1, 1]} : vector<2x512xf32> to vector<2x128xf32>
    %371 = math.tanh %370 : vector<2x128xf32>
    %372 = vector.extract_strided_slice %353 {offsets = [0, 384], sizes = [2, 128], strides = [1, 1]} : vector<2x512xf32> to vector<2x128xf32>
    %cst_209 = arith.constant 5.000000e-01 : f32
    %373 = vector.broadcast %cst_209 : f32 to vector<2x128xf32>
    %374 = arith.mulf %373, %372 : vector<2x128xf32>
    %375 = math.tanh %374 : vector<2x128xf32>
    %cst_210 = arith.constant 1.000000e+00 : f32
    %376 = vector.broadcast %cst_210 : f32 to vector<2x128xf32>
    %377 = arith.addf %375, %376 : vector<2x128xf32>
    %cst_211 = arith.constant 5.000000e-01 : f32
    %378 = vector.broadcast %cst_211 : f32 to vector<2x128xf32>
    %379 = arith.mulf %378, %377 : vector<2x128xf32>
    %c0_212 = arith.constant 0 : index
    %c0_213 = arith.constant 0 : index
    %380 = vector.load %arg10[%c0_212, %c0_213] : memref<2x128xf32, #tpu.memory_space<vmem>>, vector<2x128xf32>
    %381 = arith.mulf %369, %380 : vector<2x128xf32>
    %382 = arith.mulf %361, %371 : vector<2x128xf32>
    %383 = arith.addf %381, %382 : vector<2x128xf32>
    %384 = math.tanh %383 : vector<2x128xf32>
    %385 = arith.mulf %379, %384 : vector<2x128xf32>
    %c0_214 = arith.constant 0 : index
    %c0_215 = arith.constant 0 : index
    %386 = vector.load %arg10[%c0_214, %c0_215] : memref<2x128xf32, #tpu.memory_space<vmem>>, vector<2x128xf32>
    tpu.vector_store %arg10[%c0_214, %c0_215], %383 {strides = array<i32>} : memref<2x128xf32, #tpu.memory_space<vmem>>, vector<2x128xf32>,
    %c0_216 = arith.constant 0 : index
    %c0_217 = arith.constant 0 : index
    %387 = vector.load %arg9[%c0_216, %c0_217] : memref<2x128xf32, #tpu.memory_space<vmem>>, vector<2x128xf32>
    tpu.vector_store %arg9[%c0_216, %c0_217], %385 {strides = array<i32>} : memref<2x128xf32, #tpu.memory_space<vmem>>, vector<2x128xf32>,
    %388 = arith.truncf %385 : vector<2x128xf32> to vector<2x128xbf16>
    %c0_218 = arith.constant 0 : index
    %c0_219 = arith.constant 0 : index
    %389 = vector.load %arg11[%c0_218, %c0_219] : memref<2x128xbf16, #tpu.memory_space<vmem>>, vector<2x128xbf16>
    tpu.vector_store %arg11[%c0_218, %c0_219], %388 {strides = array<i32>} : memref<2x128xbf16, #tpu.memory_space<vmem>>, vector<2x128xbf16>,
    %c0_220 = arith.constant 0 : index
    %c0_221 = arith.constant 0 : index
    %390 = vector.load %arg11[%c0_220, %c0_221] : memref<2x128xbf16, #tpu.memory_space<vmem>>, vector<2x128xbf16>
    %391 = arith.index_cast %c7_i32 : i32 to index
    %c0_222 = arith.constant 0 : index
    %c0_223 = arith.constant 0 : index
    %392 = vector.load %arg6[%391, %c0_222, %c0_223] : memref<8x2x128xbf16, #tpu.memory_space<vmem>>, vector<1x2x128xbf16>
    %393 = vector.shape_cast %392 : vector<1x2x128xbf16> to vector<2x128xbf16>
    %394 = vector.shape_cast %390 : vector<2x128xbf16> to vector<1x2x128xbf16>
    tpu.vector_store %arg6[%391, %c0_222, %c0_223], %394 {strides = array<i32>} : memref<8x2x128xbf16, #tpu.memory_space<vmem>>, vector<1x2x128xbf16>,
    %c8_i32 = arith.constant 8 : i32
    %c0_i32_224 = arith.constant 0 : i32
    %395 = arith.cmpi eq, %arg1, %c0_i32_224 : i32
    %396 = arith.extui %395 : i1 to i32
    %c0_i32_225 = arith.constant 0 : i32
    %397 = arith.cmpi ne, %396, %c0_i32_225 : i32
    scf.if %397 {
      %c0_226 = arith.constant 0 : index
      %c0_227 = arith.constant 0 : index
      %398 = vector.load %arg9[%c0_226, %c0_227] : memref<2x128xf32, #tpu.memory_space<vmem>>, vector<2x128xf32>
      %c0_228 = arith.constant 0 : index
      %c0_229 = arith.constant 0 : index
      %399 = vector.load %arg7[%c0_228, %c0_229] : memref<2x128xf32, #tpu.memory_space<vmem>>, vector<2x128xf32>
      tpu.vector_store %arg7[%c0_228, %c0_229], %398 {strides = array<i32>} : memref<2x128xf32, #tpu.memory_space<vmem>>, vector<2x128xf32>,
      %c0_230 = arith.constant 0 : index
      %c0_231 = arith.constant 0 : index
      %400 = vector.load %arg10[%c0_230, %c0_231] : memref<2x128xf32, #tpu.memory_space<vmem>>, vector<2x128xf32>
      %c0_232 = arith.constant 0 : index
      %c0_233 = arith.constant 0 : index
      %401 = vector.load %arg8[%c0_232, %c0_233] : memref<2x128xf32, #tpu.memory_space<vmem>>, vector<2x128xf32>
      tpu.vector_store %arg8[%c0_232, %c0_233], %400 {strides = array<i32>} : memref<2x128xf32, #tpu.memory_space<vmem>>, vector<2x128xf32>,
    } else {
    }
    return
  }
  func.func @transform_0(%arg0: i32, %arg1: i32) -> (i32, i32, i32) {
    %c0_i32 = arith.constant 0 : i32
    %c0_i32_0 = arith.constant 0 : i32
    return %arg1, %arg0, %c0_i32 : i32, i32, i32
  }
  func.func @transform_1(%arg0: i32, %arg1: i32) -> (i32, i32) {
    %c0_i32 = arith.constant 0 : i32
    %c0_i32_0 = arith.constant 0 : i32
    %c0_i32_1 = arith.constant 0 : i32
    return %c0_i32, %c0_i32_0 : i32, i32
  }
  func.func @transform_2(%arg0: i32, %arg1: i32) -> (i32, i32) {
    %c0_i32 = arith.constant 0 : i32
    %c0_i32_0 = arith.constant 0 : i32
    return %arg0, %c0_i32 : i32, i32
  }
  func.func @transform_3(%arg0: i32, %arg1: i32) -> (i32, i32) {
    %c0_i32 = arith.constant 0 : i32
    %c0_i32_0 = arith.constant 0 : i32
    return %arg0, %c0_i32 : i32, i32
  }
  func.func @transform_4(%arg0: i32, %arg1: i32) -> (i32, i32, i32) {
    %c0_i32 = arith.constant 0 : i32
    %c0_i32_0 = arith.constant 0 : i32
    return %arg1, %arg0, %c0_i32 : i32, i32, i32
  }
  func.func @transform_5(%arg0: i32, %arg1: i32) -> (i32, i32) {
    %c0_i32 = arith.constant 0 : i32
    %c0_i32_0 = arith.constant 0 : i32
    return %arg0, %c0_i32 : i32, i32
  }
  func.func @transform_6(%arg0: i32, %arg1: i32) -> (i32, i32) {
    %c0_i32 = arith.constant 0 : i32
    %c0_i32_0 = arith.constant 0 : i32
    return %arg0, %c0_i32 : i32, i32
  }
}

module attributes {stable_mosaic.version = 11 : i64} {
  func.func @_matmul_bias_1k_kernel(%arg0: i32, %arg1: i32, %arg2: memref<16x128xbf16, #tpu.memory_space<vmem>>, %arg3: memref<128x128xbf16, #tpu.memory_space<vmem>>, %arg4: memref<1x128xf32, #tpu.memory_space<vmem>>, %arg5: memref<16x128xf32, #tpu.memory_space<vmem>>) attributes {dimension_semantics = [#tpu.dimension_semantics<parallel>, #tpu.dimension_semantics<parallel>], iteration_bounds = array<i64: 1, 1>, scalar_prefetch = 0 : i64, scratch_operands = 0 : i64, tpu.core_type = #tpu.core_type<tc>, window_params = [{transform_indices = @transform_0, window_bounds = array<i64: 16, 128>}, {transform_indices = @transform_1, window_bounds = array<i64: 128, 128>}, {transform_indices = @transform_2, window_bounds = array<i64: 1, 128>}, {transform_indices = @transform_3, window_bounds = array<i64: 16, 128>}]} {
    %c0 = arith.constant 0 : index
    %c0_0 = arith.constant 0 : index
    %0 = vector.load %arg2[%c0, %c0_0] : memref<16x128xbf16, #tpu.memory_space<vmem>>, vector<16x128xbf16>
    %c0_1 = arith.constant 0 : index
    %c0_2 = arith.constant 0 : index
    %1 = vector.load %arg3[%c0_1, %c0_2] : memref<128x128xbf16, #tpu.memory_space<vmem>>, vector<128x128xbf16>
    %cst = arith.constant dense<0.000000e+00> : vector<16x128xf32>
    %2 = tpu.matmul %0, %1, %cst {dimension_numbers = #tpu.dot_dimension_numbers<[1], [0], [0], [1], [0, 0, 1, 1], [], []>} : vector<16x128xbf16>, vector<128x128xbf16>, vector<16x128xf32> -> vector<16x128xf32>
    %c0_3 = arith.constant 0 : index
    %c0_4 = arith.constant 0 : index
    %3 = vector.load %arg4[%c0_3, %c0_4] : memref<1x128xf32, #tpu.memory_space<vmem>>, vector<1x128xf32>
    %4 = vector.broadcast %3 : vector<1x128xf32> to vector<16x128xf32>
    %5 = arith.addf %2, %4 : vector<16x128xf32>
    %c0_5 = arith.constant 0 : index
    %c0_6 = arith.constant 0 : index
    %6 = vector.load %arg5[%c0_5, %c0_6] : memref<16x128xf32, #tpu.memory_space<vmem>>, vector<16x128xf32>
    tpu.vector_store %arg5[%c0_5, %c0_6], %5 {strides = array<i32>} : memref<16x128xf32, #tpu.memory_space<vmem>>, vector<16x128xf32>,
    return
  }
  func.func @transform_0(%arg0: i32, %arg1: i32) -> (i32, i32) {
    %c0_i32 = arith.constant 0 : i32
    %c0_i32_0 = arith.constant 0 : i32
    return %arg0, %c0_i32 : i32, i32
  }
  func.func @transform_1(%arg0: i32, %arg1: i32) -> (i32, i32) {
    %c0_i32 = arith.constant 0 : i32
    %c0_i32_0 = arith.constant 0 : i32
    return %c0_i32, %arg1 : i32, i32
  }
  func.func @transform_2(%arg0: i32, %arg1: i32) -> (i32, i32) {
    %c0_i32 = arith.constant 0 : i32
    %c0_i32_0 = arith.constant 0 : i32
    return %c0_i32, %arg1 : i32, i32
  }
  func.func @transform_3(%arg0: i32, %arg1: i32) -> (i32, i32) {
    %c0_i32 = arith.constant 0 : i32
    return %arg0, %arg1 : i32, i32
  }
}

</mosaic_0001>

<bundles_post_ra>
// kernel: word_lstm_forward.9
= control target key start
LH: loop header
LB: loop body
LE: loop exit
PB: predicated region body
PF: predicated region fallthrough
CT: control target
= control target key end

     0   :  { %v229_v1 = vmov 0.0   ;;  %vm230_vm0 = vmmov 0   ;;  %s287_s0 = inlined_call_operand.vmem [shape: bf16[16,128], index: 0, kind: input, shape index: {}]   ;;  %s288_s1 = inlined_call_operand.vmem [shape: bf16[128,128], index: 1, kind: input, shape index: {}]   ;;  %s289_s2 = inlined_call_operand.vmem [shape: f32[1,128], index: 2, kind: input, shape index: {}]   ;;  %s290_s3 = inlined_call_operand.hbm [shape: f32[16,128], index: 3, kind: output, shape index: {}]  }
   0x1   :  { %v198_v0 = vld [vmem:[%s288_s1 + $0x38] sm:$0xff]   ;;  %173 = vmatprep.subr.bf16.mxu0 %v229_v1  ;;  %v199_v2 = vld [vmem:[%s288_s1 + $0x30] sm:$0xff]   ;;  %189 = vmatprep.mubr.msk.bf16.mxu0 %vm230_vm0, %v229_v1  ;;  %v200_v3 = vld [vmem:[%s288_s1 + $0x28] sm:$0xff]  }
   0x2   :  { %174 = vmatpush3.bf16.msra.mxu0 %v198_v0 }
   0x3   :  { %175 = vmatprep.subr.bf16.mxu0 %v229_v1 }
   0x6   :  { %176 = vmatpush3.bf16.msra.mxu0 %v199_v2 }
   0x7   :  { %177 = vmatprep.subr.bf16.mxu0 %v229_v1 }
   0x8   :  { %8 = vsyncpa [#allocation3], 0  ;;  %v201_v4 = vld [vmem:[%s288_s1 + $0x20] sm:$0xff]   ;;  %v202_v5 = vld [vmem:[%s288_s1 + $0x18] sm:$0xff]   ;;  %s231_s5 = smov [#allocation2]  }
   0x9   :  { %v203_v6 = vld [vmem:[%s288_s1 + $0x10] sm:$0xff]   ;;  %v204_v7 = vld [vmem:[%s288_s1 + $0x8] sm:$0xff]   ;;  %v205_v8 = vld [vmem:[%s288_s1] sm:$0xff]   ;;  %s143_s6 = sshll.u32 %s231_s5, 4  ;;  %s144_s6 = int_to_ptr.vmem [resolvable:$true] %s143_s6 }
   0xa   :  { %178 = vmatpush3.bf16.msra.mxu0 %v200_v3  ;;  %v206_v9 = vld [vmem:[%s287_s0] sm:$0xff]   ;;  %s207_s1 = scalar_lea.vmem %s144_s6, 256  ;;  %p212_p1 = scmp.lt.s32.totalorder %s144_s6, %s144_s6 }
   0xb   :  { %179 = vmatprep.subr.bf16.mxu0 %v229_v1  ;;  %v154_v10 = vld [vmem:[%s289_s2] ss:$0 sm:$0xff]  ;;  %p208_p0 = scmp.ne.s32.totalorder %s144_s6, %s207_s1  ;;  %p213_p2 = scmp.lt.s32.totalorder %s207_s1, %s207_s1 }
   0xd   :  { %p214_p3 = por %p213_p2, %p212_p1 }
   0xe   :  { %180 = vmatpush3.bf16.msra.mxu0 %v201_v4 }
   0xf   :  { %181 = vmatprep.subr.bf16.mxu0 %v229_v1  ;;  %p215_p4 = pnand %p214_p3, %p208_p0 }
  0x12   :  { %182 = vmatpush3.bf16.msra.mxu0 %v202_v5 }
  0x13   :  { %183 = vmatprep.subr.bf16.mxu0 %v229_v1 }
  0x16   :  { %184 = vmatpush3.bf16.msra.mxu0 %v203_v6 }
  0x17   :  { %185 = vmatprep.subr.bf16.mxu0 %v229_v1 }
  0x1a   :  { %186 = vmatpush3.bf16.msra.mxu0 %v204_v7 }
  0x1b   :  { %187 = vmatprep.subr.bf16.mxu0 %v229_v1 }
  0x1e   :  { %188 = vmatpush3.bf16.msra.mxu0 %v205_v8 }
  0x21   :  { %190 = vmatmul.mubr.bf16.vlgmr.msra.gmra.mxu0 %v206_v9 }
  0xe1   :  { %v129_v11 = vpop.f32.mrf.mxu0 }
  0xe2   :  { %v130_v12 = vadd.f32 %v154_v10, %v129_v11 }
  0xe3   :  { %v191_v13 = vpop.f32.mrf.mxu0 }
  0xe4   :  { %136 = vst [vmem:[#allocation2] sm:$0xff] %v130_v12 }
  0xe5   :  { %v132_v14 = vpop.f32.mrf.mxu0 }
  0xe6   :  { %v133_v15 = vadd.f32 %v154_v10, %v132_v14 }
  0xe7   :  { %v192_v16 = vpop.f32.mrf.mxu0 }
  0xe8   :  { %137 = vst [vmem:[#allocation2 + $0x8] sm:$0xff] %v133_v15 }
  0xe9   :  { %218 = shalt.err (!%p215_p4)
}
  0xea   :  { %s232_s0 = smov 128   ;;  %s233_s2 = smov 8  }
  0xeb   :  { %149 = dma.vmem_to_hbm [thread:$0]  %s144_s6, 256, %s290_s3, [#allocation3], %s232_s0, %s232_s0, %s233_s2  }
  0xec   :  { %227 = dma.done.wait [#allocation3], 256  }
  0xed   :  { %228 = vsyncadd [#allocation3], 4294967040 }
  0xee   :  { %153 = vsyncpa [#allocation3], 1 }

// kernel: word_lstm_forward.7
= control target key start
LH: loop header
LB: loop body
LE: loop exit
PB: predicated region body
PF: predicated region fallthrough
CT: control target
= control target key end

     0   :  { %v446_v1 = vmov 0   ;;  %v51_v34 = vlaneseq  ;;  %s581_s1 = inlined_call_operand.vmem [shape: bf16[128,512], index: 1, kind: input, shape index: {}]   ;;  %s582_s0 = inlined_call_operand.vmem [shape: bf16[16,128], index: 0, kind: input, shape index: {}]   ;;  %s583_s2 = inlined_call_operand.vmem [shape: f32[1,512], index: 2, kind: input, shape index: {}]   ;;  %s584_s3 = inlined_call_operand.vmem [shape: bf16[16,512], index: 3, kind: output, shape index: {}]  }
   0x1   :  { %v397_v0 = vld [vmem:[%s581_s1 + $0xe4] ss:$16 sps:$4 sm:$0xff]   ;;  %269 = vmatprep.mubr.bf16.mxu0 %v446_v1  ;;  %312 = vmatprep.mubr.bf16.mxu1 %v446_v1  ;;  %v399_v2 = vld [vmem:[%s581_s1 + $0xec] ss:$16 sps:$4 sm:$0xff]   ;;  %v401_v3 = vld [vmem:[%s581_s1 + $0xe0] ss:$16 sps:$4 sm:$0xff]  }
   0x2   :  { %237 = vmatprep.subr.bf16.mxu0 %v397_v0  ;;  %v402_v4 = vld [vmem:[%s581_s1 + $0xe8] ss:$16 sps:$4 sm:$0xff]   ;;  %280 = vmatprep.subr.bf16.mxu1 %v399_v2  ;;  %v403_v5 = vld [vmem:[%s581_s1 + $0xc4] ss:$16 sps:$4 sm:$0xff]   ;;  %v405_v6 = vld [vmem:[%s581_s1 + $0xcc] ss:$16 sps:$4 sm:$0xff]  }
   0x3   :  { %238 = vmatpush1.bf16.msra.mxu0 %v401_v3  ;;  %281 = vmatpush1.bf16.msra.mxu1 %v402_v4  ;;  %v407_v7 = vld [vmem:[%s581_s1 + $0xc0] ss:$16 sps:$4 sm:$0xff]   ;;  %v408_v8 = vld [vmem:[%s581_s1 + $0xc8] ss:$16 sps:$4 sm:$0xff]   ;;  %v409_v9 = vld [vmem:[%s581_s1 + $0xa4] ss:$16 sps:$4 sm:$0xff]  }
   0x4   :  { %239 = vmatprep.subr.bf16.mxu0 %v403_v5  ;;  %282 = vmatprep.subr.bf16.mxu1 %v405_v6  ;;  %v411_v10 = vld [vmem:[%s581_s1 + $0xac] ss:$16 sps:$4 sm:$0xff]   ;;  %v413_v11 = vld [vmem:[%s581_s1 + $0xa0] ss:$16 sps:$4 sm:$0xff]   ;;  %v414_v12 = vld [vmem:[%s581_s1 + $0xa8] ss:$16 sps:$4 sm:$0xff]  }
   0x5   :  { %v415_v13 = vld [vmem:[%s581_s1 + $0x84] ss:$16 sps:$4 sm:$0xff]   ;;  %v417_v14 = vld [vmem:[%s581_s1 + $0x8c] ss:$16 sps:$4 sm:$0xff]   ;;  %v419_v15 = vld [vmem:[%s581_s1 + $0x80] ss:$16 sps:$4 sm:$0xff]  }
   0x6   :  { %v420_v16 = vld [vmem:[%s581_s1 + $0x88] ss:$16 sps:$4 sm:$0xff]   ;;  %v421_v17 = vld [vmem:[%s581_s1 + $0x64] ss:$16 sps:$4 sm:$0xff]   ;;  %v423_v18 = vld [vmem:[%s581_s1 + $0x6c] ss:$16 sps:$4 sm:$0xff]  }
   0x7   :  { %240 = vmatpush1.bf16.msra.mxu0 %v407_v7  ;;  %283 = vmatpush1.bf16.msra.mxu1 %v408_v8  ;;  %v425_v19 = vld [vmem:[%s581_s1 + $0x60] ss:$16 sps:$4 sm:$0xff]   ;;  %v426_v20 = vld [vmem:[%s581_s1 + $0x68] ss:$16 sps:$4 sm:$0xff]   ;;  %v427_v21 = vld [vmem:[%s581_s1 + $0x44] ss:$16 sps:$4 sm:$0xff]  }
   0x8   :  { %241 = vmatprep.subr.bf16.mxu0 %v409_v9  ;;  %284 = vmatprep.subr.bf16.mxu1 %v411_v10  ;;  %v429_v22 = vld [vmem:[%s581_s1 + $0x4c] ss:$16 sps:$4 sm:$0xff]   ;;  %v431_v23 = vld [vmem:[%s581_s1 + $0x40] ss:$16 sps:$4 sm:$0xff]   ;;  %v432_v24 = vld [vmem:[%s581_s1 + $0x48] ss:$16 sps:$4 sm:$0xff]  }
   0x9   :  { %v433_v25 = vld [vmem:[%s581_s1 + $0x24] ss:$16 sps:$4 sm:$0xff]   ;;  %v435_v26 = vld [vmem:[%s581_s1 + $0x2c] ss:$16 sps:$4 sm:$0xff]   ;;  %v437_v27 = vld [vmem:[%s581_s1 + $0x20] ss:$16 sps:$4 sm:$0xff]  }
   0xa   :  { %v438_v28 = vld [vmem:[%s581_s1 + $0x28] ss:$16 sps:$4 sm:$0xff]   ;;  %v439_v29 = vld [vmem:[%s581_s1 + $0x4] ss:$16 sps:$4 sm:$0xff]   ;;  %v441_v30 = vld [vmem:[%s581_s1 + $0xc] ss:$16 sps:$4 sm:$0xff]  }
   0xb   :  { %242 = vmatpush1.bf16.msra.mxu0 %v413_v11  ;;  %285 = vmatpush1.bf16.msra.mxu1 %v414_v12  ;;  %v443_v31 = vld [vmem:[%s581_s1] ss:$16 sps:$4 sm:$0xff]   ;;  %v444_v32 = vld [vmem:[%s581_s1 + $0x8] ss:$16 sps:$4 sm:$0xff]   ;;  %v52_v35 = vshrl.u32 %v51_v34, 7 }
   0xc   :  { %243 = vmatprep.subr.bf16.mxu0 %v415_v13  ;;  %286 = vmatprep.subr.bf16.mxu1 %v417_v14  ;;  %v445_v33 = vld [vmem:[%s582_s0] sm:$0xff]  }
   0xd   :  { %v53_v36 = vsub.s32 0, %v52_v35  ;;  %v61_v37 = vsub.s32 2, %v52_v35  ;;  %v57_v38 = vsub.s32 1, %v52_v35  ;;  %v65_v39 = vsub.s32 3, %v52_v35  ;;  %v49_v40 = vld [vmem:[%s583_s2] sm:$0xf] }
   0xf   :  { %244 = vmatpush1.bf16.msra.mxu0 %v419_v15  ;;  %287 = vmatpush1.bf16.msra.mxu1 %v420_v16  ;;  %v54_v41 = vrot.slane %v49_v40, %v53_v36  ;;  %v62_v42 = vrot.slane %v49_v40, %v61_v37  ;;  %v58_v43 = vrot.slane %v49_v40, %v57_v38 }
  0x10   :  { %245 = vmatprep.subr.bf16.mxu0 %v421_v17  ;;  %288 = vmatprep.subr.bf16.mxu1 %v423_v18  ;;  %v66_v44 = vrot.slane %v49_v40, %v65_v39 }
  0x13   :  { %246 = vmatpush1.bf16.msra.mxu0 %v425_v19  ;;  %289 = vmatpush1.bf16.msra.mxu1 %v426_v20 }
  0x14   :  { %247 = vmatprep.subr.bf16.mxu0 %v427_v21  ;;  %290 = vmatprep.subr.bf16.mxu1 %v429_v22 }
  0x17   :  { %248 = vmatpush1.bf16.msra.mxu0 %v431_v23  ;;  %291 = vmatpush1.bf16.msra.mxu1 %v432_v24 }
  0x18   :  { %249 = vmatprep.subr.bf16.mxu0 %v433_v25  ;;  %292 = vmatprep.subr.bf16.mxu1 %v435_v26 }
  0x1b   :  { %250 = vmatpush1.bf16.msra.mxu0 %v437_v27  ;;  %293 = vmatpush1.bf16.msra.mxu1 %v438_v28 }
  0x1c   :  { %251 = vmatprep.subr.bf16.mxu0 %v439_v29  ;;  %294 = vmatprep.subr.bf16.mxu1 %v441_v30 }
  0x1f   :  { %252 = vmatpush1.bf16.msra.mxu0 %v443_v31  ;;  %295 = vmatpush1.bf16.msra.mxu1 %v444_v32 }
  0x22   :  { %270 = vmatmul.mubr.bf16.vlgmr.msra.gmra.mxu0 %v445_v33  ;;  %313 = vmatmul.mubr.bf16.vlgmr.msra.gmra.mxu1 %v445_v33 }
  0xe2   :  { %v271_v45 = vpop.f32.mrf.mxu0  ;;  %v314_v46 = vpop.f32.mrf.mxu1 }
  0xe3   :  { %v272_v49 = vadd.f32 %v271_v45, %v54_v41  ;;  %v315_v50 = vadd.f32 %v314_v46, %v62_v42 }
  0xe4   :  { %v273_v47 = vpop.f32.mrf.mxu0  ;;  %v316_v48 = vpop.f32.mrf.mxu1 }
  0xe5   :  { %v274_v51 = vadd.f32 %v273_v47, %v58_v43  ;;  %v317_v52 = vadd.f32 %v316_v48, %v66_v44 }
  0xe6   :  { %v275_v53 = vpop.f32.mrf.mxu0  ;;  %v318_v54 = vpop.f32.mrf.mxu1 }
  0xe7   :  { %v392_v55 = vpack.c.bf16 %v274_v51, %v272_v49  ;;  %v393_v56 = vpack.c.bf16 %v317_v52, %v315_v50  ;;  %v276_v59 = vadd.f32 %v275_v53, %v54_v41  ;;  %v319_v60 = vadd.f32 %v318_v54, %v62_v42 }
  0xe8   :  { %v277_v57 = vpop.f32.mrf.mxu0  ;;  %v320_v58 = vpop.f32.mrf.mxu1 }
  0xe9   :  { %347 = vst [vmem:[%s584_s3] sm:$0xff] %v392_v55  ;;  %348 = vst [vmem:[%s584_s3 + $0x8] sm:$0xff] %v393_v56  ;;  %v278_v61 = vadd.f32 %v277_v57, %v58_v43  ;;  %v321_v62 = vadd.f32 %v320_v58, %v66_v44 }
  0xeb   :  { %v394_v63 = vpack.c.bf16 %v278_v61, %v276_v59  ;;  %v395_v0 = vpack.c.bf16 %v321_v62, %v319_v60 }
  0xed   :  { %349 = vst [vmem:[%s584_s3 + $0x10] sm:$0xff] %v394_v63  ;;  %350 = vst [vmem:[%s584_s3 + $0x18] sm:$0xff] %v395_v0 }

// kernel: word_lstm_forward.5
= control target key start
LH: loop header
LB: loop body
LE: loop exit
PB: predicated region body
PF: predicated region fallthrough
CT: control target
= control target key end

     0   :  { %8 = vsyncpa [#allocation3], 0  ;;  %s763_s12 = smov [#allocation2]   ;;  %s810_s0 = inlined_call_operand.vmem [shape: bf16[16,256], index: 0, kind: input, shape index: {}]   ;;  %s811_s1 = inlined_call_operand.hbm [shape: bf16[256,512], index: 1, kind: input, shape index: {}]   ;;  %s812_s2 = inlined_call_operand.vmem [shape: f32[1,512], index: 2, kind: input, shape index: {}]   ;;  %s813_s3 = inlined_call_operand.vmem [shape: bf16[16,512], index: 3, kind: output, shape index: {}]  }
   0x1   :  { %s16_s13 = sshll.u32 %s763_s12, 4  ;;  %s17_s13 = int_to_ptr.vmem [resolvable:$true] %s16_s13 }
   0x2   :  { %s749_s14 = scalar_lea.vmem %s17_s13, 8192  ;;  %p754_p1 = scmp.lt.s32.totalorder %s17_s13, %s17_s13 }
   0x3   :  { %p750_p0 = scmp.ne.s32.totalorder %s17_s13, %s749_s14  ;;  %p755_p2 = scmp.lt.s32.totalorder %s749_s14, %s749_s14 }
   0x5   :  { %p756_p3 = por %p755_p2, %p754_p1 }
   0x7   :  { %p757_p4 = pnand %p756_p3, %p750_p0 }
   0x9   :  { %760 = shalt.err (!%p757_p4)
}
   0xa   :  { %s764_s15 = smov 256   ;;  %s765_s16 = smov 16  }
   0xb   :  { %22 = dma.hbm_to_vmem [thread:$0]  %s811_s1, 8192, %s17_s13, [#allocation3], %s764_s15, %s764_s15, %s765_s16  }
   0xc   :  { %761 = dma.done.wait [#allocation3], 8192  }
   0xd   :  { %762 = vsyncadd [#allocation3], 4294959104  ;;  %v642_v0 = vld [vmem:[#allocation2 + $0xe4] ss:$16 sps:$4 sm:$0xff]   ;;  %v644_v1 = vld [vmem:[#allocation2 + $0xec] ss:$16 sps:$4 sm:$0xff]  }
   0xe   :  { %446 = vmatprep.subr.bf16.mxu0 %v642_v0  ;;  %v646_v2 = vld [vmem:[#allocation2 + $0xe0] ss:$16 sps:$4 sm:$0xff]   ;;  %v647_v3 = vld [vmem:[#allocation2 + $0xe8] ss:$16 sps:$4 sm:$0xff]   ;;  %489 = vmatprep.subr.bf16.mxu1 %v644_v1  ;;  %v648_v4 = vld [vmem:[#allocation2 + $0xc4] ss:$16 sps:$4 sm:$0xff]  }
   0xf   :  { %447 = vmatpush1.bf16.msra.mxu0 %v646_v2  ;;  %490 = vmatpush1.bf16.msra.mxu1 %v647_v3  ;;  %v650_v5 = vld [vmem:[#allocation2 + $0xcc] ss:$16 sps:$4 sm:$0xff]   ;;  %v652_v6 = vld [vmem:[#allocation2 + $0xc0] ss:$16 sps:$4 sm:$0xff]   ;;  %v653_v7 = vld [vmem:[#allocation2 + $0xc8] ss:$16 sps:$4 sm:$0xff]   ;;  %v96_v2 = vlaneseq }
  0x10   :  { %448 = vmatprep.subr.bf16.mxu0 %v648_v4  ;;  %491 = vmatprep.subr.bf16.mxu1 %v650_v5  ;;  %v654_v8 = vld [vmem:[#allocation2 + $0xa4] ss:$16 sps:$4 sm:$0xff]   ;;  %v656_v9 = vld [vmem:[#allocation2 + $0xac] ss:$16 sps:$4 sm:$0xff]   ;;  %v658_v10 = vld [vmem:[#allocation2 + $0xa0] ss:$16 sps:$4 sm:$0xff]  }
  0x11   :  { %v659_v11 = vld [vmem:[#allocation2 + $0xa8] ss:$16 sps:$4 sm:$0xff]   ;;  %v660_v12 = vld [vmem:[#allocation2 + $0x84] ss:$16 sps:$4 sm:$0xff]   ;;  %v662_v13 = vld [vmem:[#allocation2 + $0x8c] ss:$16 sps:$4 sm:$0xff]  }
  0x12   :  { %v664_v14 = vld [vmem:[#allocation2 + $0x80] ss:$16 sps:$4 sm:$0xff]   ;;  %v665_v15 = vld [vmem:[#allocation2 + $0x88] ss:$16 sps:$4 sm:$0xff]   ;;  %v666_v16 = vld [vmem:[#allocation2 + $0x64] ss:$16 sps:$4 sm:$0xff]  }
  0x13   :  { %449 = vmatpush1.bf16.msra.mxu0 %v652_v6  ;;  %492 = vmatpush1.bf16.msra.mxu1 %v653_v7  ;;  %v668_v17 = vld [vmem:[#allocation2 + $0x6c] ss:$16 sps:$4 sm:$0xff]   ;;  %v670_v18 = vld [vmem:[#allocation2 + $0x60] ss:$16 sps:$4 sm:$0xff]   ;;  %v671_v19 = vld [vmem:[#allocation2 + $0x68] ss:$16 sps:$4 sm:$0xff]  }
  0x14   :  { %450 = vmatprep.subr.bf16.mxu0 %v654_v8  ;;  %493 = vmatprep.subr.bf16.mxu1 %v656_v9  ;;  %v672_v20 = vld [vmem:[#allocation2 + $0x44] ss:$16 sps:$4 sm:$0xff]   ;;  %v674_v21 = vld [vmem:[#allocation2 + $0x4c] ss:$16 sps:$4 sm:$0xff]   ;;  %v676_v22 = vld [vmem:[#allocation2 + $0x40] ss:$16 sps:$4 sm:$0xff]  }
  0x15   :  { %v677_v23 = vld [vmem:[#allocation2 + $0x48] ss:$16 sps:$4 sm:$0xff]   ;;  %v678_v24 = vld [vmem:[#allocation2 + $0x24] ss:$16 sps:$4 sm:$0xff]   ;;  %v680_v25 = vld [vmem:[#allocation2 + $0x2c] ss:$16 sps:$4 sm:$0xff]  }
  0x16   :  { %v682_v26 = vld [vmem:[#allocation2 + $0x20] ss:$16 sps:$4 sm:$0xff]   ;;  %v683_v27 = vld [vmem:[#allocation2 + $0x28] ss:$16 sps:$4 sm:$0xff]   ;;  %v684_v28 = vld [vmem:[#allocation2 + $0x4] ss:$16 sps:$4 sm:$0xff]  }
  0x17   :  { %451 = vmatpush1.bf16.msra.mxu0 %v658_v10  ;;  %494 = vmatpush1.bf16.msra.mxu1 %v659_v11  ;;  %v686_v29 = vld [vmem:[#allocation2 + $0xc] ss:$16 sps:$4 sm:$0xff]   ;;  %v688_v30 = vld [vmem:[#allocation2] ss:$16 sps:$4 sm:$0xff]   ;;  %v689_v31 = vld [vmem:[#allocation2 + $0x8] ss:$16 sps:$4 sm:$0xff]  }
  0x18   :  { %452 = vmatprep.subr.bf16.mxu0 %v660_v12  ;;  %495 = vmatprep.subr.bf16.mxu1 %v662_v13  ;;  %v690_v32 = vld [vmem:[#allocation2 + $0x1e4] ss:$16 sps:$4 sm:$0xff]   ;;  %v692_v33 = vld [vmem:[#allocation2 + $0x1ec] ss:$16 sps:$4 sm:$0xff]   ;;  %v694_v34 = vld [vmem:[#allocation2 + $0x1e0] ss:$16 sps:$4 sm:$0xff]  }
  0x19   :  { %v695_v35 = vld [vmem:[#allocation2 + $0x1e8] ss:$16 sps:$4 sm:$0xff]   ;;  %v696_v36 = vld [vmem:[#allocation2 + $0x1c4] ss:$16 sps:$4 sm:$0xff]   ;;  %v698_v37 = vld [vmem:[#allocation2 + $0x1cc] ss:$16 sps:$4 sm:$0xff]  }
  0x1a   :  { %v700_v38 = vld [vmem:[#allocation2 + $0x1c0] ss:$16 sps:$4 sm:$0xff]   ;;  %v701_v39 = vld [vmem:[#allocation2 + $0x1c8] ss:$16 sps:$4 sm:$0xff]   ;;  %v702_v40 = vld [vmem:[#allocation2 + $0x1a4] ss:$16 sps:$4 sm:$0xff]  }
  0x1b   :  { %453 = vmatpush1.bf16.msra.mxu0 %v664_v14  ;;  %496 = vmatpush1.bf16.msra.mxu1 %v665_v15  ;;  %v704_v41 = vld [vmem:[#allocation2 + $0x1ac] ss:$16 sps:$4 sm:$0xff]   ;;  %v706_v42 = vld [vmem:[#allocation2 + $0x1a0] ss:$16 sps:$4 sm:$0xff]   ;;  %v707_v43 = vld [vmem:[#allocation2 + $0x1a8] ss:$16 sps:$4 sm:$0xff]  }
  0x1c   :  { %454 = vmatprep.subr.bf16.mxu0 %v666_v16  ;;  %497 = vmatprep.subr.bf16.mxu1 %v668_v17  ;;  %v708_v44 = vld [vmem:[#allocation2 + $0x184] ss:$16 sps:$4 sm:$0xff]   ;;  %v710_v45 = vld [vmem:[#allocation2 + $0x18c] ss:$16 sps:$4 sm:$0xff]   ;;  %v712_v47 = vld [vmem:[#allocation2 + $0x180] ss:$16 sps:$4 sm:$0xff]  }
  0x1d   :  { %v740_v46 = vld [vmem:[%s810_s0 + $0x4] ss:$8 sps:$4 sm:$0xff]   ;;  %v713_v48 = vld [vmem:[#allocation2 + $0x188] ss:$16 sps:$4 sm:$0xff]   ;;  %v718_v51 = vld [vmem:[#allocation2 + $0x160] ss:$16 sps:$4 sm:$0xff]  }
  0x1e   :  { %v714_v49 = vld [vmem:[#allocation2 + $0x164] ss:$16 sps:$4 sm:$0xff]   ;;  %v716_v50 = vld [vmem:[#allocation2 + $0x16c] ss:$16 sps:$4 sm:$0xff]   ;;  %478 = vmatprep.mubr.bf16.mxu0 %v740_v46  ;;  %521 = vmatprep.mubr.bf16.mxu1 %v740_v46  ;;  %v719_v52 = vld [vmem:[#allocation2 + $0x168] ss:$16 sps:$4 sm:$0xff]  }
  0x1f   :  { %455 = vmatpush1.bf16.msra.mxu0 %v670_v18  ;;  %498 = vmatpush1.bf16.msra.mxu1 %v671_v19  ;;  %v720_v53 = vld [vmem:[#allocation2 + $0x144] ss:$16 sps:$4 sm:$0xff]   ;;  %v722_v54 = vld [vmem:[#allocation2 + $0x14c] ss:$16 sps:$4 sm:$0xff]   ;;  %v724_v55 = vld [vmem:[#allocation2 + $0x140] ss:$16 sps:$4 sm:$0xff]  }
  0x20   :  { %456 = vmatprep.subr.bf16.mxu0 %v672_v20  ;;  %499 = vmatprep.subr.bf16.mxu1 %v674_v21  ;;  %v725_v56 = vld [vmem:[#allocation2 + $0x148] ss:$16 sps:$4 sm:$0xff]   ;;  %v726_v57 = vld [vmem:[#allocation2 + $0x124] ss:$16 sps:$4 sm:$0xff]   ;;  %v728_v58 = vld [vmem:[#allocation2 + $0x12c] ss:$16 sps:$4 sm:$0xff]  }
  0x21   :  { %v730_v59 = vld [vmem:[#allocation2 + $0x120] ss:$16 sps:$4 sm:$0xff]   ;;  %v731_v60 = vld [vmem:[#allocation2 + $0x128] ss:$16 sps:$4 sm:$0xff]   ;;  %v732_v61 = vld [vmem:[#allocation2 + $0x104] ss:$16 sps:$4 sm:$0xff]  }
  0x22   :  { %v734_v62 = vld [vmem:[#allocation2 + $0x10c] ss:$16 sps:$4 sm:$0xff]   ;;  %v736_v63 = vld [vmem:[#allocation2 + $0x100] ss:$16 sps:$4 sm:$0xff]   ;;  %v737_v0 = vld [vmem:[#allocation2 + $0x108] ss:$16 sps:$4 sm:$0xff]  }
  0x23   :  { %457 = vmatpush1.bf16.msra.mxu0 %v676_v22  ;;  %500 = vmatpush1.bf16.msra.mxu1 %v677_v23  ;;  %v738_v1 = vld [vmem:[%s810_s0] ss:$8 sps:$4 sm:$0xff]   ;;  %v97_v3 = vshrl.u32 %v96_v2, 7 }
  0x24   :  { %458 = vmatprep.subr.bf16.mxu0 %v678_v24  ;;  %501 = vmatprep.subr.bf16.mxu1 %v680_v25  ;;  %v94_v8 = vld [vmem:[%s812_s2] sm:$0xf] }
  0x25   :  { %v98_v4 = vsub.s32 0, %v97_v3  ;;  %v106_v5 = vsub.s32 2, %v97_v3  ;;  %v102_v6 = vsub.s32 1, %v97_v3  ;;  %v110_v7 = vsub.s32 3, %v97_v3 }
  0x27   :  { %459 = vmatpush1.bf16.msra.mxu0 %v682_v26  ;;  %502 = vmatpush1.bf16.msra.mxu1 %v683_v27  ;;  %v99_v9 = vrot.slane %v94_v8, %v98_v4  ;;  %v107_v10 = vrot.slane %v94_v8, %v106_v5  ;;  %v103_v11 = vrot.slane %v94_v8, %v102_v6 }
  0x28   :  { %460 = vmatprep.subr.bf16.mxu0 %v684_v28  ;;  %503 = vmatprep.subr.bf16.mxu1 %v686_v29  ;;  %v111_v12 = vrot.slane %v94_v8, %v110_v7 }
  0x2b   :  { %461 = vmatpush1.bf16.msra.mxu0 %v688_v30  ;;  %504 = vmatpush1.bf16.msra.mxu1 %v689_v31 }
  0x2c   :  { %462 = vmatprep.subr.bf16.mxu0 %v690_v32  ;;  %505 = vmatprep.subr.bf16.mxu1 %v692_v33 }
  0x2f   :  { %463 = vmatpush2.bf16.msra.mxu0 %v694_v34  ;;  %506 = vmatpush2.bf16.msra.mxu1 %v695_v35 }
  0x30   :  { %464 = vmatprep.subr.bf16.mxu0 %v696_v36  ;;  %507 = vmatprep.subr.bf16.mxu1 %v698_v37 }
  0x33   :  { %465 = vmatpush2.bf16.msra.mxu0 %v700_v38  ;;  %508 = vmatpush2.bf16.msra.mxu1 %v701_v39 }
  0x34   :  { %466 = vmatprep.subr.bf16.mxu0 %v702_v40  ;;  %509 = vmatprep.subr.bf16.mxu1 %v704_v41 }
  0x37   :  { %467 = vmatpush2.bf16.msra.mxu0 %v706_v42  ;;  %510 = vmatpush2.bf16.msra.mxu1 %v707_v43 }
  0x38   :  { %468 = vmatprep.subr.bf16.mxu0 %v708_v44  ;;  %511 = vmatprep.subr.bf16.mxu1 %v710_v45 }
  0x3b   :  { %469 = vmatpush2.bf16.msra.mxu0 %v712_v47  ;;  %512 = vmatpush2.bf16.msra.mxu1 %v713_v48 }
  0x3c   :  { %470 = vmatprep.subr.bf16.mxu0 %v714_v49  ;;  %513 = vmatprep.subr.bf16.mxu1 %v716_v50 }
  0x3f   :  { %471 = vmatpush2.bf16.msra.mxu0 %v718_v51  ;;  %514 = vmatpush2.bf16.msra.mxu1 %v719_v52 }
  0x40   :  { %472 = vmatprep.subr.bf16.mxu0 %v720_v53  ;;  %515 = vmatprep.subr.bf16.mxu1 %v722_v54 }
  0x43   :  { %473 = vmatpush2.bf16.msra.mxu0 %v724_v55  ;;  %516 = vmatpush2.bf16.msra.mxu1 %v725_v56 }
  0x44   :  { %474 = vmatprep.subr.bf16.mxu0 %v726_v57  ;;  %517 = vmatprep.subr.bf16.mxu1 %v728_v58 }
  0x47   :  { %475 = vmatpush2.bf16.msra.mxu0 %v730_v59  ;;  %518 = vmatpush2.bf16.msra.mxu1 %v731_v60 }
  0x48   :  { %476 = vmatprep.subr.bf16.mxu0 %v732_v61  ;;  %519 = vmatprep.subr.bf16.mxu1 %v734_v62 }
  0x4b   :  { %477 = vmatpush2.bf16.msra.mxu0 %v736_v63  ;;  %520 = vmatpush2.bf16.msra.mxu1 %v737_v0 }
  0x4e   :  { %479 = vmatmul.mubr.bf16.vlgmr.msra.gmra.mxu0 %v738_v1  ;;  %522 = vmatmul.mubr.bf16.vlgmr.msra.gmra.mxu1 %v738_v1 }
 0x10e   :  { %v480_v13 = vpop.f32.mrf.mxu0  ;;  %v523_v14 = vpop.f32.mrf.mxu1 }
 0x10f   :  { %v481_v17 = vadd.f32 %v480_v13, %v99_v9  ;;  %v524_v18 = vadd.f32 %v523_v14, %v107_v10 }
 0x110   :  { %v482_v15 = vpop.f32.mrf.mxu0  ;;  %v525_v16 = vpop.f32.mrf.mxu1 }
 0x111   :  { %v483_v19 = vadd.f32 %v482_v15, %v103_v11  ;;  %v526_v20 = vadd.f32 %v525_v16, %v111_v12 }
 0x112   :  { %v484_v21 = vpop.f32.mrf.mxu0  ;;  %v527_v22 = vpop.f32.mrf.mxu1 }
 0x113   :  { %v635_v23 = vpack.c.bf16 %v483_v19, %v481_v17  ;;  %v636_v24 = vpack.c.bf16 %v526_v20, %v524_v18  ;;  %v485_v27 = vadd.f32 %v484_v21, %v99_v9  ;;  %v528_v28 = vadd.f32 %v527_v22, %v107_v10 }
 0x114   :  { %v486_v25 = vpop.f32.mrf.mxu0  ;;  %v529_v26 = vpop.f32.mrf.mxu1 }
 0x115   :  { %556 = vst [vmem:[%s813_s3] sm:$0xff] %v635_v23  ;;  %557 = vst [vmem:[%s813_s3 + $0x8] sm:$0xff] %v636_v24  ;;  %v487_v29 = vadd.f32 %v486_v25, %v103_v11  ;;  %v530_v30 = vadd.f32 %v529_v26, %v111_v12 }
 0x117   :  { %v637_v31 = vpack.c.bf16 %v487_v29, %v485_v27  ;;  %v638_v32 = vpack.c.bf16 %v530_v30, %v528_v28 }
 0x119   :  { %558 = vst [vmem:[%s813_s3 + $0x10] sm:$0xff] %v637_v31  ;;  %559 = vst [vmem:[%s813_s3 + $0x18] sm:$0xff] %v638_v32 }
 0x11a   :  { %564 = vsyncpa [#allocation3], 1 }

// kernel: word_lstm_forward.6
= control target key start
LH: loop header
LB: loop body
LE: loop exit
PB: predicated region body
PF: predicated region fallthrough
CT: control target
= control target key end

     0   :  { %v3169_v1 = vmov 0   ;;  %v3170_v38 = vmov 1983009808   ;;  %v318_v40 = vlaneseq  ;;  %s3882_s1 = inlined_call_operand.vmem [shape: bf16[128,512], index: 1, kind: input, shape index: {}]   ;;  %s3883_s2 = inlined_call_operand.vmem [shape: f32[2,128], index: 2, kind: input, shape index: {}]   ;;  %s3884_s3 = inlined_call_operand.vmem [shape: f32[2,128], index: 3, kind: input, shape index: {}]   ;;  %s3885_s0 = inlined_call_operand.vmem [shape: bf16[8,2,512], index: 0, kind: input, shape index: {}]   ;;  %s3886_s4 = inlined_call_operand.vmem [shape: bf16[8,2,128], index: 4, kind: output, shape index: {0}]   ;;  %s3887_s6 = inlined_call_operand.vmem [shape: f32[2,128], index: 6, kind: output, shape index: {2}]   ;;  %s3888_s5 = inlined_call_operand.vmem [shape: f32[2,128], index: 5, kind: output, shape index: {1}]  }
   0x1   :  { %v3209_v0 = vld [vmem:[%s3882_s1 + $0xe4] ss:$16 sps:$4 sm:$0xff]   ;;  %259 = vmatprep.mubr.bf16.mxu0 %v3169_v1  ;;  %300 = vmatprep.mubr.bf16.mxu1 %v3169_v1  ;;  %v3216_v2 = vld [vmem:[%s3882_s1 + $0xec] ss:$16 sps:$4 sm:$0xff]   ;;  %v3222_v3 = vld [vmem:[%s3882_s1 + $0xe0] ss:$16 sps:$4 sm:$0xff]   ;;  %v316_v39 = vunpack.c.l.s4 %v3170_v38 }
   0x2   :  { %227 = vmatprep.subr.bf16.mxu0 %v3209_v0  ;;  %v3227_v4 = vld [vmem:[%s3882_s1 + $0xe8] ss:$16 sps:$4 sm:$0xff]   ;;  %268 = vmatprep.subr.bf16.mxu1 %v3216_v2  ;;  %v3233_v5 = vld [vmem:[%s3882_s1 + $0xc4] ss:$16 sps:$4 sm:$0xff]   ;;  %v3240_v6 = vld [vmem:[%s3882_s1 + $0xcc] ss:$16 sps:$4 sm:$0xff]  }
   0x3   :  { %228 = vmatpush1.bf16.msra.mxu0 %v3222_v3  ;;  %269 = vmatpush1.bf16.msra.mxu1 %v3227_v4  ;;  %v3245_v7 = vld [vmem:[%s3882_s1 + $0xc0] ss:$16 sps:$4 sm:$0xff]   ;;  %v3251_v8 = vld [vmem:[%s3882_s1 + $0xc8] ss:$16 sps:$4 sm:$0xff]   ;;  %v3257_v9 = vld [vmem:[%s3882_s1 + $0xa4] ss:$16 sps:$4 sm:$0xff]   ;;  %v317_v41 = vunpack.c.0.s8 %v316_v39 }
   0x4   :  { %229 = vmatprep.subr.bf16.mxu0 %v3233_v5  ;;  %270 = vmatprep.subr.bf16.mxu1 %v3240_v6  ;;  %v3262_v10 = vld [vmem:[%s3882_s1 + $0xac] ss:$16 sps:$4 sm:$0xff]   ;;  %v3267_v11 = vld [vmem:[%s3882_s1 + $0xa0] ss:$16 sps:$4 sm:$0xff]   ;;  %v3272_v12 = vld [vmem:[%s3882_s1 + $0xa8] ss:$16 sps:$4 sm:$0xff]  }
   0x5   :  { %v3279_v13 = vld [vmem:[%s3882_s1 + $0x84] ss:$16 sps:$4 sm:$0xff]   ;;  %v3286_v14 = vld [vmem:[%s3882_s1 + $0x8c] ss:$16 sps:$4 sm:$0xff]   ;;  %v3291_v15 = vld [vmem:[%s3882_s1 + $0x80] ss:$16 sps:$4 sm:$0xff]  }
   0x6   :  { %v3298_v16 = vld [vmem:[%s3882_s1 + $0x88] ss:$16 sps:$4 sm:$0xff]   ;;  %v3303_v17 = vld [vmem:[%s3882_s1 + $0x64] ss:$16 sps:$4 sm:$0xff]   ;;  %v3310_v18 = vld [vmem:[%s3882_s1 + $0x6c] ss:$16 sps:$4 sm:$0xff]  }
   0x7   :  { %230 = vmatpush1.bf16.msra.mxu0 %v3245_v7  ;;  %271 = vmatpush1.bf16.msra.mxu1 %v3251_v8  ;;  %v3315_v19 = vld [vmem:[%s3882_s1 + $0x60] ss:$16 sps:$4 sm:$0xff]   ;;  %v3320_v20 = vld [vmem:[%s3882_s1 + $0x68] ss:$16 sps:$4 sm:$0xff]   ;;  %v3327_v21 = vld [vmem:[%s3882_s1 + $0x44] ss:$16 sps:$4 sm:$0xff]  }
   0x8   :  { %231 = vmatprep.subr.bf16.mxu0 %v3257_v9  ;;  %272 = vmatprep.subr.bf16.mxu1 %v3262_v10  ;;  %v3334_v22 = vld [vmem:[%s3882_s1 + $0x4c] ss:$16 sps:$4 sm:$0xff]   ;;  %v3339_v23 = vld [vmem:[%s3882_s1 + $0x40] ss:$16 sps:$4 sm:$0xff]   ;;  %v3346_v24 = vld [vmem:[%s3882_s1 + $0x48] ss:$16 sps:$4 sm:$0xff]  }
   0x9   :  { %v3351_v25 = vld [vmem:[%s3882_s1 + $0x24] ss:$16 sps:$4 sm:$0xff]   ;;  %v3358_v26 = vld [vmem:[%s3882_s1 + $0x2c] ss:$16 sps:$4 sm:$0xff]   ;;  %v29_v27 = vld [vmem:[%s3883_s2] sm:$0x3] }
   0xa   :  { %v3366_v28 = vld [vmem:[%s3882_s1 + $0x20] ss:$16 sps:$4 sm:$0xff]   ;;  %v3371_v29 = vld [vmem:[%s3882_s1 + $0x28] ss:$16 sps:$4 sm:$0xff]   ;;  %v30_v30 = vpack.c.bf16 %v29_v27, %v29_v27  ;;  %v3376_v31 = vld [vmem:[%s3882_s1 + $0x4] ss:$16 sps:$4 sm:$0xff]  }
   0xb   :  { %232 = vmatpush1.bf16.msra.mxu0 %v3267_v11  ;;  %273 = vmatpush1.bf16.msra.mxu1 %v3272_v12  ;;  %v3381_v32 = vld [vmem:[%s3882_s1 + $0xc] ss:$16 sps:$4 sm:$0xff]   ;;  %v3390_v33 = vld [vmem:[%s3882_s1] ss:$16 sps:$4 sm:$0xff]   ;;  %v3395_v34 = vld [vmem:[%s3882_s1 + $0x8] ss:$16 sps:$4 sm:$0xff]  }
   0xc   :  { %233 = vmatprep.subr.bf16.mxu0 %v3279_v13  ;;  %274 = vmatprep.subr.bf16.mxu1 %v3286_v14  ;;  %31 = vst [vmem:[#allocation4] sm:$0x1] %v30_v30  ;;  %v25_v36 = vld [vmem:[%s3883_s2] sm:$0x3]  ;;  %v319_v42 = vshrl.u32 %v318_v40, 7 }
   0xd   :  { %26 = vst [vmem:[#allocation2] sm:$0x3] %v25_v36  ;;  %v27_v37 = vld [vmem:[%s3884_s3] sm:$0x3] }
   0xe   :  { %28 = vst [vmem:[#allocation3] sm:$0x3] %v27_v37  ;;  %v3445_v45 = vsub.s32 %v317_v41, %v319_v42  ;;  %v32_v47 = vld [vmem:[%s3885_s0] sm:$0xf] }
   0xf   :  { %234 = vmatpush1.bf16.msra.mxu0 %v3291_v15  ;;  %275 = vmatpush1.bf16.msra.mxu1 %v3298_v16  ;;  %v33_v54 = vunpack.c.l.bf16 %v32_v47 }
  0x10   :  { %235 = vmatprep.subr.bf16.mxu0 %v3303_v17  ;;  %276 = vmatprep.subr.bf16.mxu1 %v3310_v18 }
  0x13   :  { %236 = vmatpush1.bf16.msra.mxu0 %v3315_v19  ;;  %277 = vmatpush1.bf16.msra.mxu1 %v3320_v20  ;;  %v34_v35 = vld [vmem:[#allocation4] sm:$0x1] }
  0x14   :  { %237 = vmatprep.subr.bf16.mxu0 %v3327_v21  ;;  %278 = vmatprep.subr.bf16.mxu1 %v3334_v22 }
  0x15   :  { %v352_v40 = vld [vmem:[#allocation3] sm:$0x3] }
  0x17   :  { %238 = vmatpush1.bf16.msra.mxu0 %v3339_v23  ;;  %279 = vmatpush1.bf16.msra.mxu1 %v3346_v24 }
  0x18   :  { %239 = vmatprep.subr.bf16.mxu0 %v3351_v25  ;;  %280 = vmatprep.subr.bf16.mxu1 %v3358_v26 }
  0x1b   :  { %240 = vmatpush1.bf16.msra.mxu0 %v3366_v28  ;;  %281 = vmatpush1.bf16.msra.mxu1 %v3371_v29 }
  0x1c   :  { %241 = vmatprep.subr.bf16.mxu0 %v3376_v31  ;;  %282 = vmatprep.subr.bf16.mxu1 %v3381_v32 }
  0x1f   :  { %242 = vmatpush1.bf16.msra.mxu0 %v3390_v33  ;;  %283 = vmatpush1.bf16.msra.mxu1 %v3395_v34 }
  0x20   :  { %560 = vmatprep.subr.bf16.mxu0 %v3209_v0  ;;  %601 = vmatprep.subr.bf16.mxu1 %v3216_v2 }
  0x22   :  { %260 = vmatmul.mubr.bf16.vlgmr.msra.gmra.mxu0 %v34_v35  ;;  %301 = vmatmul.mubr.bf16.vlgmr.msra.gmra.mxu1 %v34_v35 }
  0x23   :  { %561 = vmatpush1.bf16.msra.mxu0 %v3222_v3  ;;  %602 = vmatpush1.bf16.msra.mxu1 %v3227_v4 }
  0x24   :  { %562 = vmatprep.subr.bf16.mxu0 %v3233_v5  ;;  %603 = vmatprep.subr.bf16.mxu1 %v3240_v6 }
  0x25   :  { %592 = vmatprep.mubr.bf16.mxu0 %v3169_v1  ;;  %633 = vmatprep.mubr.bf16.mxu1 %v3169_v1 }
  0x27   :  { %563 = vmatpush1.bf16.msra.mxu0 %v3245_v7  ;;  %604 = vmatpush1.bf16.msra.mxu1 %v3251_v8 }
  0x28   :  { %564 = vmatprep.subr.bf16.mxu0 %v3257_v9  ;;  %605 = vmatprep.subr.bf16.mxu1 %v3262_v10 }
  0x2b   :  { %565 = vmatpush1.bf16.msra.mxu0 %v3267_v11  ;;  %606 = vmatpush1.bf16.msra.mxu1 %v3272_v12 }
  0x2c   :  { %566 = vmatprep.subr.bf16.mxu0 %v3279_v13  ;;  %607 = vmatprep.subr.bf16.mxu1 %v3286_v14 }
  0x2f   :  { %567 = vmatpush1.bf16.msra.mxu0 %v3291_v15  ;;  %608 = vmatpush1.bf16.msra.mxu1 %v3298_v16 }
  0x30   :  { %568 = vmatprep.subr.bf16.mxu0 %v3303_v17  ;;  %609 = vmatprep.subr.bf16.mxu1 %v3310_v18 }
  0x33   :  { %569 = vmatpush1.bf16.msra.mxu0 %v3315_v19  ;;  %610 = vmatpush1.bf16.msra.mxu1 %v3320_v20 }
  0x34   :  { %570 = vmatprep.subr.bf16.mxu0 %v3327_v21  ;;  %611 = vmatprep.subr.bf16.mxu1 %v3334_v22 }
  0x37   :  { %571 = vmatpush1.bf16.msra.mxu0 %v3339_v23  ;;  %612 = vmatpush1.bf16.msra.mxu1 %v3346_v24 }
  0x38   :  { %572 = vmatprep.subr.bf16.mxu0 %v3351_v25  ;;  %613 = vmatprep.subr.bf16.mxu1 %v3358_v26 }
  0x3b   :  { %573 = vmatpush1.bf16.msra.mxu0 %v3366_v28  ;;  %614 = vmatpush1.bf16.msra.mxu1 %v3371_v29 }
  0x3c   :  { %574 = vmatprep.subr.bf16.mxu0 %v3376_v31  ;;  %615 = vmatprep.subr.bf16.mxu1 %v3381_v32 }
  0x3f   :  { %575 = vmatpush1.bf16.msra.mxu0 %v3390_v33  ;;  %616 = vmatpush1.bf16.msra.mxu1 %v3395_v34 }
  0x40   :  { %894 = vmatprep.subr.bf16.mxu0 %v3209_v0  ;;  %935 = vmatprep.subr.bf16.mxu1 %v3216_v2 }
  0xe2   :  { %v261_v43 = vpop.f32.mrf.mxu0  ;;  %v302_v44 = vpop.f32.mrf.mxu1 }
  0xe4   :  { %v263_v46 = vpop.f32.mrf.mxu0  ;;  %v304_v48 = vpop.f32.mrf.mxu1 }
  0xe5   :  { %v313_v49 = vcombine.low %v261_v43, %v263_v46  ;;  %v314_v50 = vcombine.low %v302_v44, %v304_v48 }
  0xe6   :  { %v265_v51 = vpop.f32.mrf.mxu0  ;;  %v306_v52 = vpop.f32.mrf.mxu1 }
  0xe7   :  { %v321_v53 = vrot.slane %v313_v49, %v3445_v45  ;;  %v328_v55 = vrot.slane %v314_v50, %v3445_v45 }
  0xe8   :  { %v266_v56 = vpop.f32.mrf.mxu0  ;;  %v307_v57 = vpop.f32.mrf.mxu1 }
  0xe9   :  { %v329_v58 = vcombine.low %v321_v53, %v328_v55 }
  0xeb   :  { %v331_v59 = vadd.f32 %v329_v58, %v33_v54  ;;  %v3492_v58 = vld [vmem:[%s3885_s0 + $0x4] sm:$0xff]  }
  0xed   :  { %v332_v60 = vmul.f32 0.5, %v331_v59  ;;  %v337_v61 = vrot.slane %v331_v59, 2  ;;  %v343_v63 = vrot.slane %v331_v59, 4  ;;  %v346_v27 = vrot.slane %v331_v59, 6 }
  0xef   :  { %3089 = vtanh.f32 %v332_v60  ;;  %v339_v62 = vmul.f32 0.5, %v337_v61  ;;  %v348_v30 = vmul.f32 0.5, %v346_v27 }
  0xf1   :  { %3091 = vtanh.f32 %v339_v62 }
  0xf2   :  { %3093 = vtanh.f32 %v343_v63 }
  0xf3   :  { %3095 = vtanh.f32 %v348_v30  ;;  %v366_v30 = vunpack.c.l.bf16 %v3492_v58 }
  0xfc   :  { %v3090_v35 = vpop.eup %3089 }
  0xfd   :  { %v334_v36 = vadd.f32 1.0, %v3090_v35 }
  0xfe   :  { %v3092_v37 = vpop.eup %3091 }
  0xff   :  { %v335_v38 = vmul.f32 0.5, %v334_v36  ;;  %v341_v39 = vadd.f32 1.0, %v3092_v37  ;;  %v3094_v42 = vpop.eup %3093 }
 0x100   :  { %v3096_v47 = vpop.eup %3095 }
 0x101   :  { %v342_v41 = vmul.f32 0.5, %v341_v39  ;;  %v354_v44 = vmul.f32 %v3094_v42, %v335_v38  ;;  %v350_v48 = vadd.f32 1.0, %v3096_v47 }
 0x103   :  { %v353_v43 = vmul.f32 %v352_v40, %v342_v41  ;;  %v351_v49 = vmul.f32 0.5, %v350_v48 }
 0x105   :  { %v355_v46 = vadd.f32 %v354_v44, %v353_v43 }
 0x107   :  { %3097 = vtanh.f32 %v355_v46  ;;  %358 = vst [vmem:[#allocation3] sm:$0x3] %v355_v46 }
 0x114   :  { %v3098_v50 = vpop.eup %3097 }
 0x115   :  { %v357_v51 = vmul.f32 %v3098_v50, %v351_v49 }
 0x117   :  { %359 = vst [vmem:[#allocation2] sm:$0x3] %v357_v51  ;;  %v360_v52 = vpack.c.bf16 %v357_v51, %v357_v51 }
 0x119   :  { %361 = vst [vmem:[#allocation4] sm:$0x1] %v360_v52  ;;  %v685_v52 = vld [vmem:[#allocation3] sm:$0x3] }
 0x120   :  { %v367_v53 = vld [vmem:[#allocation4] sm:$0x1] }
 0x121   :  { %v362_v54 = vld [vmem:[#allocation4] sm:$0x1]  ;;  %593 = vmatmul.mubr.bf16.vlgmr.msra.gmra.mxu0 %v367_v53  ;;  %634 = vmatmul.mubr.bf16.vlgmr.msra.gmra.mxu1 %v367_v53 }
 0x122   :  { %363 = vst [vmem:[%s3886_s4] sm:$0x1] %v362_v54  ;;  %895 = vmatpush1.bf16.msra.mxu0 %v3222_v3  ;;  %936 = vmatpush1.bf16.msra.mxu1 %v3227_v4 }
 0x123   :  { %896 = vmatprep.subr.bf16.mxu0 %v3233_v5  ;;  %937 = vmatprep.subr.bf16.mxu1 %v3240_v6 }
 0x124   :  { %926 = vmatprep.mubr.bf16.mxu0 %v3169_v1  ;;  %967 = vmatprep.mubr.bf16.mxu1 %v3169_v1 }
 0x126   :  { %897 = vmatpush1.bf16.msra.mxu0 %v3245_v7  ;;  %938 = vmatpush1.bf16.msra.mxu1 %v3251_v8 }
 0x127   :  { %898 = vmatprep.subr.bf16.mxu0 %v3257_v9  ;;  %939 = vmatprep.subr.bf16.mxu1 %v3262_v10 }
 0x12a   :  { %899 = vmatpush1.bf16.msra.mxu0 %v3267_v11  ;;  %940 = vmatpush1.bf16.msra.mxu1 %v3272_v12 }
 0x12b   :  { %900 = vmatprep.subr.bf16.mxu0 %v3279_v13  ;;  %941 = vmatprep.subr.bf16.mxu1 %v3286_v14 }
 0x12e   :  { %901 = vmatpush1.bf16.msra.mxu0 %v3291_v15  ;;  %942 = vmatpush1.bf16.msra.mxu1 %v3298_v16 }
 0x12f   :  { %902 = vmatprep.subr.bf16.mxu0 %v3303_v17  ;;  %943 = vmatprep.subr.bf16.mxu1 %v3310_v18 }
 0x132   :  { %903 = vmatpush1.bf16.msra.mxu0 %v3315_v19  ;;  %944 = vmatpush1.bf16.msra.mxu1 %v3320_v20 }
 0x133   :  { %904 = vmatprep.subr.bf16.mxu0 %v3327_v21  ;;  %945 = vmatprep.subr.bf16.mxu1 %v3334_v22 }
 0x136   :  { %905 = vmatpush1.bf16.msra.mxu0 %v3339_v23  ;;  %946 = vmatpush1.bf16.msra.mxu1 %v3346_v24 }
 0x137   :  { %906 = vmatprep.subr.bf16.mxu0 %v3351_v25  ;;  %947 = vmatprep.subr.bf16.mxu1 %v3358_v26 }
 0x13a   :  { %907 = vmatpush1.bf16.msra.mxu0 %v3366_v28  ;;  %948 = vmatpush1.bf16.msra.mxu1 %v3371_v29 }
 0x13b   :  { %908 = vmatprep.subr.bf16.mxu0 %v3376_v31  ;;  %949 = vmatprep.subr.bf16.mxu1 %v3381_v32 }
 0x13e   :  { %909 = vmatpush1.bf16.msra.mxu0 %v3390_v33  ;;  %950 = vmatpush1.bf16.msra.mxu1 %v3395_v34 }
 0x13f   :  { %1228 = vmatprep.subr.bf16.mxu0 %v3209_v0  ;;  %1269 = vmatprep.subr.bf16.mxu1 %v3216_v2 }
 0x1e1   :  { %v594_v55 = vpop.f32.mrf.mxu0  ;;  %v635_v56 = vpop.f32.mrf.mxu1 }
 0x1e3   :  { %v596_v57 = vpop.f32.mrf.mxu0  ;;  %v637_v59 = vpop.f32.mrf.mxu1 }
 0x1e4   :  { %v646_v60 = vcombine.low %v594_v55, %v596_v57  ;;  %v647_v61 = vcombine.low %v635_v56, %v637_v59 }
 0x1e5   :  { %v598_v62 = vpop.f32.mrf.mxu0  ;;  %v639_v63 = vpop.f32.mrf.mxu1 }
 0x1e6   :  { %v654_v27 = vrot.slane %v646_v60, %v3445_v45  ;;  %v661_v0 = vrot.slane %v647_v61, %v3445_v45 }
 0x1e7   :  { %v599_v2 = vpop.f32.mrf.mxu0  ;;  %v640_v35 = vpop.f32.mrf.mxu1 }
 0x1e8   :  { %v662_v36 = vcombine.low %v654_v27, %v661_v0 }
 0x1ea   :  { %v664_v37 = vadd.f32 %v662_v36, %v366_v30 }
 0x1ec   :  { %v665_v38 = vmul.f32 0.5, %v664_v37  ;;  %v670_v39 = vrot.slane %v664_v37, 2  ;;  %v676_v41 = vrot.slane %v664_v37, 4  ;;  %v679_v42 = vrot.slane %v664_v37, 6 }
 0x1ee   :  { %3099 = vtanh.f32 %v665_v38  ;;  %v672_v40 = vmul.f32 0.5, %v670_v39  ;;  %v681_v43 = vmul.f32 0.5, %v679_v42  ;;  %v3548_v42 = vld [vmem:[%s3882_s1 + $0xec] ss:$16 sps:$4 sm:$0xff]  }
 0x1f0   :  { %3101 = vtanh.f32 %v672_v40 }
 0x1f1   :  { %3103 = vtanh.f32 %v676_v41  ;;  %v3543_v41 = vld [vmem:[%s3882_s1 + $0xe4] ss:$16 sps:$4 sm:$0xff]  }
 0x1f2   :  { %3105 = vtanh.f32 %v681_v43  ;;  %v3553_v43 = vld [vmem:[%s3882_s1 + $0xe0] ss:$16 sps:$4 sm:$0xff]  }
 0x1fb   :  { %v3100_v44 = vpop.eup %3099 }
 0x1fc   :  { %v667_v46 = vadd.f32 1.0, %v3100_v44  ;;  %v3558_v44 = vld [vmem:[%s3882_s1 + $0xe8] ss:$16 sps:$4 sm:$0xff]  }
 0x1fd   :  { %v3102_v47 = vpop.eup %3101 }
 0x1fe   :  { %v668_v48 = vmul.f32 0.5, %v667_v46  ;;  %v674_v49 = vadd.f32 1.0, %v3102_v47  ;;  %v3104_v51 = vpop.eup %3103  ;;  %v3567_v46 = vld [vmem:[%s3882_s1 + $0xc4] ss:$16 sps:$4 sm:$0xff]   ;;  %v3572_v47 = vld [vmem:[%s3882_s1 + $0xcc] ss:$16 sps:$4 sm:$0xff]  }
 0x1ff   :  { %v3106_v56 = vpop.eup %3105 }
 0x200   :  { %v675_v50 = vmul.f32 0.5, %v674_v49  ;;  %v687_v54 = vmul.f32 %v3104_v51, %v668_v48  ;;  %v683_v57 = vadd.f32 1.0, %v3106_v56  ;;  %v3577_v48 = vld [vmem:[%s3882_s1 + $0xc0] ss:$16 sps:$4 sm:$0xff]   ;;  %v3582_v49 = vld [vmem:[%s3882_s1 + $0xc8] ss:$16 sps:$4 sm:$0xff]  }
 0x201   :  { %v3596_v51 = vld [vmem:[%s3882_s1 + $0xac] ss:$16 sps:$4 sm:$0xff]   ;;  %v3625_v56 = vld [vmem:[%s3882_s1 + $0x80] ss:$16 sps:$4 sm:$0xff]  }
 0x202   :  { %v686_v53 = vmul.f32 %v685_v52, %v675_v50  ;;  %v684_v59 = vmul.f32 0.5, %v683_v57  ;;  %v3591_v50 = vld [vmem:[%s3882_s1 + $0xa4] ss:$16 sps:$4 sm:$0xff]   ;;  %v3601_v52 = vld [vmem:[%s3882_s1 + $0xa0] ss:$16 sps:$4 sm:$0xff]  }
 0x203   :  { %v3630_v57 = vld [vmem:[%s3882_s1 + $0x88] ss:$16 sps:$4 sm:$0xff]  }
 0x204   :  { %v688_v55 = vadd.f32 %v687_v54, %v686_v53  ;;  %v3606_v53 = vld [vmem:[%s3882_s1 + $0xa8] ss:$16 sps:$4 sm:$0xff]   ;;  %v3615_v54 = vld [vmem:[%s3882_s1 + $0x84] ss:$16 sps:$4 sm:$0xff]  }
 0x206   :  { %3107 = vtanh.f32 %v688_v55  ;;  %691 = vst [vmem:[#allocation3] sm:$0x3] %v688_v55  ;;  %v3620_v55 = vld [vmem:[%s3882_s1 + $0x8c] ss:$16 sps:$4 sm:$0xff]  }
 0x213   :  { %v3108_v60 = vpop.eup %3107 }
 0x214   :  { %v690_v61 = vmul.f32 %v3108_v60, %v684_v59  ;;  %v3639_v59 = vld [vmem:[%s3882_s1 + $0x64] ss:$16 sps:$4 sm:$0xff]   ;;  %v3644_v60 = vld [vmem:[%s3882_s1 + $0x6c] ss:$16 sps:$4 sm:$0xff]  }
 0x216   :  { %692 = vst [vmem:[#allocation2] sm:$0x3] %v690_v61  ;;  %v693_v62 = vpack.c.bf16 %v690_v61, %v690_v61  ;;  %v3649_v61 = vld [vmem:[%s3882_s1 + $0x60] ss:$16 sps:$4 sm:$0xff]  }
 0x218   :  { %694 = vst [vmem:[#allocation4] sm:$0x1] %v693_v62  ;;  %v3654_v62 = vld [vmem:[%s3882_s1 + $0x68] ss:$16 sps:$4 sm:$0xff]  }
 0x21f   :  { %v701_v63 = vld [vmem:[#allocation4] sm:$0x1] }
 0x220   :  { %v695_v27 = vld [vmem:[#allocation4] sm:$0x1]  ;;  %927 = vmatmul.mubr.bf16.vlgmr.msra.gmra.mxu0 %v701_v63  ;;  %968 = vmatmul.mubr.bf16.vlgmr.msra.gmra.mxu1 %v701_v63 }
 0x221   :  { %2786 = vst [vmem:[%s3886_s4 + $0x1] sm:$0x1] %v695_v27  ;;  %1229 = vmatpush1.bf16.msra.mxu0 %v3222_v3  ;;  %1270 = vmatpush1.bf16.msra.mxu1 %v3227_v4  ;;  %v3663_v63 = vld [vmem:[%s3882_s1 + $0x44] ss:$16 sps:$4 sm:$0xff]   ;;  %v3668_v27 = vld [vmem:[%s3882_s1 + $0x4c] ss:$16 sps:$4 sm:$0xff]  }
 0x222   :  { %1230 = vmatprep.subr.bf16.mxu0 %v3233_v5  ;;  %1271 = vmatprep.subr.bf16.mxu1 %v3240_v6 }
 0x223   :  { %1260 = vmatprep.mubr.bf16.mxu0 %v3169_v1  ;;  %1301 = vmatprep.mubr.bf16.mxu1 %v3169_v1 }
 0x225   :  { %1231 = vmatpush1.bf16.msra.mxu0 %v3245_v7  ;;  %1272 = vmatpush1.bf16.msra.mxu1 %v3251_v8 }
 0x226   :  { %1232 = vmatprep.subr.bf16.mxu0 %v3257_v9  ;;  %1273 = vmatprep.subr.bf16.mxu1 %v3262_v10 }
 0x229   :  { %1233 = vmatpush1.bf16.msra.mxu0 %v3267_v11  ;;  %1274 = vmatpush1.bf16.msra.mxu1 %v3272_v12  ;;  %v700_v12 = vunpack.c.h.bf16 %v3492_v58 }
 0x22a   :  { %1234 = vmatprep.subr.bf16.mxu0 %v3279_v13  ;;  %1275 = vmatprep.subr.bf16.mxu1 %v3286_v14 }
 0x22d   :  { %1235 = vmatpush1.bf16.msra.mxu0 %v3291_v15  ;;  %1276 = vmatpush1.bf16.msra.mxu1 %v3298_v16 }
 0x22e   :  { %1236 = vmatprep.subr.bf16.mxu0 %v3303_v17  ;;  %1277 = vmatprep.subr.bf16.mxu1 %v3310_v18 }
 0x231   :  { %1237 = vmatpush1.bf16.msra.mxu0 %v3315_v19  ;;  %1278 = vmatpush1.bf16.msra.mxu1 %v3320_v20 }
 0x232   :  { %1238 = vmatprep.subr.bf16.mxu0 %v3327_v21  ;;  %1279 = vmatprep.subr.bf16.mxu1 %v3334_v22 }
 0x235   :  { %1239 = vmatpush1.bf16.msra.mxu0 %v3339_v23  ;;  %1280 = vmatpush1.bf16.msra.mxu1 %v3346_v24 }
 0x236   :  { %1240 = vmatprep.subr.bf16.mxu0 %v3351_v25  ;;  %1281 = vmatprep.subr.bf16.mxu1 %v3358_v26 }
 0x239   :  { %1241 = vmatpush1.bf16.msra.mxu0 %v3366_v28  ;;  %1282 = vmatpush1.bf16.msra.mxu1 %v3371_v29 }
 0x23a   :  { %1242 = vmatprep.subr.bf16.mxu0 %v3376_v31  ;;  %1283 = vmatprep.subr.bf16.mxu1 %v3381_v32 }
 0x23d   :  { %1243 = vmatpush1.bf16.msra.mxu0 %v3390_v33  ;;  %1284 = vmatpush1.bf16.msra.mxu1 %v3395_v34  ;;  %v1019_v33 = vld [vmem:[#allocation3] sm:$0x3] }
 0x23e   :  { %1562 = vmatprep.subr.bf16.mxu0 %v3543_v41  ;;  %1603 = vmatprep.subr.bf16.mxu1 %v3548_v42 }
 0x2e0   :  { %v928_v3 = vpop.f32.mrf.mxu0  ;;  %v969_v4 = vpop.f32.mrf.mxu1 }
 0x2e2   :  { %v930_v5 = vpop.f32.mrf.mxu0  ;;  %v971_v6 = vpop.f32.mrf.mxu1 }
 0x2e3   :  { %v980_v7 = vcombine.low %v928_v3, %v930_v5  ;;  %v981_v8 = vcombine.low %v969_v4, %v971_v6  ;;  %v3673_v3 = vld [vmem:[%s3882_s1 + $0x40] ss:$16 sps:$4 sm:$0xff]   ;;  %v3678_v4 = vld [vmem:[%s3882_s1 + $0x48] ss:$16 sps:$4 sm:$0xff]   ;;  %v3692_v6 = vld [vmem:[%s3882_s1 + $0x24] ss:$16 sps:$4 sm:$0xff]  }
 0x2e4   :  { %v932_v9 = vpop.f32.mrf.mxu0  ;;  %v973_v10 = vpop.f32.mrf.mxu1  ;;  %v3687_v5 = vld [vmem:[%s3882_s1 + $0x20] ss:$16 sps:$4 sm:$0xff]  }
 0x2e5   :  { %v988_v11 = vrot.slane %v980_v7, %v3445_v45  ;;  %v995_v13 = vrot.slane %v981_v8, %v3445_v45  ;;  %v3697_v7 = vld [vmem:[%s3882_s1 + $0x28] ss:$16 sps:$4 sm:$0xff]   ;;  %v3702_v8 = vld [vmem:[%s3882_s1 + $0x2c] ss:$16 sps:$4 sm:$0xff]   ;;  %v3707_v9 = vld [vmem:[%s3882_s1 + $0x4] ss:$16 sps:$4 sm:$0xff]  }
 0x2e6   :  { %v933_v14 = vpop.f32.mrf.mxu0  ;;  %v974_v15 = vpop.f32.mrf.mxu1  ;;  %v3713_v10 = vld [vmem:[%s3882_s1 + $0xc] ss:$16 sps:$4 sm:$0xff]  }
 0x2e7   :  { %v996_v16 = vcombine.low %v988_v11, %v995_v13  ;;  %v3721_v11 = vld [vmem:[%s3882_s1] ss:$16 sps:$4 sm:$0xff]  }
 0x2e9   :  { %v998_v17 = vadd.f32 %v996_v16, %v700_v12  ;;  %v3726_v12 = vld [vmem:[%s3882_s1 + $0x8] ss:$16 sps:$4 sm:$0xff]   ;;  %v3737_v16 = vld [vmem:[%s3885_s0 + $0xc] sm:$0xff]  }
 0x2eb   :  { %v999_v18 = vmul.f32 0.5, %v998_v17  ;;  %v1004_v19 = vrot.slane %v998_v17, 2  ;;  %v1010_v21 = vrot.slane %v998_v17, 4  ;;  %v1013_v22 = vrot.slane %v998_v17, 6 }
 0x2ed   :  { %3109 = vtanh.f32 %v999_v18  ;;  %v1006_v20 = vmul.f32 0.5, %v1004_v19  ;;  %v1015_v23 = vmul.f32 0.5, %v1013_v22 }
 0x2ef   :  { %3111 = vtanh.f32 %v1006_v20 }
 0x2f0   :  { %3113 = vtanh.f32 %v1010_v21 }
 0x2f1   :  { %3115 = vtanh.f32 %v1015_v23  ;;  %v1034_v23 = vunpack.c.l.bf16 %v3737_v16 }
 0x2fa   :  { %v3110_v24 = vpop.eup %3109 }
 0x2fb   :  { %v1001_v25 = vadd.f32 1.0, %v3110_v24 }
 0x2fc   :  { %v3112_v26 = vpop.eup %3111 }
 0x2fd   :  { %v1002_v28 = vmul.f32 0.5, %v1001_v25  ;;  %v1008_v29 = vadd.f32 1.0, %v3112_v26  ;;  %v3114_v32 = vpop.eup %3113 }
 0x2fe   :  { %v3116_v0 = vpop.eup %3115 }
 0x2ff   :  { %v1009_v31 = vmul.f32 0.5, %v1008_v29  ;;  %v1021_v58 = vmul.f32 %v3114_v32, %v1002_v28  ;;  %v1017_v2 = vadd.f32 1.0, %v3116_v0 }
 0x301   :  { %v1020_v34 = vmul.f32 %v1019_v33, %v1009_v31  ;;  %v1018_v35 = vmul.f32 0.5, %v1017_v2 }
 0x303   :  { %v1022_v30 = vadd.f32 %v1021_v58, %v1020_v34 }
 0x305   :  { %3117 = vtanh.f32 %v1022_v30  ;;  %1025 = vst [vmem:[#allocation3] sm:$0x3] %v1022_v30 }
 0x312   :  { %v3118_v36 = vpop.eup %3117 }
 0x313   :  { %v1024_v37 = vmul.f32 %v3118_v36, %v1018_v35 }
 0x315   :  { %1026 = vst [vmem:[#allocation2] sm:$0x3] %v1024_v37  ;;  %v1027_v38 = vpack.c.bf16 %v1024_v37, %v1024_v37 }
 0x317   :  { %1028 = vst [vmem:[#allocation4] sm:$0x1] %v1027_v38 }
 0x31e   :  { %v1035_v39 = vld [vmem:[#allocation4] sm:$0x1] }
 0x31f   :  { %v1029_v40 = vld [vmem:[#allocation4] sm:$0x1]  ;;  %1261 = vmatmul.mubr.bf16.vlgmr.msra.gmra.mxu0 %v1035_v39  ;;  %1302 = vmatmul.mubr.bf16.vlgmr.msra.gmra.mxu1 %v1035_v39 }
 0x320   :  { %2820 = vst [vmem:[%s3886_s4 + $0x2] sm:$0x1] %v1029_v40  ;;  %1594 = vmatprep.mubr.bf16.mxu0 %v3169_v1  ;;  %1635 = vmatprep.mubr.bf16.mxu1 %v3169_v1  ;;  %v1353_v40 = vld [vmem:[#allocation3] sm:$0x3] }
 0x321   :  { %1563 = vmatpush1.bf16.msra.mxu0 %v3553_v43  ;;  %1604 = vmatpush1.bf16.msra.mxu1 %v3558_v44 }
 0x322   :  { %1564 = vmatprep.subr.bf16.mxu0 %v3567_v46  ;;  %1605 = vmatprep.subr.bf16.mxu1 %v3572_v47 }
 0x325   :  { %1565 = vmatpush1.bf16.msra.mxu0 %v3577_v48  ;;  %1606 = vmatpush1.bf16.msra.mxu1 %v3582_v49 }
 0x326   :  { %1566 = vmatprep.subr.bf16.mxu0 %v3591_v50  ;;  %1607 = vmatprep.subr.bf16.mxu1 %v3596_v51 }
 0x329   :  { %1567 = vmatpush1.bf16.msra.mxu0 %v3601_v52  ;;  %1608 = vmatpush1.bf16.msra.mxu1 %v3606_v53 }
 0x32a   :  { %1568 = vmatprep.subr.bf16.mxu0 %v3615_v54  ;;  %1609 = vmatprep.subr.bf16.mxu1 %v3620_v55 }
 0x32d   :  { %1569 = vmatpush1.bf16.msra.mxu0 %v3625_v56  ;;  %1610 = vmatpush1.bf16.msra.mxu1 %v3630_v57 }
 0x32e   :  { %1570 = vmatprep.subr.bf16.mxu0 %v3639_v59  ;;  %1611 = vmatprep.subr.bf16.mxu1 %v3644_v60 }
 0x331   :  { %1571 = vmatpush1.bf16.msra.mxu0 %v3649_v61  ;;  %1612 = vmatpush1.bf16.msra.mxu1 %v3654_v62 }
 0x332   :  { %1572 = vmatprep.subr.bf16.mxu0 %v3663_v63  ;;  %1613 = vmatprep.subr.bf16.mxu1 %v3668_v27 }
 0x335   :  { %1573 = vmatpush1.bf16.msra.mxu0 %v3673_v3  ;;  %1614 = vmatpush1.bf16.msra.mxu1 %v3678_v4 }
 0x336   :  { %1574 = vmatprep.subr.bf16.mxu0 %v3692_v6  ;;  %1615 = vmatprep.subr.bf16.mxu1 %v3702_v8 }
 0x339   :  { %1575 = vmatpush1.bf16.msra.mxu0 %v3687_v5  ;;  %1616 = vmatpush1.bf16.msra.mxu1 %v3697_v7 }
 0x33a   :  { %1576 = vmatprep.subr.bf16.mxu0 %v3707_v9  ;;  %1617 = vmatprep.subr.bf16.mxu1 %v3713_v10 }
 0x33d   :  { %1577 = vmatpush1.bf16.msra.mxu0 %v3721_v11  ;;  %1618 = vmatpush1.bf16.msra.mxu1 %v3726_v12 }
 0x33e   :  { %1896 = vmatprep.subr.bf16.mxu0 %v3543_v41  ;;  %1937 = vmatprep.subr.bf16.mxu1 %v3548_v42 }
 0x3df   :  { %v1262_v13 = vpop.f32.mrf.mxu0  ;;  %v1303_v14 = vpop.f32.mrf.mxu1 }
 0x3e1   :  { %v1264_v15 = vpop.f32.mrf.mxu0  ;;  %v1305_v17 = vpop.f32.mrf.mxu1 }
 0x3e2   :  { %v1314_v18 = vcombine.low %v1262_v13, %v1264_v15  ;;  %v1315_v19 = vcombine.low %v1303_v14, %v1305_v17 }
 0x3e3   :  { %v1266_v20 = vpop.f32.mrf.mxu0  ;;  %v1307_v21 = vpop.f32.mrf.mxu1 }
 0x3e4   :  { %v1322_v22 = vrot.slane %v1314_v18, %v3445_v45  ;;  %v1329_v24 = vrot.slane %v1315_v19, %v3445_v45 }
 0x3e5   :  { %v1267_v25 = vpop.f32.mrf.mxu0  ;;  %v1308_v26 = vpop.f32.mrf.mxu1 }
 0x3e6   :  { %v1330_v28 = vcombine.low %v1322_v22, %v1329_v24 }
 0x3e8   :  { %v1332_v29 = vadd.f32 %v1330_v28, %v1034_v23 }
 0x3ea   :  { %v1333_v31 = vmul.f32 0.5, %v1332_v29  ;;  %v1338_v32 = vrot.slane %v1332_v29, 2  ;;  %v1344_v34 = vrot.slane %v1332_v29, 4  ;;  %v1347_v58 = vrot.slane %v1332_v29, 6 }
 0x3ec   :  { %3119 = vtanh.f32 %v1333_v31  ;;  %v1340_v33 = vmul.f32 0.5, %v1338_v32  ;;  %v1349_v30 = vmul.f32 0.5, %v1347_v58 }
 0x3ee   :  { %3121 = vtanh.f32 %v1340_v33 }
 0x3ef   :  { %3123 = vtanh.f32 %v1344_v34 }
 0x3f0   :  { %3125 = vtanh.f32 %v1349_v30  ;;  %v1368_v30 = vunpack.c.h.bf16 %v3737_v16 }
 0x3f9   :  { %v3120_v0 = vpop.eup %3119 }
 0x3fa   :  { %v1335_v2 = vadd.f32 1.0, %v3120_v0 }
 0x3fb   :  { %v3122_v35 = vpop.eup %3121 }
 0x3fc   :  { %v1336_v36 = vmul.f32 0.5, %v1335_v2  ;;  %v1342_v37 = vadd.f32 1.0, %v3122_v35  ;;  %v3124_v39 = vpop.eup %3123 }
 0x3fd   :  { %v3126_v17 = vpop.eup %3125 }
 0x3fe   :  { %v1343_v38 = vmul.f32 0.5, %v1342_v37  ;;  %v1355_v14 = vmul.f32 %v3124_v39, %v1336_v36  ;;  %v1351_v18 = vadd.f32 1.0, %v3126_v17 }
 0x400   :  { %v1354_v13 = vmul.f32 %v1353_v40, %v1343_v38  ;;  %v1352_v19 = vmul.f32 0.5, %v1351_v18 }
 0x402   :  { %v1356_v15 = vadd.f32 %v1355_v14, %v1354_v13 }
 0x404   :  { %3127 = vtanh.f32 %v1356_v15  ;;  %1359 = vst [vmem:[#allocation3] sm:$0x3] %v1356_v15 }
 0x411   :  { %v3128_v20 = vpop.eup %3127 }
 0x412   :  { %v1358_v21 = vmul.f32 %v3128_v20, %v1352_v19 }
 0x414   :  { %1360 = vst [vmem:[#allocation2] sm:$0x3] %v1358_v21  ;;  %v1361_v22 = vpack.c.bf16 %v1358_v21, %v1358_v21 }
 0x416   :  { %1362 = vst [vmem:[#allocation4] sm:$0x1] %v1361_v22 }
 0x41d   :  { %v1369_v23 = vld [vmem:[#allocation4] sm:$0x1] }
 0x41e   :  { %v1363_v24 = vld [vmem:[#allocation4] sm:$0x1]  ;;  %1595 = vmatmul.mubr.bf16.vlgmr.msra.gmra.mxu0 %v1369_v23  ;;  %1636 = vmatmul.mubr.bf16.vlgmr.msra.gmra.mxu1 %v1369_v23  ;;  %v1687_v23 = vld [vmem:[#allocation3] sm:$0x3] }
 0x41f   :  { %2854 = vst [vmem:[%s3886_s4 + $0x3] sm:$0x1] %v1363_v24  ;;  %1897 = vmatpush1.bf16.msra.mxu0 %v3553_v43  ;;  %1938 = vmatpush1.bf16.msra.mxu1 %v3558_v44 }
 0x420   :  { %1898 = vmatprep.subr.bf16.mxu0 %v3567_v46  ;;  %1939 = vmatprep.subr.bf16.mxu1 %v3572_v47 }
 0x421   :  { %1928 = vmatprep.mubr.bf16.mxu0 %v3169_v1  ;;  %1969 = vmatprep.mubr.bf16.mxu1 %v3169_v1 }
 0x423   :  { %1899 = vmatpush1.bf16.msra.mxu0 %v3577_v48  ;;  %1940 = vmatpush1.bf16.msra.mxu1 %v3582_v49 }
 0x424   :  { %1900 = vmatprep.subr.bf16.mxu0 %v3591_v50  ;;  %1941 = vmatprep.subr.bf16.mxu1 %v3596_v51 }
 0x427   :  { %1901 = vmatpush1.bf16.msra.mxu0 %v3601_v52  ;;  %1942 = vmatpush1.bf16.msra.mxu1 %v3606_v53 }
 0x428   :  { %1902 = vmatprep.subr.bf16.mxu0 %v3615_v54  ;;  %1943 = vmatprep.subr.bf16.mxu1 %v3620_v55 }
 0x42b   :  { %1903 = vmatpush1.bf16.msra.mxu0 %v3625_v56  ;;  %1944 = vmatpush1.bf16.msra.mxu1 %v3630_v57 }
 0x42c   :  { %1904 = vmatprep.subr.bf16.mxu0 %v3639_v59  ;;  %1945 = vmatprep.subr.bf16.mxu1 %v3644_v60 }
 0x42f   :  { %1905 = vmatpush1.bf16.msra.mxu0 %v3649_v61  ;;  %1946 = vmatpush1.bf16.msra.mxu1 %v3654_v62 }
 0x430   :  { %1906 = vmatprep.subr.bf16.mxu0 %v3663_v63  ;;  %1947 = vmatprep.subr.bf16.mxu1 %v3668_v27 }
 0x433   :  { %1907 = vmatpush1.bf16.msra.mxu0 %v3673_v3  ;;  %1948 = vmatpush1.bf16.msra.mxu1 %v3678_v4 }
 0x434   :  { %1908 = vmatprep.subr.bf16.mxu0 %v3692_v6  ;;  %1949 = vmatprep.subr.bf16.mxu1 %v3702_v8 }
 0x437   :  { %1909 = vmatpush1.bf16.msra.mxu0 %v3687_v5  ;;  %1950 = vmatpush1.bf16.msra.mxu1 %v3697_v7 }
 0x438   :  { %1910 = vmatprep.subr.bf16.mxu0 %v3707_v9  ;;  %1951 = vmatprep.subr.bf16.mxu1 %v3713_v10 }
 0x43b   :  { %1911 = vmatpush1.bf16.msra.mxu0 %v3721_v11  ;;  %1952 = vmatpush1.bf16.msra.mxu1 %v3726_v12 }
 0x43c   :  { %2230 = vmatprep.subr.bf16.mxu0 %v3543_v41  ;;  %2271 = vmatprep.subr.bf16.mxu1 %v3548_v42 }
 0x4de   :  { %v1596_v25 = vpop.f32.mrf.mxu0  ;;  %v1637_v26 = vpop.f32.mrf.mxu1 }
 0x4e0   :  { %v1598_v28 = vpop.f32.mrf.mxu0  ;;  %v1639_v29 = vpop.f32.mrf.mxu1 }
 0x4e1   :  { %v1648_v31 = vcombine.low %v1596_v25, %v1598_v28  ;;  %v1649_v32 = vcombine.low %v1637_v26, %v1639_v29 }
 0x4e2   :  { %v1600_v33 = vpop.f32.mrf.mxu0  ;;  %v1641_v34 = vpop.f32.mrf.mxu1 }
 0x4e3   :  { %v1656_v58 = vrot.slane %v1648_v31, %v3445_v45  ;;  %v1663_v0 = vrot.slane %v1649_v32, %v3445_v45 }
 0x4e4   :  { %v1601_v2 = vpop.f32.mrf.mxu0  ;;  %v1642_v35 = vpop.f32.mrf.mxu1 }
 0x4e5   :  { %v1664_v36 = vcombine.low %v1656_v58, %v1663_v0 }
 0x4e7   :  { %v1666_v37 = vadd.f32 %v1664_v36, %v1368_v30  ;;  %v3822_v36 = vld [vmem:[%s3885_s0 + $0x14] sm:$0xff]  }
 0x4e9   :  { %v1667_v38 = vmul.f32 0.5, %v1666_v37  ;;  %v1672_v39 = vrot.slane %v1666_v37, 2  ;;  %v1678_v13 = vrot.slane %v1666_v37, 4  ;;  %v1681_v14 = vrot.slane %v1666_v37, 6 }
 0x4eb   :  { %3129 = vtanh.f32 %v1667_v38  ;;  %v1674_v40 = vmul.f32 0.5, %v1672_v39  ;;  %v1683_v15 = vmul.f32 0.5, %v1681_v14 }
 0x4ed   :  { %3131 = vtanh.f32 %v1674_v40 }
 0x4ee   :  { %3133 = vtanh.f32 %v1678_v13 }
 0x4ef   :  { %3135 = vtanh.f32 %v1683_v15  ;;  %v1702_v15 = vunpack.c.l.bf16 %v3822_v36 }
 0x4f8   :  { %v3130_v17 = vpop.eup %3129 }
 0x4f9   :  { %v1669_v18 = vadd.f32 1.0, %v3130_v17 }
 0x4fa   :  { %v3132_v19 = vpop.eup %3131 }
 0x4fb   :  { %v1670_v20 = vmul.f32 0.5, %v1669_v18  ;;  %v1676_v16 = vadd.f32 1.0, %v3132_v19  ;;  %v3134_v22 = vpop.eup %3133 }
 0x4fc   :  { %v3136_v28 = vpop.eup %3135 }
 0x4fd   :  { %v1677_v21 = vmul.f32 0.5, %v1676_v16  ;;  %v1689_v25 = vmul.f32 %v3134_v22, %v1670_v20  ;;  %v1685_v29 = vadd.f32 1.0, %v3136_v28 }
 0x4ff   :  { %v1688_v24 = vmul.f32 %v1687_v23, %v1677_v21  ;;  %v1686_v31 = vmul.f32 0.5, %v1685_v29 }
 0x501   :  { %v1690_v26 = vadd.f32 %v1689_v25, %v1688_v24 }
 0x503   :  { %3137 = vtanh.f32 %v1690_v26  ;;  %1693 = vst [vmem:[#allocation3] sm:$0x3] %v1690_v26 }
 0x510   :  { %v3138_v32 = vpop.eup %3137 }
 0x511   :  { %v1692_v33 = vmul.f32 %v3138_v32, %v1686_v31 }
 0x513   :  { %1694 = vst [vmem:[#allocation2] sm:$0x3] %v1692_v33  ;;  %v1695_v34 = vpack.c.bf16 %v1692_v33, %v1692_v33 }
 0x515   :  { %1696 = vst [vmem:[#allocation4] sm:$0x1] %v1695_v34  ;;  %v2021_v34 = vld [vmem:[#allocation3] sm:$0x3] }
 0x51c   :  { %v1697_v58 = vld [vmem:[#allocation4] sm:$0x1] }
 0x51d   :  { %v1703_v30 = vld [vmem:[#allocation4] sm:$0x1]  ;;  %2888 = vst [vmem:[%s3886_s4 + $0x4] sm:$0x1] %v1697_v58 }
 0x51e   :  { %1929 = vmatmul.mubr.bf16.vlgmr.msra.gmra.mxu0 %v1703_v30  ;;  %1970 = vmatmul.mubr.bf16.vlgmr.msra.gmra.mxu1 %v1703_v30 }
 0x51f   :  { %2231 = vmatpush1.bf16.msra.mxu0 %v3553_v43  ;;  %2272 = vmatpush1.bf16.msra.mxu1 %v3558_v44 }
 0x520   :  { %2232 = vmatprep.subr.bf16.mxu0 %v3567_v46  ;;  %2273 = vmatprep.subr.bf16.mxu1 %v3572_v47 }
 0x521   :  { %2262 = vmatprep.mubr.bf16.mxu0 %v3169_v1  ;;  %2303 = vmatprep.mubr.bf16.mxu1 %v3169_v1 }
 0x523   :  { %2233 = vmatpush1.bf16.msra.mxu0 %v3577_v48  ;;  %2274 = vmatpush1.bf16.msra.mxu1 %v3582_v49 }
 0x524   :  { %2234 = vmatprep.subr.bf16.mxu0 %v3591_v50  ;;  %2275 = vmatprep.subr.bf16.mxu1 %v3596_v51 }
 0x527   :  { %2235 = vmatpush1.bf16.msra.mxu0 %v3601_v52  ;;  %2276 = vmatpush1.bf16.msra.mxu1 %v3606_v53 }
 0x528   :  { %2236 = vmatprep.subr.bf16.mxu0 %v3615_v54  ;;  %2277 = vmatprep.subr.bf16.mxu1 %v3620_v55 }
 0x52b   :  { %2237 = vmatpush1.bf16.msra.mxu0 %v3625_v56  ;;  %2278 = vmatpush1.bf16.msra.mxu1 %v3630_v57 }
 0x52c   :  { %2238 = vmatprep.subr.bf16.mxu0 %v3639_v59  ;;  %2279 = vmatprep.subr.bf16.mxu1 %v3644_v60 }
 0x52f   :  { %2239 = vmatpush1.bf16.msra.mxu0 %v3649_v61  ;;  %2280 = vmatpush1.bf16.msra.mxu1 %v3654_v62 }
 0x530   :  { %2240 = vmatprep.subr.bf16.mxu0 %v3663_v63  ;;  %2281 = vmatprep.subr.bf16.mxu1 %v3668_v27 }
 0x533   :  { %2241 = vmatpush1.bf16.msra.mxu0 %v3673_v3  ;;  %2282 = vmatpush1.bf16.msra.mxu1 %v3678_v4 }
 0x534   :  { %2242 = vmatprep.subr.bf16.mxu0 %v3692_v6  ;;  %2283 = vmatprep.subr.bf16.mxu1 %v3702_v8 }
 0x537   :  { %2243 = vmatpush1.bf16.msra.mxu0 %v3687_v5  ;;  %2284 = vmatpush1.bf16.msra.mxu1 %v3697_v7 }
 0x538   :  { %2244 = vmatprep.subr.bf16.mxu0 %v3707_v9  ;;  %2285 = vmatprep.subr.bf16.mxu1 %v3713_v10 }
 0x53b   :  { %2245 = vmatpush1.bf16.msra.mxu0 %v3721_v11  ;;  %2286 = vmatpush1.bf16.msra.mxu1 %v3726_v12 }
 0x53c   :  { %2564 = vmatprep.subr.bf16.mxu0 %v3543_v41  ;;  %2605 = vmatprep.subr.bf16.mxu1 %v3548_v42 }
 0x5de   :  { %v1930_v0 = vpop.f32.mrf.mxu0  ;;  %v1971_v2 = vpop.f32.mrf.mxu1 }
 0x5e0   :  { %v1932_v35 = vpop.f32.mrf.mxu0  ;;  %v1973_v37 = vpop.f32.mrf.mxu1 }
 0x5e1   :  { %v1982_v38 = vcombine.low %v1930_v0, %v1932_v35  ;;  %v1983_v39 = vcombine.low %v1971_v2, %v1973_v37 }
 0x5e2   :  { %v1934_v40 = vpop.f32.mrf.mxu0  ;;  %v1975_v13 = vpop.f32.mrf.mxu1 }
 0x5e3   :  { %v1990_v14 = vrot.slane %v1982_v38, %v3445_v45  ;;  %v1997_v41 = vrot.slane %v1983_v39, %v3445_v45 }
 0x5e4   :  { %v1935_v42 = vpop.f32.mrf.mxu0  ;;  %v1976_v17 = vpop.f32.mrf.mxu1 }
 0x5e5   :  { %v1998_v18 = vcombine.low %v1990_v14, %v1997_v41 }
 0x5e7   :  { %v2000_v19 = vadd.f32 %v1998_v18, %v1702_v15 }
 0x5e9   :  { %v2001_v20 = vmul.f32 0.5, %v2000_v19  ;;  %v2006_v16 = vrot.slane %v2000_v19, 2  ;;  %v2012_v22 = vrot.slane %v2000_v19, 4  ;;  %v2015_v23 = vrot.slane %v2000_v19, 6 }
 0x5eb   :  { %3139 = vtanh.f32 %v2001_v20  ;;  %v2008_v21 = vmul.f32 0.5, %v2006_v16  ;;  %v2017_v24 = vmul.f32 0.5, %v2015_v23 }
 0x5ed   :  { %3141 = vtanh.f32 %v2008_v21 }
 0x5ee   :  { %3143 = vtanh.f32 %v2012_v22 }
 0x5ef   :  { %3145 = vtanh.f32 %v2017_v24  ;;  %v2957_v24 = vld [vmem:[%s3885_s0 + $0x1c] sm:$0xf] }
 0x5f8   :  { %v3140_v25 = vpop.eup %3139 }
 0x5f9   :  { %v2003_v26 = vadd.f32 1.0, %v3140_v25 }
 0x5fa   :  { %v3142_v28 = vpop.eup %3141 }
 0x5fb   :  { %v2004_v29 = vmul.f32 0.5, %v2003_v26  ;;  %v2010_v31 = vadd.f32 1.0, %v3142_v28  ;;  %v3144_v33 = vpop.eup %3143 }
 0x5fc   :  { %v3146_v2 = vpop.eup %3145 }
 0x5fd   :  { %v2011_v32 = vmul.f32 0.5, %v2010_v31  ;;  %v2023_v30 = vmul.f32 %v3144_v33, %v2004_v29  ;;  %v2019_v35 = vadd.f32 1.0, %v3146_v2  ;;  %v2370_v33 = vunpack.c.l.bf16 %v2957_v24 }
 0x5ff   :  { %v2022_v58 = vmul.f32 %v2021_v34, %v2011_v32  ;;  %v2020_v37 = vmul.f32 0.5, %v2019_v35 }
 0x601   :  { %v2024_v0 = vadd.f32 %v2023_v30, %v2022_v58 }
 0x603   :  { %3147 = vtanh.f32 %v2024_v0  ;;  %2027 = vst [vmem:[#allocation3] sm:$0x3] %v2024_v0 }
 0x610   :  { %v3148_v38 = vpop.eup %3147 }
 0x611   :  { %v2026_v39 = vmul.f32 %v3148_v38, %v2020_v37 }
 0x613   :  { %2028 = vst [vmem:[#allocation2] sm:$0x3] %v2026_v39  ;;  %v2029_v40 = vpack.c.bf16 %v2026_v39, %v2026_v39 }
 0x615   :  { %2030 = vst [vmem:[#allocation4] sm:$0x1] %v2029_v40 }
 0x61c   :  { %v2031_v13 = vld [vmem:[#allocation4] sm:$0x1] }
 0x61d   :  { %v2037_v14 = vld [vmem:[#allocation4] sm:$0x1]  ;;  %2922 = vst [vmem:[%s3886_s4 + $0x5] sm:$0x1] %v2031_v13 }
 0x61e   :  { %2263 = vmatmul.mubr.bf16.vlgmr.msra.gmra.mxu0 %v2037_v14  ;;  %2304 = vmatmul.mubr.bf16.vlgmr.msra.gmra.mxu1 %v2037_v14 }
 0x61f   :  { %2565 = vmatpush1.bf16.msra.mxu0 %v3553_v43  ;;  %2606 = vmatpush1.bf16.msra.mxu1 %v3558_v44 }
 0x620   :  { %2566 = vmatprep.subr.bf16.mxu0 %v3567_v46  ;;  %2607 = vmatprep.subr.bf16.mxu1 %v3572_v47 }
 0x621   :  { %2596 = vmatprep.mubr.bf16.mxu0 %v3169_v1  ;;  %2637 = vmatprep.mubr.bf16.mxu1 %v3169_v1 }
 0x623   :  { %2567 = vmatpush1.bf16.msra.mxu0 %v3577_v48  ;;  %2608 = vmatpush1.bf16.msra.mxu1 %v3582_v49 }
 0x624   :  { %2568 = vmatprep.subr.bf16.mxu0 %v3591_v50  ;;  %2609 = vmatprep.subr.bf16.mxu1 %v3596_v51 }
 0x627   :  { %2569 = vmatpush1.bf16.msra.mxu0 %v3601_v52  ;;  %2610 = vmatpush1.bf16.msra.mxu1 %v3606_v53  ;;  %v2036_v52 = vunpack.c.h.bf16 %v3822_v36 }
 0x628   :  { %2570 = vmatprep.subr.bf16.mxu0 %v3615_v54  ;;  %2611 = vmatprep.subr.bf16.mxu1 %v3620_v55 }
 0x62b   :  { %2571 = vmatpush1.bf16.msra.mxu0 %v3625_v56  ;;  %2612 = vmatpush1.bf16.msra.mxu1 %v3630_v57 }
 0x62c   :  { %2572 = vmatprep.subr.bf16.mxu0 %v3639_v59  ;;  %2613 = vmatprep.subr.bf16.mxu1 %v3644_v60 }
 0x62f   :  { %2573 = vmatpush1.bf16.msra.mxu0 %v3649_v61  ;;  %2614 = vmatpush1.bf16.msra.mxu1 %v3654_v62 }
 0x630   :  { %2574 = vmatprep.subr.bf16.mxu0 %v3663_v63  ;;  %2615 = vmatprep.subr.bf16.mxu1 %v3668_v27 }
 0x633   :  { %2575 = vmatpush1.bf16.msra.mxu0 %v3673_v3  ;;  %2616 = vmatpush1.bf16.msra.mxu1 %v3678_v4 }
 0x634   :  { %2576 = vmatprep.subr.bf16.mxu0 %v3692_v6  ;;  %2617 = vmatprep.subr.bf16.mxu1 %v3702_v8 }
 0x637   :  { %2577 = vmatpush1.bf16.msra.mxu0 %v3687_v5  ;;  %2618 = vmatpush1.bf16.msra.mxu1 %v3697_v7 }
 0x638   :  { %2578 = vmatprep.subr.bf16.mxu0 %v3707_v9  ;;  %2619 = vmatprep.subr.bf16.mxu1 %v3713_v10  ;;  %v2355_v10 = vld [vmem:[#allocation3] sm:$0x3] }
 0x63b   :  { %2579 = vmatpush1.bf16.msra.mxu0 %v3721_v11  ;;  %2620 = vmatpush1.bf16.msra.mxu1 %v3726_v12 }
 0x6de   :  { %v2264_v1 = vpop.f32.mrf.mxu0  ;;  %v2305_v43 = vpop.f32.mrf.mxu1 }
 0x6e0   :  { %v2266_v44 = vpop.f32.mrf.mxu0  ;;  %v2307_v46 = vpop.f32.mrf.mxu1 }
 0x6e1   :  { %v2316_v47 = vcombine.low %v2264_v1, %v2266_v44  ;;  %v2317_v48 = vcombine.low %v2305_v43, %v2307_v46 }
 0x6e2   :  { %v2268_v49 = vpop.f32.mrf.mxu0  ;;  %v2309_v50 = vpop.f32.mrf.mxu1 }
 0x6e3   :  { %v2324_v51 = vrot.slane %v2316_v47, %v3445_v45  ;;  %v2331_v53 = vrot.slane %v2317_v48, %v3445_v45 }
 0x6e4   :  { %v2269_v54 = vpop.f32.mrf.mxu0  ;;  %v2310_v55 = vpop.f32.mrf.mxu1 }
 0x6e5   :  { %v2332_v56 = vcombine.low %v2324_v51, %v2331_v53 }
 0x6e7   :  { %v2334_v57 = vadd.f32 %v2332_v56, %v2036_v52 }
 0x6e9   :  { %v2335_v59 = vmul.f32 0.5, %v2334_v57  ;;  %v2340_v60 = vrot.slane %v2334_v57, 2  ;;  %v2346_v62 = vrot.slane %v2334_v57, 4  ;;  %v2349_v63 = vrot.slane %v2334_v57, 6 }
 0x6eb   :  { %3149 = vtanh.f32 %v2335_v59  ;;  %v2342_v61 = vmul.f32 0.5, %v2340_v60  ;;  %v2351_v27 = vmul.f32 0.5, %v2349_v63 }
 0x6ed   :  { %3151 = vtanh.f32 %v2342_v61 }
 0x6ee   :  { %3153 = vtanh.f32 %v2346_v62 }
 0x6ef   :  { %3155 = vtanh.f32 %v2351_v27 }
 0x6f8   :  { %v3150_v3 = vpop.eup %3149 }
 0x6f9   :  { %v2337_v4 = vadd.f32 1.0, %v3150_v3 }
 0x6fa   :  { %v3152_v5 = vpop.eup %3151 }
 0x6fb   :  { %v2338_v6 = vmul.f32 0.5, %v2337_v4  ;;  %v2344_v7 = vadd.f32 1.0, %v3152_v5  ;;  %v3154_v9 = vpop.eup %3153 }
 0x6fc   :  { %v3156_v15 = vpop.eup %3155 }
 0x6fd   :  { %v2345_v8 = vmul.f32 0.5, %v2344_v7  ;;  %v2357_v12 = vmul.f32 %v3154_v9, %v2338_v6  ;;  %v2353_v41 = vadd.f32 1.0, %v3156_v15 }
 0x6ff   :  { %v2356_v11 = vmul.f32 %v2355_v10, %v2345_v8  ;;  %v2354_v42 = vmul.f32 0.5, %v2353_v41 }
 0x701   :  { %v2358_v36 = vadd.f32 %v2357_v12, %v2356_v11 }
 0x703   :  { %3157 = vtanh.f32 %v2358_v36  ;;  %2361 = vst [vmem:[#allocation3] sm:$0x3] %v2358_v36 }
 0x70a   :  { %v2689_v48 = vld [vmem:[#allocation3] sm:$0x3] }
 0x710   :  { %v3158_v17 = vpop.eup %3157 }
 0x711   :  { %v2360_v18 = vmul.f32 %v3158_v17, %v2354_v42 }
 0x713   :  { %2362 = vst [vmem:[#allocation2] sm:$0x3] %v2360_v18  ;;  %v2363_v19 = vpack.c.bf16 %v2360_v18, %v2360_v18 }
 0x715   :  { %2364 = vst [vmem:[#allocation4] sm:$0x1] %v2363_v19 }
 0x71c   :  { %v2365_v20 = vld [vmem:[#allocation4] sm:$0x1] }
 0x71d   :  { %v2371_v16 = vld [vmem:[#allocation4] sm:$0x1]  ;;  %2956 = vst [vmem:[%s3886_s4 + $0x6] sm:$0x1] %v2365_v20 }
 0x71e   :  { %2597 = vmatmul.mubr.bf16.vlgmr.msra.gmra.mxu0 %v2371_v16  ;;  %2638 = vmatmul.mubr.bf16.vlgmr.msra.gmra.mxu1 %v2371_v16 }
 0x7de   :  { %v2598_v21 = vpop.f32.mrf.mxu0  ;;  %v2639_v22 = vpop.f32.mrf.mxu1 }
 0x7e0   :  { %v2600_v23 = vpop.f32.mrf.mxu0  ;;  %v2641_v25 = vpop.f32.mrf.mxu1 }
 0x7e1   :  { %v2650_v26 = vcombine.low %v2598_v21, %v2600_v23  ;;  %v2651_v28 = vcombine.low %v2639_v22, %v2641_v25 }
 0x7e2   :  { %v2602_v29 = vpop.f32.mrf.mxu0  ;;  %v2643_v31 = vpop.f32.mrf.mxu1 }
 0x7e3   :  { %v2658_v32 = vrot.slane %v2650_v26, %v3445_v45  ;;  %v2665_v34 = vrot.slane %v2651_v28, %v3445_v45 }
 0x7e4   :  { %v2603_v58 = vpop.f32.mrf.mxu0  ;;  %v2644_v30 = vpop.f32.mrf.mxu1 }
 0x7e5   :  { %v2666_v0 = vcombine.low %v2658_v32, %v2665_v34 }
 0x7e7   :  { %v2668_v2 = vadd.f32 %v2666_v0, %v2370_v33 }
 0x7e9   :  { %v2669_v35 = vmul.f32 0.5, %v2668_v2  ;;  %v2674_v37 = vrot.slane %v2668_v2, 2  ;;  %v2680_v39 = vrot.slane %v2668_v2, 4  ;;  %v2683_v40 = vrot.slane %v2668_v2, 6 }
 0x7eb   :  { %3159 = vtanh.f32 %v2669_v35  ;;  %v2676_v38 = vmul.f32 0.5, %v2674_v37  ;;  %v2685_v13 = vmul.f32 0.5, %v2683_v40 }
 0x7ed   :  { %3161 = vtanh.f32 %v2676_v38 }
 0x7ee   :  { %3163 = vtanh.f32 %v2680_v39 }
 0x7ef   :  { %3165 = vtanh.f32 %v2685_v13 }
 0x7f8   :  { %v3160_v14 = vpop.eup %3159 }
 0x7f9   :  { %v2671_v1 = vadd.f32 1.0, %v3160_v14 }
 0x7fa   :  { %v3162_v43 = vpop.eup %3161 }
 0x7fb   :  { %v2672_v44 = vmul.f32 0.5, %v2671_v1  ;;  %v2678_v46 = vadd.f32 1.0, %v3162_v43  ;;  %v3164_v47 = vpop.eup %3163 }
 0x7fc   :  { %v3166_v52 = vpop.eup %3165 }
 0x7fd   :  { %v2679_v45 = vmul.f32 0.5, %v2678_v46  ;;  %v2691_v50 = vmul.f32 %v3164_v47, %v2672_v44  ;;  %v2687_v54 = vadd.f32 1.0, %v3166_v52 }
 0x7ff   :  { %v2690_v49 = vmul.f32 %v2689_v48, %v2679_v45  ;;  %v2688_v55 = vmul.f32 0.5, %v2687_v54 }
 0x801   :  { %v2692_v51 = vadd.f32 %v2691_v50, %v2690_v49 }
 0x803   :  { %3167 = vtanh.f32 %v2692_v51  ;;  %2695 = vst [vmem:[#allocation3] sm:$0x3] %v2692_v51 }
 0x80a   :  { %v2707_v53 = vld [vmem:[#allocation3] sm:$0x3] }
 0x80b   :  { %2708 = vst [vmem:[%s3887_s6] sm:$0x3] %v2707_v53 }
 0x810   :  { %v3168_v56 = vpop.eup %3167 }
 0x811   :  { %v2694_v57 = vmul.f32 %v3168_v56, %v2688_v55 }
 0x813   :  { %2696 = vst [vmem:[#allocation2] sm:$0x3] %v2694_v57  ;;  %v2697_v59 = vpack.c.bf16 %v2694_v57, %v2694_v57 }
 0x815   :  { %2698 = vst [vmem:[#allocation4] sm:$0x1] %v2697_v59 }
 0x81a   :  { %v2705_v60 = vld [vmem:[#allocation2] sm:$0x3] }
 0x81b   :  { %2706 = vst [vmem:[%s3888_s5] sm:$0x3] %v2705_v60 }
 0x81c   :  { %v2699_v61 = vld [vmem:[#allocation4] sm:$0x1] }
 0x81d   :  { %2990 = vst [vmem:[%s3886_s4 + $0x7] sm:$0x1] %v2699_v61 }

</bundles_post_ra>
